<compile_context>
chip_gen: v7x
topology: tpu7x:2x2x1
jax: 0.10.0
libtpu: 0.0.40
codegen_flags: <defaults>
</compile_context>

<pallas_src>
import functools
import math

import jax
import jax.numpy as jnp
from jax.experimental import pallas as pl
from jax.experimental.pallas import tpu as pltpu

LANE = 128     # padded feature width for every channel dimension
TM = 128       # node-row tile of the aggregation matmul
TK = 128       # node-col (reduction) tile; raise to 256-512 for large graphs


def _round_up(v, m):
    return (v + m - 1) // m * m


# ----------------------------------------------------------------- kernel

def _gin_fused_kernel(a_ref, x_ref, wlin_ref, blin_ref,
                      w1_ref, b1_ref, w2_ref, b2_ref, lng_ref, lnb_ref,
                      cmask_ref, mask_ref,
                      fc1w_ref, fc1b_ref, fc2w_ref, fc2b_ref, fc3w_ref, fc3b_ref,
                      out_ref, h_scr, agg_scr,
                      *, hidden_real, use_norm, ln_eps):
    l = pl.program_id(0)
    i = pl.program_id(1)
    k = pl.program_id(2)
    n_l = pl.num_programs(0)
    n_i = pl.num_programs(1)
    n_k = pl.num_programs(2)

    tm = a_ref.shape[0]
    tk = a_ref.shape[1]

    first = (l == 0) & (i == 0) & (k == 0)
    layer_start = (i == 0) & (k == 0)
    layer_end = (i == n_i - 1) & (k == n_k - 1)
    last = (l == n_l - 1) & layer_end

    # ---- prologue (once): h = relu(x @ W_lin + b_lin) for all padded nodes ----
    @pl.when(first)
    def _():
        h0 = jnp.dot(x_ref[...], wlin_ref[...], preferred_element_type=jnp.float32)
        h_scr[...] = jnp.maximum(h0 + blin_ref[...], 0.0)

    # ---- zero the aggregation accumulator at the start of every GIN layer -----
    @pl.when(layer_start)
    def _():
        agg_scr[...] = jnp.zeros_like(agg_scr)

    # ---- streamed GIN aggregation: agg[rows i] += A[i, k] @ h[rows k] ----------
    row0 = pl.multiple_of(i * tm, tm)
    col0 = pl.multiple_of(k * tk, tk)
    h_k = h_scr[pl.ds(col0, tk), :].astype(jnp.bfloat16)     # bf16 MXU path
    agg_scr[pl.ds(row0, tm), :] += jnp.dot(
        a_ref[...], h_k, preferred_element_type=jnp.float32)

    # ---- layer end: BN-folded MLP (+ optional masked LayerNorm) on all rows ----
    @pl.when(layer_end)
    def _():
        z = agg_scr[...]
        z = jnp.dot(z, w1_ref[0], preferred_element_type=jnp.float32) + b1_ref[0]
        z = jnp.maximum(z, 0.0)
        z = jnp.dot(z, w2_ref[0], preferred_element_type=jnp.float32) + b2_ref[0]
        z = jnp.maximum(z, 0.0)
        # outer .relu() in forward() is a no-op after the MLP's final ReLU.
        if use_norm:
            cm = cmask_ref[...]                     # [1, LANE]: 1 on real channels
            inv_h = 1.0 / float(hidden_real)
            mu = jnp.sum(z * cm, axis=-1, keepdims=True) * inv_h
            d = (z - mu) * cm
            var = jnp.sum(d * d, axis=-1, keepdims=True) * inv_h
            z = d * jax.lax.rsqrt(var + ln_eps)
            z = z * lng_ref[0] + lnb_ref[0]         # padded gamma/beta are 0
        h_scr[...] = z

    # ---- epilogue (once): global max-pool + MLP head + sigmoid -----------------
    @pl.when(last)
    def _():
        h = h_scr[...]                              # [Np, LANE]
        m = mask_ref[...]                           # [G, Np] one-hot membership
        neg = jnp.finfo(jnp.float32).min
        masked = jnp.where(m[:, :, None] > 0.5, h[None, :, :], neg)
        pooled = jnp.max(masked, axis=1)            # [G, LANE]
        has_nodes = jnp.max(m, axis=1, keepdims=True) > 0.5
        pooled = jnp.where(has_nodes, pooled, 0.0)  # guard for empty graphs
        y = jnp.dot(pooled, fc1w_ref[...], preferred_element_type=jnp.float32)
        y = jnp.maximum(y + fc1b_ref[...], 0.0)
        y = jnp.dot(y, fc2w_ref[...], preferred_element_type=jnp.float32)
        y = jnp.maximum(y + fc2b_ref[...], 0.0)     # bn1 folded into fc2
        y = jnp.dot(y, fc3w_ref[...], preferred_element_type=jnp.float32)
        y = y + fc3b_ref[...]                       # bn2 folded into fc3
        out_ref[...] = jax.nn.sigmoid(y)


# ----------------------------------------------------------------- params (glue)

def _kaiming_relu_w(key, fan_in, fan_out):
    bound = math.sqrt(6.0 / fan_in)                 # gain(relu) * sqrt(3/fan_in)
    return jax.random.uniform(key, (fan_in, fan_out), jnp.float32, -bound, bound)


def _default_linear_w(key, fan_in, fan_out):
    bound = 1.0 / math.sqrt(fan_in)                 # PyTorch default Linear init
    return jax.random.uniform(key, (fan_in, fan_out), jnp.float32, -bound, bound)


def _linear_b(key, fan_in, fan_out):
    bound = 1.0 / math.sqrt(fan_in)
    return jax.random.uniform(key, (1, fan_out), jnp.float32, -bound, bound)


def _bn_fold(c, eps=1e-5):
    # Fresh BatchNorm1d, eval mode: gamma=1, beta=0, running_mean=0, running_var=1.
    gamma = jnp.ones((c,), jnp.float32)
    beta = jnp.zeros((c,), jnp.float32)
    mean = jnp.zeros((c,), jnp.float32)
    var = jnp.ones((c,), jnp.float32)
    s = gamma * jax.lax.rsqrt(var + eps)
    return s, beta - mean * s


def _pad_w(w):
    return jnp.zeros((LANE, LANE), jnp.float32).at[:w.shape[0], :w.shape[1]].set(w)


def _pad_b(b):
    return jnp.zeros((1, LANE), jnp.float32).at[:, :b.shape[1]].set(b)


def init_params(key, in_channels, hidden, num_layers, out_channels, use_norm_layers):
    assert max(in_channels, hidden, 64, 32, out_channels) <= LANE
    keys = jax.random.split(key, 2 + 4 * num_layers + 6)
    ki = iter(range(len(keys)))

    p = dict(hidden=hidden, out_channels=out_channels,
             use_norm_layers=use_norm_layers)

    # initial Linear (kaiming_uniform_ relu init, per the module)
    w = _kaiming_relu_w(keys[next(ki)], in_channels, hidden)
    b = _linear_b(keys[next(ki)], in_channels, hidden)
    p["lin_w"], p["lin_b"] = _pad_w(w), _pad_b(b)

    w1s, b1s, w2s, b2s, gs, bs = [], [], [], [], [], []
    for _ in range(num_layers):
        # GIN MLP: Linear -> BN -> ReLU -> Linear -> BN -> ReLU (default Linear init)
        w1 = _default_linear_w(keys[next(ki)], hidden, hidden)
        b1 = _linear_b(keys[next(ki)], hidden, hidden)
        w2 = _default_linear_w(keys[next(ki)], hidden, hidden)
        b2 = _linear_b(keys[next(ki)], hidden, hidden)
        s1, t1 = _bn_fold(hidden)
        s2, t2 = _bn_fold(hidden)
        # BN directly follows the Linear -> fold into the preceding Linear.
        w1s.append(_pad_w(w1 * s1[None, :]))
        b1s.append(_pad_b(b1 * s1[None, :] + t1[None, :]))
        w2s.append(_pad_w(w2 * s2[None, :]))
        b2s.append(_pad_b(b2 * s2[None, :] + t2[None, :]))
        # LayerNorm affine (gamma=1, beta=0); padded channels get gamma=0 -> stay 0.
        gs.append(jnp.zeros((1, LANE), jnp.float32).at[:, :hidden].set(1.0))
        bs.append(jnp.zeros((1, LANE), jnp.float32))
    p["w1_all"] = jnp.stack(w1s)[:, None].reshape(num_layers, LANE, LANE)
    p["b1_all"] = jnp.stack(b1s)                     # [L, 1, LANE]
    p["w2_all"] = jnp.stack(w2s)
    p["b2_all"] = jnp.stack(b2s)
    p["ln_g_all"] = jnp.stack(gs)
    p["ln_b_all"] = jnp.stack(bs)

    # channel-validity mask used by the masked LayerNorm
    p["cmask"] = jnp.zeros((1, LANE), jnp.float32).at[:, :hidden].set(1.0)

    # head: fc1 -> relu -> bn1 -> fc2 -> relu -> bn2 -> fc3 -> sigmoid
    fc1_w = _kaiming_relu_w(keys[next(ki)], hidden, 64)
    fc1_b = _linear_b(keys[next(ki)], hidden, 64)
    fc2_w = _kaiming_relu_w(keys[next(ki)], 64, 32)
    fc2_b = _linear_b(keys[next(ki)], 64, 32)
    fc3_w = _kaiming_relu_w(keys[next(ki)], 32, out_channels)
    fc3_b = _linear_b(keys[next(ki)], 32, out_channels)
    s1, t1 = _bn_fold(64)
    s2, t2 = _bn_fold(32)
    # BN sits AFTER the ReLU here, so fold it into the *following* Linear:
    #   fc2(bn1(z)) = z @ (s1[:,None]*W2) + (t1@W2 + b2)
    fc2_wf = s1[:, None] * fc2_w
    fc2_bf = t1[None, :] @ fc2_w + fc2_b
    fc3_wf = s2[:, None] * fc3_w
    fc3_bf = t2[None, :] @ fc3_w + fc3_b
    p["fc1_w"], p["fc1_b"] = _pad_w(fc1_w), _pad_b(fc1_b)
    p["fc2_w"], p["fc2_b"] = _pad_w(fc2_wf), _pad_b(fc2_bf)
    p["fc3_w"], p["fc3_b"] = _pad_w(fc3_wf), _pad_b(fc3_bf)
    return p


# ----------------------------------------------------------------- forward

def gin_classifier_forward(params, x, edge_index, batch, num_graphs):
    use_norm = params["use_norm_layers"]
    hidden = params["hidden"]
    out_channels = params["out_channels"]
    n = x.shape[0]
    n_pad = _round_up(max(n, TM), TM)
    num_layers = params["w1_all"].shape[0]

    # Glue: densify a_hat = A + (1 + eps) * I (GINConv default eps = 0), as bf16.
    src, dst = edge_index[0], edge_index[1]
    adj = jnp.zeros((n_pad, n_pad), jnp.float32).at[dst, src].add(1.0)
    diag = jnp.arange(n)
    a_hat = adj.at[diag, diag].add(1.0).astype(jnp.bfloat16)

    # Glue: zero-padded node features and [G, Np] graph-membership mask.
    x_p = jnp.zeros((n_pad, LANE), jnp.float32).at[:n, :x.shape[1]].set(x)
    batch_p = jnp.concatenate(
        [batch.astype(jnp.int32), jnp.full((n_pad - n,), -1, jnp.int32)])
    mask_gn = (jnp.arange(num_graphs, dtype=jnp.int32)[:, None]
               == batch_p[None, :]).astype(jnp.float32)

    grid = (num_layers, n_pad // TM, n_pad // TK)

    def _full(shape):
        nd = len(shape)
        return pl.BlockSpec(shape, lambda l, i, k, _nd=nd: (0,) * _nd)

    def _per_layer(shape):
        nd = len(shape)
        return pl.BlockSpec((1,) + tuple(shape[1:]),
                            lambda l, i, k, _nd=nd: (l,) + (0,) * (_nd - 1))

    in_specs = [
        pl.BlockSpec((TM, TK), lambda l, i, k: (i, k)),              # a_hat tiles
        _full(x_p.shape),
        _full(params["lin_w"].shape), _full(params["lin_b"].shape),
        _per_layer(params["w1_all"].shape), _per_layer(params["b1_all"].shape),
        _per_layer(params["w2_all"].shape), _per_layer(params["b2_all"].shape),
        _per_layer(params["ln_g_all"].shape), _per_layer(params["ln_b_all"].shape),
        _full(params["cmask"].shape),
        _full(mask_gn.shape),
        _full(params["fc1_w"].shape), _full(params["fc1_b"].shape),
        _full(params["fc2_w"].shape), _full(params["fc2_b"].shape),
        _full(params["fc3_w"].shape), _full(params["fc3_b"].shape),
    ]

    kern = functools.partial(_gin_fused_kernel, hidden_real=hidden,
                             use_norm=use_norm, ln_eps=1e-5)

    out_padded = pl.pallas_call(
        kern,
        out_shape=jax.ShapeDtypeStruct((num_graphs, LANE), jnp.float32),
        grid_spec=pltpu.PrefetchScalarGridSpec(
            num_scalar_prefetch=0,
            grid=grid,
            in_specs=in_specs,
            out_specs=pl.BlockSpec((num_graphs, LANE), lambda l, i, k: (0, 0)),
            scratch_shapes=[pltpu.VMEM((n_pad, LANE), jnp.float32),   # h (resident)
                            pltpu.VMEM((n_pad, LANE), jnp.float32)],  # aggregation
        ),
        # Every grid axis carries state through VMEM scratch -> 'arbitrary'.
        compiler_params=pltpu.CompilerParams(
            dimension_semantics=("arbitrary", "arbitrary", "arbitrary")),
    )(a_hat, x_p,
      params["lin_w"], params["lin_b"],
      params["w1_all"], params["b1_all"], params["w2_all"], params["b2_all"],
      params["ln_g_all"], params["ln_b_all"],
      params["cmask"], mask_gn,
      params["fc1_w"], params["fc1_b"],
      params["fc2_w"], params["fc2_b"],
      params["fc3_w"], params["fc3_b"])

    return out_padded[:, :out_channels]


# ----------------------------------------------------------------- demo

if __name__ == "__main__":
    n_nodes, in_channels, hidden = 200, 8, 32
    num_layers, out_channels, num_graphs = 2, 3, 2

    key = jax.random.PRNGKey(0)
    k_x, k_e0, k_e1, k_p = jax.random.split(key, 4)

    x = jax.random.normal(k_x, (n_nodes, in_channels), jnp.float32)
    # directed edges inside each graph (graph 0: nodes 0..99, graph 1: nodes 100..199)
    e0 = jax.random.randint(k_e0, (2, 400), 0, 100)
    e1 = jax.random.randint(k_e1, (2, 400), 100, 200)
    edge_index = jnp.concatenate([e0, e1], axis=1).astype(jnp.int32)
    batch = jnp.concatenate([jnp.zeros(100, jnp.int32), jnp.ones(100, jnp.int32)])

    params = init_params(k_p, in_channels, hidden, num_layers, out_channels,
                         use_norm_layers=True)
    out = gin_classifier_forward(params, x, edge_index, batch, num_graphs)
    out = jax.block_until_ready(out)

    assert out.shape == (num_graphs, out_channels)
    assert bool(jnp.all(jnp.isfinite(out)))
    assert bool(jnp.all((out >= 0.0) & (out <= 1.0)))   # sigmoid range
    print("KERNEL_OK")
</pallas_src>

<mosaic_0001>
module attributes {stable_mosaic.version = 11 : i64} {
  func.func @_gin_fused_kernel(%arg0: i32, %arg1: i32, %arg2: i32, %arg3: memref<128x128xbf16, #tpu.memory_space<vmem>>, %arg4: memref<256x128xf32, #tpu.memory_space<vmem>>, %arg5: memref<128x128xf32, #tpu.memory_space<vmem>>, %arg6: memref<1x128xf32, #tpu.memory_space<vmem>>, %arg7: memref<1x128x128xf32, #tpu.memory_space<vmem>>, %arg8: memref<1x1x128xf32, #tpu.memory_space<vmem>>, %arg9: memref<1x128x128xf32, #tpu.memory_space<vmem>>, %arg10: memref<1x1x128xf32, #tpu.memory_space<vmem>>, %arg11: memref<1x1x128xf32, #tpu.memory_space<vmem>>, %arg12: memref<1x1x128xf32, #tpu.memory_space<vmem>>, %arg13: memref<1x128xf32, #tpu.memory_space<vmem>>, %arg14: memref<2x256xf32, #tpu.memory_space<vmem>>, %arg15: memref<128x128xf32, #tpu.memory_space<vmem>>, %arg16: memref<1x128xf32, #tpu.memory_space<vmem>>, %arg17: memref<128x128xf32, #tpu.memory_space<vmem>>, %arg18: memref<1x128xf32, #tpu.memory_space<vmem>>, %arg19: memref<128x128xf32, #tpu.memory_space<vmem>>, %arg20: memref<1x128xf32, #tpu.memory_space<vmem>>, %arg21: memref<2x128xf32, #tpu.memory_space<vmem>>, %arg22: memref<256x128xf32, #tpu.memory_space<vmem>>, %arg23: memref<256x128xf32, #tpu.memory_space<vmem>>) attributes {dimension_semantics = [#tpu.dimension_semantics<arbitrary>, #tpu.dimension_semantics<arbitrary>, #tpu.dimension_semantics<arbitrary>], iteration_bounds = array<i64: 2, 2, 2>, scalar_prefetch = 0 : i64, scratch_operands = 2 : i64, tpu.core_type = #tpu.core_type<tc>, window_params = [{transform_indices = @transform_0, window_bounds = array<i64: 128, 128>}, {pipeline_mode = #tpu.pipeline_mode<synchronous>, transform_indices = @transform_1, window_bounds = array<i64: 256, 128>}, {pipeline_mode = #tpu.pipeline_mode<synchronous>, transform_indices = @transform_2, window_bounds = array<i64: 128, 128>}, {pipeline_mode = #tpu.pipeline_mode<synchronous>, transform_indices = @transform_3, window_bounds = array<i64: 1, 128>}, {transform_indices = @transform_4, window_bounds = array<i64: 1, 128, 128>}, {transform_indices = @transform_5, window_bounds = array<i64: 1, 1, 128>}, {transform_indices = @transform_6, window_bounds = array<i64: 1, 128, 128>}, {transform_indices = @transform_7, window_bounds = array<i64: 1, 1, 128>}, {transform_indices = @transform_8, window_bounds = array<i64: 1, 1, 128>}, {transform_indices = @transform_9, window_bounds = array<i64: 1, 1, 128>}, {pipeline_mode = #tpu.pipeline_mode<synchronous>, transform_indices = @transform_10, window_bounds = array<i64: 1, 128>}, {pipeline_mode = #tpu.pipeline_mode<synchronous>, transform_indices = @transform_11, window_bounds = array<i64: 2, 256>}, {pipeline_mode = #tpu.pipeline_mode<synchronous>, transform_indices = @transform_12, window_bounds = array<i64: 128, 128>}, {pipeline_mode = #tpu.pipeline_mode<synchronous>, transform_indices = @transform_13, window_bounds = array<i64: 1, 128>}, {pipeline_mode = #tpu.pipeline_mode<synchronous>, transform_indices = @transform_14, window_bounds = array<i64: 128, 128>}, {pipeline_mode = #tpu.pipeline_mode<synchronous>, transform_indices = @transform_15, window_bounds = array<i64: 1, 128>}, {pipeline_mode = #tpu.pipeline_mode<synchronous>, transform_indices = @transform_16, window_bounds = array<i64: 128, 128>}, {pipeline_mode = #tpu.pipeline_mode<synchronous>, transform_indices = @transform_17, window_bounds = array<i64: 1, 128>}, {pipeline_mode = #tpu.pipeline_mode<synchronous>, transform_indices = @transform_18, window_bounds = array<i64: 2, 128>}]} {
    %c0_i32 = arith.constant 0 : i32
    %0 = arith.cmpi eq, %arg0, %c0_i32 : i32
    %c0_i32_0 = arith.constant 0 : i32
    %1 = arith.cmpi eq, %arg1, %c0_i32_0 : i32
    %2 = arith.andi %0, %1 : i1
    %c0_i32_1 = arith.constant 0 : i32
    %3 = arith.cmpi eq, %arg2, %c0_i32_1 : i32
    %4 = arith.andi %2, %3 : i1
    %c0_i32_2 = arith.constant 0 : i32
    %5 = arith.cmpi eq, %arg1, %c0_i32_2 : i32
    %c0_i32_3 = arith.constant 0 : i32
    %6 = arith.cmpi eq, %arg2, %c0_i32_3 : i32
    %7 = arith.andi %5, %6 : i1
    %c1_i32 = arith.constant 1 : i32
    %8 = arith.cmpi eq, %arg1, %c1_i32 : i32
    %c1_i32_4 = arith.constant 1 : i32
    %9 = arith.cmpi eq, %arg2, %c1_i32_4 : i32
    %10 = arith.andi %8, %9 : i1
    %c1_i32_5 = arith.constant 1 : i32
    %11 = arith.cmpi eq, %arg0, %c1_i32_5 : i32
    %12 = arith.andi %11, %10 : i1
    %13 = arith.extui %4 : i1 to i32
    %c0_i32_6 = arith.constant 0 : i32
    %14 = arith.cmpi ne, %13, %c0_i32_6 : i32
    scf.if %14 {
      %c0_15 = arith.constant 0 : index
      %c0_16 = arith.constant 0 : index
      %35 = vector.load %arg4[%c0_15, %c0_16] : memref<256x128xf32, #tpu.memory_space<vmem>>, vector<256x128xf32>
      %c0_17 = arith.constant 0 : index
      %c0_18 = arith.constant 0 : index
      %36 = vector.load %arg5[%c0_17, %c0_18] : memref<128x128xf32, #tpu.memory_space<vmem>>, vector<128x128xf32>
      %cst_19 = arith.constant dense<0.000000e+00> : vector<256x128xf32>
      %37 = tpu.matmul %35, %36, %cst_19 {dimension_numbers = #tpu.dot_dimension_numbers<[1], [0], [0], [1], [0, 0, 1, 1], [], []>} : vector<256x128xf32>, vector<128x128xf32>, vector<256x128xf32> -> vector<256x128xf32>
      %c0_20 = arith.constant 0 : index
      %c0_21 = arith.constant 0 : index
      %38 = vector.load %arg6[%c0_20, %c0_21] : memref<1x128xf32, #tpu.memory_space<vmem>>, vector<1x128xf32>
      %39 = vector.broadcast %38 : vector<1x128xf32> to vector<256x128xf32>
      %40 = arith.addf %37, %39 : vector<256x128xf32>
      %cst_22 = arith.constant 0.000000e+00 : f32
      %41 = vector.broadcast %cst_22 : f32 to vector<256x128xf32>
      %42 = arith.maximumf %40, %41 : vector<256x128xf32>
      %c0_23 = arith.constant 0 : index
      %c0_24 = arith.constant 0 : index
      %43 = vector.load %arg22[%c0_23, %c0_24] : memref<256x128xf32, #tpu.memory_space<vmem>>, vector<256x128xf32>
      tpu.vector_store %arg22[%c0_23, %c0_24], %42 {strides = array<i32>} : memref<256x128xf32, #tpu.memory_space<vmem>>, vector<256x128xf32>,
    } else {
    }
    %15 = arith.extui %7 : i1 to i32
    %c0_i32_7 = arith.constant 0 : i32
    %16 = arith.cmpi ne, %15, %c0_i32_7 : i32
    scf.if %16 {
      %cst_15 = arith.constant 0.000000e+00 : f32
      %35 = vector.broadcast %cst_15 : f32 to vector<256x128xf32>
      %c0_16 = arith.constant 0 : index
      %c0_17 = arith.constant 0 : index
      %36 = vector.load %arg23[%c0_16, %c0_17] : memref<256x128xf32, #tpu.memory_space<vmem>>, vector<256x128xf32>
      tpu.vector_store %arg23[%c0_16, %c0_17], %35 {strides = array<i32>} : memref<256x128xf32, #tpu.memory_space<vmem>>, vector<256x128xf32>,
    } else {
    }
    %c128_i32 = arith.constant 128 : i32
    %17 = arith.muli %arg1, %c128_i32 : i32
    %18 = tpu.assume_multiple %17, 128 : i32
    %c128_i32_8 = arith.constant 128 : i32
    %19 = arith.muli %arg2, %c128_i32_8 : i32
    %20 = tpu.assume_multiple %19, 128 : i32
    %21 = arith.index_cast %20 : i32 to index
    %c0 = arith.constant 0 : index
    %22 = vector.load %arg22[%21, %c0] : memref<256x128xf32, #tpu.memory_space<vmem>>, vector<128x128xf32>
    %23 = arith.truncf %22 : vector<128x128xf32> to vector<128x128xbf16>
    %24 = arith.index_cast %18 : i32 to index
    %c0_9 = arith.constant 0 : index
    %25 = vector.load %arg23[%24, %c0_9] : memref<256x128xf32, #tpu.memory_space<vmem>>, vector<128x128xf32>
    %c0_10 = arith.constant 0 : index
    %c0_11 = arith.constant 0 : index
    %26 = vector.load %arg3[%c0_10, %c0_11] : memref<128x128xbf16, #tpu.memory_space<vmem>>, vector<128x128xbf16>
    %cst = arith.constant dense<0.000000e+00> : vector<128x128xf32>
    %27 = tpu.matmul %26, %23, %cst {dimension_numbers = #tpu.dot_dimension_numbers<[1], [0], [0], [1], [0, 0, 1, 1], [], []>} : vector<128x128xbf16>, vector<128x128xbf16>, vector<128x128xf32> -> vector<128x128xf32>
    %28 = arith.addf %25, %27 : vector<128x128xf32>
    %29 = arith.index_cast %18 : i32 to index
    %c0_12 = arith.constant 0 : index
    %30 = vector.load %arg23[%29, %c0_12] : memref<256x128xf32, #tpu.memory_space<vmem>>, vector<128x128xf32>
    tpu.vector_store %arg23[%29, %c0_12], %28 {strides = array<i32>} : memref<256x128xf32, #tpu.memory_space<vmem>>, vector<128x128xf32>,
    %31 = arith.extui %10 : i1 to i32
    %c0_i32_13 = arith.constant 0 : i32
    %32 = arith.cmpi ne, %31, %c0_i32_13 : i32
    scf.if %32 {
      %c0_15 = arith.constant 0 : index
      %c0_16 = arith.constant 0 : index
      %35 = vector.load %arg23[%c0_15, %c0_16] : memref<256x128xf32, #tpu.memory_space<vmem>>, vector<256x128xf32>
      %c0_17 = arith.constant 0 : index
      %c0_18 = arith.constant 0 : index
      %c0_19 = arith.constant 0 : index
      %36 = vector.load %arg7[%c0_17, %c0_18, %c0_19] : memref<1x128x128xf32, #tpu.memory_space<vmem>>, vector<1x128x128xf32>
      %37 = vector.shape_cast %36 : vector<1x128x128xf32> to vector<128x128xf32>
      %cst_20 = arith.constant dense<0.000000e+00> : vector<256x128xf32>
      %38 = tpu.matmul %35, %37, %cst_20 {dimension_numbers = #tpu.dot_dimension_numbers<[1], [0], [0], [1], [0, 0, 1, 1], [], []>} : vector<256x128xf32>, vector<128x128xf32>, vector<256x128xf32> -> vector<256x128xf32>
      %c0_21 = arith.constant 0 : index
      %c0_22 = arith.constant 0 : index
      %c0_23 = arith.constant 0 : index
      %39 = vector.load %arg8[%c0_21, %c0_22, %c0_23] : memref<1x1x128xf32, #tpu.memory_space<vmem>>, vector<1x1x128xf32>
      %40 = vector.shape_cast %39 : vector<1x1x128xf32> to vector<1x128xf32>
      %41 = vector.broadcast %40 : vector<1x128xf32> to vector<256x128xf32>
      %42 = arith.addf %38, %41 : vector<256x128xf32>
      %cst_24 = arith.constant 0.000000e+00 : f32
      %43 = vector.broadcast %cst_24 : f32 to vector<256x128xf32>
      %44 = arith.maximumf %42, %43 : vector<256x128xf32>
      %c0_25 = arith.constant 0 : index
      %c0_26 = arith.constant 0 : index
      %c0_27 = arith.constant 0 : index
      %45 = vector.load %arg9[%c0_25, %c0_26, %c0_27] : memref<1x128x128xf32, #tpu.memory_space<vmem>>, vector<1x128x128xf32>
      %46 = vector.shape_cast %45 : vector<1x128x128xf32> to vector<128x128xf32>
      %cst_28 = arith.constant dense<0.000000e+00> : vector<256x128xf32>
      %47 = tpu.matmul %44, %46, %cst_28 {dimension_numbers = #tpu.dot_dimension_numbers<[1], [0], [0], [1], [0, 0, 1, 1], [], []>} : vector<256x128xf32>, vector<128x128xf32>, vector<256x128xf32> -> vector<256x128xf32>
      %c0_29 = arith.constant 0 : index
      %c0_30 = arith.constant 0 : index
      %c0_31 = arith.constant 0 : index
      %48 = vector.load %arg10[%c0_29, %c0_30, %c0_31] : memref<1x1x128xf32, #tpu.memory_space<vmem>>, vector<1x1x128xf32>
      %49 = vector.shape_cast %48 : vector<1x1x128xf32> to vector<1x128xf32>
      %50 = vector.broadcast %49 : vector<1x128xf32> to vector<256x128xf32>
      %51 = arith.addf %47, %50 : vector<256x128xf32>
      %cst_32 = arith.constant 0.000000e+00 : f32
      %52 = vector.broadcast %cst_32 : f32 to vector<256x128xf32>
      %53 = arith.maximumf %51, %52 : vector<256x128xf32>
      %c0_33 = arith.constant 0 : index
      %c0_34 = arith.constant 0 : index
      %54 = vector.load %arg13[%c0_33, %c0_34] : memref<1x128xf32, #tpu.memory_space<vmem>>, vector<1x128xf32>
      %55 = vector.broadcast %54 : vector<1x128xf32> to vector<256x128xf32>
      %56 = arith.mulf %53, %55 : vector<256x128xf32>
      %cst_35 = arith.constant dense<0.000000e+00> : vector<256xf32>
      %57 = vector.multi_reduction <add>, %56, %cst_35 [1] : vector<256x128xf32> to vector<256xf32>
      %58 = vector.shape_cast %57 : vector<256xf32> to vector<256x1xf32>
      %cst_36 = arith.constant 3.125000e-02 : f32
      %59 = vector.broadcast %cst_36 : f32 to vector<256x1xf32>
      %60 = arith.mulf %58, %59 : vector<256x1xf32>
      %61 = vector.broadcast %60 : vector<256x1xf32> to vector<256x128xf32>
      %62 = arith.subf %53, %61 : vector<256x128xf32>
      %63 = vector.broadcast %54 : vector<1x128xf32> to vector<256x128xf32>
      %64 = arith.mulf %62, %63 : vector<256x128xf32>
      %65 = arith.mulf %64, %64 : vector<256x128xf32>
      %cst_37 = arith.constant dense<0.000000e+00> : vector<256xf32>
      %66 = vector.multi_reduction <add>, %65, %cst_37 [1] : vector<256x128xf32> to vector<256xf32>
      %67 = vector.shape_cast %66 : vector<256xf32> to vector<256x1xf32>
      %cst_38 = arith.constant 3.125000e-02 : f32
      %68 = vector.broadcast %cst_38 : f32 to vector<256x1xf32>
      %69 = arith.mulf %67, %68 : vector<256x1xf32>
      %cst_39 = arith.constant 9.99999974E-6 : f32
      %70 = vector.broadcast %cst_39 : f32 to vector<256x1xf32>
      %71 = arith.addf %69, %70 : vector<256x1xf32>
      %72 = math.rsqrt %71 : vector<256x1xf32>
      %73 = vector.broadcast %72 : vector<256x1xf32> to vector<256x128xf32>
      %74 = arith.mulf %64, %73 : vector<256x128xf32>
      %c0_40 = arith.constant 0 : index
      %c0_41 = arith.constant 0 : index
      %c0_42 = arith.constant 0 : index
      %75 = vector.load %arg11[%c0_40, %c0_41, %c0_42] : memref<1x1x128xf32, #tpu.memory_space<vmem>>, vector<1x1x128xf32>
      %76 = vector.shape_cast %75 : vector<1x1x128xf32> to vector<1x128xf32>
      %77 = vector.broadcast %76 : vector<1x128xf32> to vector<256x128xf32>
      %78 = arith.mulf %74, %77 : vector<256x128xf32>
      %c0_43 = arith.constant 0 : index
      %c0_44 = arith.constant 0 : index
      %c0_45 = arith.constant 0 : index
      %79 = vector.load %arg12[%c0_43, %c0_44, %c0_45] : memref<1x1x128xf32, #tpu.memory_space<vmem>>, vector<1x1x128xf32>
      %80 = vector.shape_cast %79 : vector<1x1x128xf32> to vector<1x128xf32>
      %81 = vector.broadcast %80 : vector<1x128xf32> to vector<256x128xf32>
      %82 = arith.addf %78, %81 : vector<256x128xf32>
      %c0_46 = arith.constant 0 : index
      %c0_47 = arith.constant 0 : index
      %83 = vector.load %arg22[%c0_46, %c0_47] : memref<256x128xf32, #tpu.memory_space<vmem>>, vector<256x128xf32>
      tpu.vector_store %arg22[%c0_46, %c0_47], %82 {strides = array<i32>} : memref<256x128xf32, #tpu.memory_space<vmem>>, vector<256x128xf32>,
    } else {
    }
    %33 = arith.extui %12 : i1 to i32
    %c0_i32_14 = arith.constant 0 : i32
    %34 = arith.cmpi ne, %33, %c0_i32_14 : i32
    scf.if %34 {
      %c0_15 = arith.constant 0 : index
      %c0_16 = arith.constant 0 : index
      %35 = vector.load %arg22[%c0_15, %c0_16] : memref<256x128xf32, #tpu.memory_space<vmem>>, vector<256x128xf32>
      %c0_17 = arith.constant 0 : index
      %c0_18 = arith.constant 0 : index
      %36 = vector.load %arg14[%c0_17, %c0_18] : memref<2x256xf32, #tpu.memory_space<vmem>>, vector<2x256xf32>
      %37 = vector.shape_cast %36 : vector<2x256xf32> to vector<2x256x1xf32>
      %cst_19 = arith.constant 5.000000e-01 : f32
      %38 = vector.broadcast %cst_19 : f32 to vector<2x256x1xf32>
      %39 = arith.cmpf ogt, %37, %38 : vector<2x256x1xf32>
      %40 = vector.shape_cast %35 : vector<256x128xf32> to vector<1x256x128xf32>
      %cst_20 = arith.constant -3.40282347E+38 : f32
      %41 = vector.shape_cast %39 : vector<2x256x1xi1> to vector<2x256x1xi1>
      %42 = vector.broadcast %41 : vector<2x256x1xi1> to vector<2x256x128xi1>
      %43 = vector.shape_cast %40 : vector<1x256x128xf32> to vector<1x256x128xf32>
      %44 = vector.broadcast %43 : vector<1x256x128xf32> to vector<2x256x128xf32>
      %45 = vector.broadcast %cst_20 : f32 to vector<2x256x128xf32>
      %46 = arith.select %42, %44, %45 : vector<2x256x128xi1>, vector<2x256x128xf32>
      %cst_21 = arith.constant dense<0xFF800000> : vector<2x128xf32>
      %47 = vector.multi_reduction <maximumf>, %46, %cst_21 [1] : vector<2x256x128xf32> to vector<2x128xf32>
      %cst_22 = arith.constant dense<0xFF800000> : vector<2xf32>
      %48 = vector.multi_reduction <maximumf>, %36, %cst_22 [1] : vector<2x256xf32> to vector<2xf32>
      %49 = vector.shape_cast %48 : vector<2xf32> to vector<2x1xf32>
      %cst_23 = arith.constant 5.000000e-01 : f32
      %50 = vector.broadcast %cst_23 : f32 to vector<2x1xf32>
      %51 = arith.cmpf ogt, %49, %50 : vector<2x1xf32>
      %cst_24 = arith.constant 0.000000e+00 : f32
      %52 = vector.shape_cast %51 : vector<2x1xi1> to vector<2x1xi1>
      %53 = vector.broadcast %52 : vector<2x1xi1> to vector<2x128xi1>
      %54 = vector.broadcast %cst_24 : f32 to vector<2x128xf32>
      %55 = arith.select %53, %47, %54 : vector<2x128xi1>, vector<2x128xf32>
      %c0_25 = arith.constant 0 : index
      %c0_26 = arith.constant 0 : index
      %56 = vector.load %arg15[%c0_25, %c0_26] : memref<128x128xf32, #tpu.memory_space<vmem>>, vector<128x128xf32>
      %cst_27 = arith.constant dense<0.000000e+00> : vector<2x128xf32>
      %57 = tpu.matmul %55, %56, %cst_27 {dimension_numbers = #tpu.dot_dimension_numbers<[1], [0], [0], [1], [0, 0, 1, 1], [], []>} : vector<2x128xf32>, vector<128x128xf32>, vector<2x128xf32> -> vector<2x128xf32>
      %c0_28 = arith.constant 0 : index
      %c0_29 = arith.constant 0 : index
      %58 = vector.load %arg16[%c0_28, %c0_29] : memref<1x128xf32, #tpu.memory_space<vmem>>, vector<1x128xf32>
      %59 = vector.broadcast %58 : vector<1x128xf32> to vector<2x128xf32>
      %60 = arith.addf %57, %59 : vector<2x128xf32>
      %cst_30 = arith.constant 0.000000e+00 : f32
      %61 = vector.broadcast %cst_30 : f32 to vector<2x128xf32>
      %62 = arith.maximumf %60, %61 : vector<2x128xf32>
      %c0_31 = arith.constant 0 : index
      %c0_32 = arith.constant 0 : index
      %63 = vector.load %arg17[%c0_31, %c0_32] : memref<128x128xf32, #tpu.memory_space<vmem>>, vector<128x128xf32>
      %cst_33 = arith.constant dense<0.000000e+00> : vector<2x128xf32>
      %64 = tpu.matmul %62, %63, %cst_33 {dimension_numbers = #tpu.dot_dimension_numbers<[1], [0], [0], [1], [0, 0, 1, 1], [], []>} : vector<2x128xf32>, vector<128x128xf32>, vector<2x128xf32> -> vector<2x128xf32>
      %c0_34 = arith.constant 0 : index
      %c0_35 = arith.constant 0 : index
      %65 = vector.load %arg18[%c0_34, %c0_35] : memref<1x128xf32, #tpu.memory_space<vmem>>, vector<1x128xf32>
      %66 = vector.broadcast %65 : vector<1x128xf32> to vector<2x128xf32>
      %67 = arith.addf %64, %66 : vector<2x128xf32>
      %cst_36 = arith.constant 0.000000e+00 : f32
      %68 = vector.broadcast %cst_36 : f32 to vector<2x128xf32>
      %69 = arith.maximumf %67, %68 : vector<2x128xf32>
      %c0_37 = arith.constant 0 : index
      %c0_38 = arith.constant 0 : index
      %70 = vector.load %arg19[%c0_37, %c0_38] : memref<128x128xf32, #tpu.memory_space<vmem>>, vector<128x128xf32>
      %cst_39 = arith.constant dense<0.000000e+00> : vector<2x128xf32>
      %71 = tpu.matmul %69, %70, %cst_39 {dimension_numbers = #tpu.dot_dimension_numbers<[1], [0], [0], [1], [0, 0, 1, 1], [], []>} : vector<2x128xf32>, vector<128x128xf32>, vector<2x128xf32> -> vector<2x128xf32>
      %c0_40 = arith.constant 0 : index
      %c0_41 = arith.constant 0 : index
      %72 = vector.load %arg20[%c0_40, %c0_41] : memref<1x128xf32, #tpu.memory_space<vmem>>, vector<1x128xf32>
      %73 = vector.broadcast %72 : vector<1x128xf32> to vector<2x128xf32>
      %74 = arith.addf %71, %73 : vector<2x128xf32>
      %75 = arith.negf %74 : vector<2x128xf32>
      %76 = math.exp %75 : vector<2x128xf32>
      %cst_42 = arith.constant 1.000000e+00 : f32
      %77 = vector.broadcast %cst_42 : f32 to vector<2x128xf32>
      %78 = arith.addf %77, %76 : vector<2x128xf32>
      %79 = arith.divf %77, %78 : vector<2x128xf32>
      %c0_43 = arith.constant 0 : index
      %c0_44 = arith.constant 0 : index
      %80 = vector.load %arg21[%c0_43, %c0_44] : memref<2x128xf32, #tpu.memory_space<vmem>>, vector<2x128xf32>
      tpu.vector_store %arg21[%c0_43, %c0_44], %79 {strides = array<i32>} : memref<2x128xf32, #tpu.memory_space<vmem>>, vector<2x128xf32>,
    } else {
    }
    return
  }
  func.func @transform_0(%arg0: i32, %arg1: i32, %arg2: i32) -> (i32, i32) {
    %c0_i32 = arith.constant 0 : i32
    return %arg1, %arg2 : i32, i32
  }
  func.func @transform_1(%arg0: i32, %arg1: i32, %arg2: i32) -> (i32, i32) {
    %c0_i32 = arith.constant 0 : i32
    %c0_i32_0 = arith.constant 0 : i32
    %c0_i32_1 = arith.constant 0 : i32
    return %c0_i32, %c0_i32_0 : i32, i32
  }
  func.func @transform_2(%arg0: i32, %arg1: i32, %arg2: i32) -> (i32, i32) {
    %c0_i32 = arith.constant 0 : i32
    %c0_i32_0 = arith.constant 0 : i32
    %c0_i32_1 = arith.constant 0 : i32
    return %c0_i32, %c0_i32_0 : i32, i32
  }
  func.func @transform_3(%arg0: i32, %arg1: i32, %arg2: i32) -> (i32, i32) {
    %c0_i32 = arith.constant 0 : i32
    %c0_i32_0 = arith.constant 0 : i32
    %c0_i32_1 = arith.constant 0 : i32
    return %c0_i32, %c0_i32_0 : i32, i32
  }
  func.func @transform_4(%arg0: i32, %arg1: i32, %arg2: i32) -> (i32, i32, i32) {
    %c0_i32 = arith.constant 0 : i32
    %c0_i32_0 = arith.constant 0 : i32
    %c0_i32_1 = arith.constant 0 : i32
    return %arg0, %c0_i32, %c0_i32_0 : i32, i32, i32
  }
  func.func @transform_5(%arg0: i32, %arg1: i32, %arg2: i32) -> (i32, i32, i32) {
    %c0_i32 = arith.constant 0 : i32
    %c0_i32_0 = arith.constant 0 : i32
    %c0_i32_1 = arith.constant 0 : i32
    return %arg0, %c0_i32, %c0_i32_0 : i32, i32, i32
  }
  func.func @transform_6(%arg0: i32, %arg1: i32, %arg2: i32) -> (i32, i32, i32) {
    %c0_i32 = arith.constant 0 : i32
    %c0_i32_0 = arith.constant 0 : i32
    %c0_i32_1 = arith.constant 0 : i32
    return %arg0, %c0_i32, %c0_i32_0 : i32, i32, i32
  }
  func.func @transform_7(%arg0: i32, %arg1: i32, %arg2: i32) -> (i32, i32, i32) {
    %c0_i32 = arith.constant 0 : i32
    %c0_i32_0 = arith.constant 0 : i32
    %c0_i32_1 = arith.constant 0 : i32
    return %arg0, %c0_i32, %c0_i32_0 : i32, i32, i32
  }
  func.func @transform_8(%arg0: i32, %arg1: i32, %arg2: i32) -> (i32, i32, i32) {
    %c0_i32 = arith.constant 0 : i32
    %c0_i32_0 = arith.constant 0 : i32
    %c0_i32_1 = arith.constant 0 : i32
    return %arg0, %c0_i32, %c0_i32_0 : i32, i32, i32
  }
  func.func @transform_9(%arg0: i32, %arg1: i32, %arg2: i32) -> (i32, i32, i32) {
    %c0_i32 = arith.constant 0 : i32
    %c0_i32_0 = arith.constant 0 : i32
    %c0_i32_1 = arith.constant 0 : i32
    return %arg0, %c0_i32, %c0_i32_0 : i32, i32, i32
  }
  func.func @transform_10(%arg0: i32, %arg1: i32, %arg2: i32) -> (i32, i32) {
    %c0_i32 = arith.constant 0 : i32
    %c0_i32_0 = arith.constant 0 : i32
    %c0_i32_1 = arith.constant 0 : i32
    return %c0_i32, %c0_i32_0 : i32, i32
  }
  func.func @transform_11(%arg0: i32, %arg1: i32, %arg2: i32) -> (i32, i32) {
    %c0_i32 = arith.constant 0 : i32
    %c0_i32_0 = arith.constant 0 : i32
    %c0_i32_1 = arith.constant 0 : i32
    return %c0_i32, %c0_i32_0 : i32, i32
  }
  func.func @transform_12(%arg0: i32, %arg1: i32, %arg2: i32) -> (i32, i32) {
    %c0_i32 = arith.constant 0 : i32
    %c0_i32_0 = arith.constant 0 : i32
    %c0_i32_1 = arith.constant 0 : i32
    return %c0_i32, %c0_i32_0 : i32, i32
  }
  func.func @transform_13(%arg0: i32, %arg1: i32, %arg2: i32) -> (i32, i32) {
    %c0_i32 = arith.constant 0 : i32
    %c0_i32_0 = arith.constant 0 : i32
    %c0_i32_1 = arith.constant 0 : i32
    return %c0_i32, %c0_i32_0 : i32, i32
  }
  func.func @transform_14(%arg0: i32, %arg1: i32, %arg2: i32) -> (i32, i32) {
    %c0_i32 = arith.constant 0 : i32
    %c0_i32_0 = arith.constant 0 : i32
    %c0_i32_1 = arith.constant 0 : i32
    return %c0_i32, %c0_i32_0 : i32, i32
  }
  func.func @transform_15(%arg0: i32, %arg1: i32, %arg2: i32) -> (i32, i32) {
    %c0_i32 = arith.constant 0 : i32
    %c0_i32_0 = arith.constant 0 : i32
    %c0_i32_1 = arith.constant 0 : i32
    return %c0_i32, %c0_i32_0 : i32, i32
  }
  func.func @transform_16(%arg0: i32, %arg1: i32, %arg2: i32) -> (i32, i32) {
    %c0_i32 = arith.constant 0 : i32
    %c0_i32_0 = arith.constant 0 : i32
    %c0_i32_1 = arith.constant 0 : i32
    return %c0_i32, %c0_i32_0 : i32, i32
  }
  func.func @transform_17(%arg0: i32, %arg1: i32, %arg2: i32) -> (i32, i32) {
    %c0_i32 = arith.constant 0 : i32
    %c0_i32_0 = arith.constant 0 : i32
    %c0_i32_1 = arith.constant 0 : i32
    return %c0_i32, %c0_i32_0 : i32, i32
  }
  func.func @transform_18(%arg0: i32, %arg1: i32, %arg2: i32) -> (i32, i32) {
    %c0_i32 = arith.constant 0 : i32
    %c0_i32_0 = arith.constant 0 : i32
    %c0_i32_1 = arith.constant 0 : i32
    return %c0_i32, %c0_i32_0 : i32, i32
  }
}

</mosaic_0001>

<bundles_post_ra>
// kernel: tpu_custom_call.1
= control target key start
LH: loop header
LB: loop body
LE: loop exit
PB: predicated region body
PF: predicated region fallthrough
CT: control target
= control target key end

     0   :  { %s6790_s0 = inlined_call_operand.hbm [shape: bf16[256,256], index: 0, kind: input, shape index: {}]   ;;  %s6791_s1 = inlined_call_operand.hbm [shape: f32[256,128], index: 1, kind: input, shape index: {}]   ;;  %s6792_s2 = inlined_call_operand.hbm [shape: f32[128,128], index: 2, kind: input, shape index: {}]   ;;  %s6793_s3 = inlined_call_operand.vmem [shape: f32[1,128], index: 3, kind: input, shape index: {}]   ;;  %s6794_s4 = inlined_call_operand.hbm [shape: f32[2,128,128], index: 4, kind: input, shape index: {}]   ;;  %s6795_s5 = inlined_call_operand.vmem [shape: f32[2,1,128], index: 5, kind: input, shape index: {}]   ;;  %s6796_s6 = inlined_call_operand.hbm [shape: f32[2,128,128], index: 6, kind: input, shape index: {}]   ;;  %s6797_s7 = inlined_call_operand.vmem [shape: f32[2,1,128], index: 7, kind: input, shape index: {}]   ;;  %s6798_s8 = inlined_call_operand.vmem [shape: f32[2,1,128], index: 8, kind: input, shape index: {}]   ;;  %s6799_s9 = inlined_call_operand.vmem [shape: f32[2,1,128], index: 9, kind: input, shape index: {}]   ;;  %s6800_s10 = inlined_call_operand.vmem [shape: f32[1,128], index: 10, kind: input, shape index: {}]   ;;  %s6801_s11 = inlined_call_operand.vmem [shape: f32[2,256], index: 11, kind: input, shape index: {}]   ;;  %s6802_s12 = inlined_call_operand.hbm [shape: f32[128,128], index: 12, kind: input, shape index: {}]   ;;  %s6803_s13 = inlined_call_operand.vmem [shape: f32[1,128], index: 13, kind: input, shape index: {}]   ;;  %s6804_s14 = inlined_call_operand.hbm [shape: f32[128,128], index: 14, kind: input, shape index: {}]   ;;  %s6805_s15 = inlined_call_operand.vmem [shape: f32[1,128], index: 15, kind: input, shape index: {}]   ;;  %s6806_s16 = inlined_call_operand.hbm [shape: f32[128,128], index: 16, kind: input, shape index: {}]   ;;  %s6807_s17 = inlined_call_operand.vmem [shape: f32[1,128], index: 17, kind: input, shape index: {}]   ;;  %s6808_s18 = inlined_call_operand.hbm [shape: f32[2,128], index: 18, kind: output, shape index: {}]  }
   0x1   :  { %6867 = sst [smem:[#allocation40_spill]] %s6790_s0 }
   0x2   :  { %6868 = sst [smem:[#allocation41_spill]] %s6791_s1 }
   0x3   :  { %6869 = sst [smem:[#allocation42_spill]] %s6792_s2 }
   0x4   :  { %6870 = sst [smem:[#allocation43_spill]] %s6793_s3 }
   0x5   :  { %6871 = sst [smem:[#allocation44_spill]] %s6794_s4 }
   0x6   :  { %6872 = sst [smem:[#allocation45_spill]] %s6795_s5 }
   0x7   :  { %6873 = sst [smem:[#allocation46_spill]] %s6796_s6 }
   0x8   :  { %6874 = sst [smem:[#allocation47_spill]] %s6797_s7 }
   0x9   :  { %6875 = sst [smem:[#allocation48_spill]] %s6798_s8 }
   0xa   :  { %6876 = sst [smem:[#allocation49_spill]] %s6799_s9 }
   0xb   :  { %6877 = sst [smem:[#allocation50_spill]] %s6800_s10 }
   0xc   :  { %6878 = sst [smem:[#allocation51_spill]] %s6801_s11 }
   0xd   :  { %6879 = sst [smem:[#allocation52_spill]] %s6802_s12 }
   0xe   :  { %6880 = sst [smem:[#allocation53_spill]] %s6803_s13 }
   0xf   :  { %6881 = sst [smem:[#allocation54_spill]] %s6804_s14 }
  0x10   :  { %6882 = sst [smem:[#allocation55_spill]] %s6805_s15 }
  0x11   :  { %6883 = sst [smem:[#allocation56_spill]] %s6806_s16 }
  0x12   :  { %6884 = sst [smem:[#allocation57_spill]] %s6807_s17 }
  0x13   :  { %6885 = sst [smem:[#allocation58_spill]] %s6808_s18 }
  0x14   :  { %23 = vsyncpa [#allocation5], 0 }
  0x15   :  { %25 = vsyncpa [#allocation5 + $0x1], 0 }
  0x16   :  { %26 = vsyncpa [#allocation8], 0 }
  0x17   :  { %27 = vsyncpa [#allocation11], 0 }
  0x18   :  { %29 = vsyncpa [#allocation11 + $0x1], 0 }
  0x19   :  { %30 = vsyncpa [#allocation14], 0 }
  0x1a   :  { %31 = vsyncpa [#allocation17], 0 }
  0x1b   :  { %32 = vsyncpa [#allocation6], 0  ;;  %s5331_s27 = smov 0   ;;  %s5333_s28 = smov 0  }
  0x1c   :  { %s5335_s29 = smov 0   ;;  %s5337_s30 = smov 0  }
  0x1d   :  { %s5339_s0 = smov 0   ;;  %s5341_s19 = smov 0  }
  0x1e   :  { %s5343_s1 = smov 0   ;;  %s5345_s20 = smov 0  }
  0x1f   :  { %s5347_s21 = smov 0   ;;  %s5349_s22 = smov 0  }
  0x20   :  { %s5351_s2 = smov 0   ;;  %s5353_s23 = smov 0  }
  0x21   :  { %s5355_s24 = smov 0  }
  0x22 LB: > { %6886 = sst [smem:[#allocation25_spill]] %s5173_s28  ;;  %s5397_s25 = sadd.s32 4294967295, %s5217_s24   ;;  %s5217_s24 = sphi %s5355_s24, %s7005_s24   ;;  %s5213_s23 = sphi %s5353_s23, %s7004_s23   ;;  %s5209_s2 = sphi %s5351_s2, %s6994_s2   ;;  %s5205_s22 = sphi %s5349_s22, %s7003_s22   ;;  %s5201_s21 = sphi %s5347_s21, %s7002_s21   ;;  %s5197_s20 = sphi %s5345_s20, %s6992_s20   ;;  %s5193_s1 = sphi %s5343_s1, %s7001_s1   ;;  %s5189_s19 = sphi %s5341_s19, %s7000_s19   ;;  %s5185_s0 = sphi %s5339_s0, %s6999_s0   ;;  %s5181_s30 = sphi %s5337_s30, %s6991_s30   ;;  %s5177_s29 = sphi %s5335_s29, %s6998_s29   ;;  %s5173_s28 = sphi %s5333_s28, %s6997_s28   ;;  %s5169_s27 = sphi %s5331_s27, %s6990_s27  }
  0x23   : > { %6887 = sst [smem:[#allocation26_spill]] %s5181_s30  ;;  %p3729_p0 = scmp.ge.s32.totalorder %s5217_s24, 1 }
  0x24   : > { %6888 = sst [smem:[#allocation27_spill]] %s5185_s0  ;;  %p6814_p1 = scmp.eq.s32.totalorder %s5397_s25, 0 }
  0x25   : > { %6889 = sst [smem:[#allocation28_spill]] %s5193_s1  ;;  %p498_p2 = scmp.lt.s32.totalorder %s5217_s24, 9 }
  0x26   : > { %6890 = sst [smem:[#allocation29_spill]] %s5197_s20  ;;  %s5219_s18 = smov [#allocation7]  }
  0x27   : > { %6891 = sst [smem:[#allocation30_spill]] %s5201_s21  ;;  %p5402_p3 = pnand %p3729_p0, %p498_p2 }
  0x28   : > { %6892 = sst [smem:[#allocation31_spill]] %s5209_s2  ;;  %s510_s17 = sshll.u32 %s5219_s18, 4  ;;  %s511_s17 = int_to_ptr.vmem [resolvable:$true] %s510_s17 }
  0x29   : > { %6893 = sst [smem:[#allocation32_spill]] %s5217_s24  ;;  %p4602_p4 = pneg %p5402_p3 }
  0x2a   : > { %6894 = sst [smem:[#allocation33_spill]] %s5397_s25  ;;  %s5220_s13 = smov [#allocation13]  }
  0x2b   : > { %s6895_s26 = scalar_select %p5402_p3, 1, 0 }
  0x2c   : > { %p5410_p5 = pnand %p4602_p4, %p6814_p1  ;;  %s545_s11 = sshll.u32 %s5220_s13, 4  ;;  %s5414_s11 = int_to_ptr.vmem [resolvable:$true] %s545_s11 }
  0x2d   : > { %6896 = sst [smem:[#allocation34_spill]] %s6895_s26  ;;  %s6898_s9 = sld [smem:[#allocation41_spill]] }
  0x2e   : > { %s6897_s15 = scalar_select %p5410_p5, 1, 0 }
  0x2f   : > { %p5424_p7 = pneg %p5410_p5 }
  0x33   : > { %s4835_s8 = scalar_lea.hbm %s6898_s9, 4096 }
  0x34   : > { %p4836_p6 = scmp.ne.s32.totalorder %s6898_s9, %s4835_s8  ;;  %p4842_p10 = scmp.lt.u32.totalorder %s4835_s8, %s6898_s9 }
  0x36   : > { %p4838_p8 = pnand %p5424_p7, %p4836_p6 }
  0x38   : > { %p4839_p9 = pneg %p4838_p8 }
  0x3a   : > { %p4844_p11 = pnand %p4842_p10, %p4839_p9 }
  0x3c   : > { %4847 = shalt.err (!%p4844_p11)
}
  0x3d   : > { %s4848_s3 = scalar_lea.vmem %s511_s17, 4096  ;;  %p4856_p2 = scmp.lt.s32.totalorder %s511_s17, %s511_s17 }
  0x3e   : > { %p4849_p12 = scmp.ne.s32.totalorder %s511_s17, %s4848_s3  ;;  %p4857_p4 = scmp.lt.s32.totalorder %s4848_s3, %s4848_s3 }
  0x40   : > { %p4851_p13 = pnand %p4849_p12, %p5424_p7  ;;  %p4858_p1 = por %p4857_p4, %p4856_p2 }
  0x42   : > { %p4852_p0 = pneg %p4851_p13 }
  0x44   : > { %p4859_p3 = pnand %p4858_p1, %p4852_p0 }
  0x46   : > { %4862 = shalt.err (!%p4859_p3)
}
  0x47   : > { %s6820_s5 = smov 128   ;;  %s6822_s7 = smov 8  }
  0x48   : > { %4605 = dma.hbm_to_vmem [thread:$0]  (!%p5410_p5), %s6898_s9, 4096, %s511_s17, [#allocation8], %s6820_s5, %s6820_s5, %s6822_s7  }
  0x49   : > { %s6900_s12 = sld [smem:[#allocation52_spill]] }
  0x4f   : > { %s4863_s20 = scalar_lea.hbm %s6900_s12, 2048 }
  0x50   : > { %p4864_p1 = scmp.ne.s32.totalorder %s6900_s12, %s4863_s20  ;;  %p4870_p8 = scmp.lt.u32.totalorder %s4863_s20, %s6900_s12 }
  0x52   : > { %p4866_p3 = pnand %p4864_p1, %p5424_p7 }
  0x54   : > { %p4867_p6 = pneg %p4866_p3 }
  0x56   : > { %p4872_p9 = pnand %p4870_p8, %p4867_p6 }
  0x58   : > { %4875 = shalt.err (!%p4872_p9)
}
  0x59   : > { %s4876_s17 = scalar_lea.vmem %s5414_s11, 2048  ;;  %p4884_p13 = scmp.lt.s32.totalorder %s5414_s11, %s5414_s11 }
  0x5a   : > { %p4877_p10 = scmp.ne.s32.totalorder %s5414_s11, %s4876_s17  ;;  %p4885_p0 = scmp.lt.s32.totalorder %s4876_s17, %s4876_s17 }
  0x5c   : > { %p4879_p11 = pnand %p4877_p10, %p5424_p7  ;;  %p4886_p2 = por %p4885_p0, %p4884_p13 }
  0x5e   : > { %p4880_p12 = pneg %p4879_p11 }
  0x60   : > { %p4887_p4 = pnand %p4886_p2, %p4880_p12 }
  0x62   : > { %4890 = shalt.err (!%p4887_p4)
}
  0x63   : > { %4611 = dma.hbm_to_vmem [thread:$0]  (!%p5410_p5), %s6900_s12, 2048, %s5414_s11, [#allocation14], %s6820_s5, %s6820_s5, %s6822_s7  }
  0x64   : > { %p6825_p1 = scmp.eq.s32.totalorder %s5217_s24, 0  ;;  %p162_p3 = scmp.ne.s32.totalorder %s5177_s29, %s5173_s28 }
  0x65   : > { %p168_p6 = scmp.ne.s32.totalorder %s5173_s28, %s5169_s27  ;;  %p6824_p8 = scmp.lt.s32.totalorder %s5217_s24, 8 }
  0x66   : > { %p164_p9 = por %p162_p3, %p6825_p1  ;;  %s617_s26 = sand.u32 1, %s5217_s24  }
  0x67   : > { %p6901_p10 = scmp.eq.s32.totalorder %s5397_s25, 0  ;;  %s619_s10 = sand.u32 1, %s5177_s29  }
  0x68   : > { %s6819_s1 = sshll.u32 %s5213_s23, 11  ;;  %s5487_s13 = sshll.u32 %s619_s10, 7 }
  0x69   : > { %p5481_p11 = por %p168_p6, %p6901_p10  ;;  %s6904_s4 = sld [smem:[#allocation44_spill]] }
  0x6a   : > { %p5498_p12 = pnand %p6824_p8, %p164_p9  ;;  %s621_s30 = scalar_lea.vmem [#allocation10], %s5487_s13 }
  0x6b   : > { %s6902_s8 = scalar_select %p5481_p11, 1, 0 }
  0x6c   : > { %s6905_s27 = scalar_select %p5498_p12, 1, 0 }
  0x6d   : > { %6903 = sst [smem:[#allocation35_spill]] %s6902_s8  ;;  %s628_s20 = sshll.u32 %s621_s30, 4  ;;  %s5503_s20 = int_to_ptr.vmem [resolvable:$true] %s628_s20 }
  0x6e   : > { %6906 = sst [smem:[#allocation36_spill]] %s6905_s27  ;;  %s5505_s10 = scalar_lea.sflag [#allocation11], %s617_s26 }
  0x6f   : > { %s5494_s17 = scalar_lea.hbm %s6904_s4, %s6819_s1  ;;  %p6842_p0 = pneg %p5498_p12 }
  0x70   : > { %s4891_s3 = scalar_lea.hbm %s5494_s17, 2048  ;;  %s4896_s1 = scalar_lea.hbm %s6904_s4, 4096 }
  0x71   : > { %p4892_p13 = scmp.ne.s32.totalorder %s5494_s17, %s4891_s3  ;;  %p4897_p3 = scmp.lt.u32.totalorder %s5494_s17, %s6904_s4 }
  0x72   : > { %p4898_p6 = scmp.lt.u32.totalorder %s4896_s1, %s4891_s3  ;;  %p4900_p10 = scmp.lt.u32.totalorder %s4891_s3, %s5494_s17 }
  0x73   : > { %p4894_p2 = pnand %p6842_p0, %p4892_p13 }
  0x74   : > { %p4899_p9 = por %p4898_p6, %p4897_p3 }
  0x75   : > { %p4895_p4 = pneg %p4894_p2 }
  0x76   : > { %p4901_p8 = por %p4900_p10, %p4899_p9 }
  0x78   : > { %p4902_p1 = pnand %p4901_p8, %p4895_p4 }
  0x7a   : > { %4905 = shalt.err (!%p4902_p1)
}
  0x7b   : > { %s4906_s26 = scalar_lea.vmem %s5503_s20, 2048  ;;  %s5223_s21 = smov [#allocation10]  }
  0x7c   : > { %p4907_p13 = scmp.ne.s32.totalorder %s5503_s20, %s4906_s26  ;;  %s4911_s30 = sshll.u32 %s5223_s21, 4  ;;  %s4912_s30 = int_to_ptr.vmem [resolvable:$false] %s4911_s30 }
  0x7d   : > { %s4913_s5 = scalar_lea.vmem %s4912_s30, 4096  ;;  %p4914_p5 = scmp.lt.s32.totalorder %s5503_s20, %s4912_s30 }
  0x7e   : > { %p4909_p2 = pnand %p4907_p13, %p6842_p0  ;;  %p4915_p3 = scmp.lt.s32.totalorder %s4913_s5, %s4906_s26 }
  0x80   : > { %p4910_p11 = pneg %p4909_p2  ;;  %p4916_p6 = por %p4915_p3, %p4914_p5 }
  0x82   : > { %p4917_p9 = pnand %p4916_p6, %p4910_p11 }
  0x84   : > { %4920 = shalt.err (!%p4917_p9)
}
  0x85   : > { %s6907_s7 = smov 8   ;;  %s6908_s1 = smov 128  }
  0x86   : > { %4624 = dma.hbm_to_vmem [thread:$0]  (!%p5498_p12), %s5494_s17, 2048, %s5503_s20, %s5505_s10, %s6908_s1, %s6908_s1, %s6907_s7  }
  0x87   : > { %s6909_s11 = sshll.u32 %s5213_s23, 11  ;;  %s6910_s6 = sld [smem:[#allocation46_spill]] }
  0x88   : > { %s648_s5 = scalar_lea.vmem [#allocation12], %s5487_s13  ;;  %s5224_s9 = smov [#allocation9]  }
  0x89   : > { %s5545_s4 = sshll.u32 %s648_s5, 4  ;;  %s523_s12 = sshll.u32 %s5224_s9, 4  ;;  %s524_s12 = int_to_ptr.vmem [resolvable:$true] %s523_s12  ;;  %s5672_s4 = int_to_ptr.vmem [resolvable:$true] %s5545_s4 }
  0x8a   : > { %s5225_s8 = smov [#allocation15]   ;;  %s6911_s24 = sld [smem:[#allocation42_spill]] }
  0x8b   : > { %s561_s28 = sshll.u32 %s5225_s8, 4  ;;  %s562_s28 = int_to_ptr.vmem [resolvable:$true] %s561_s28 }
  0x8d   : > { %s5542_s30 = scalar_lea.hbm %s6910_s6, %s6909_s11 }
  0x90   : > { %s6912_s16 = smov %s6911_s24  ;;  %s4921_s0 = scalar_lea.hbm %s6911_s24, 2048 }
  0x91   : > { %p4922_p5 = scmp.ne.s32.totalorder %s6912_s16, %s4921_s0  ;;  %p4928_p11 = scmp.lt.u32.totalorder %s4921_s0, %s6912_s16 }
  0x93   : > { %p4924_p1 = pnand %p4922_p5, %p5424_p7 }
  0x95   : > { %p4925_p8 = pneg %p4924_p1 }
  0x97   : > { %p4930_p4 = pnand %p4928_p11, %p4925_p8 }
  0x99   : > { %4933 = shalt.err (!%p4930_p4)
}
  0x9a   : > { %s4934_s9 = scalar_lea.vmem %s524_s12, 2048  ;;  %p4942_p3 = scmp.lt.s32.totalorder %s524_s12, %s524_s12 }
  0x9b   : > { %p4935_p10 = scmp.ne.s32.totalorder %s524_s12, %s4934_s9  ;;  %p4943_p6 = scmp.lt.s32.totalorder %s4934_s9, %s4934_s9 }
  0x9d   : > { %p4937_p13 = pnand %p4935_p10, %p5424_p7  ;;  %p4944_p9 = por %p4943_p6, %p4942_p3 }
  0x9f   : > { %p4938_p2 = pneg %p4937_p13 }
  0xa1   : > { %p4945_p0 = pnand %p4944_p9, %p4938_p2 }
  0xa3   : > { %4948 = shalt.err (!%p4945_p0)
}
  0xa4   : > { %p6913_p5 = scmp.ne.s32.totalorder %s6897_s15, 0  ;;  %s6914_s14 = sld [smem:[#allocation54_spill]] }
  0xa6   : > { %4608 = dma.hbm_to_vmem [thread:$0]  (!%p6913_p5), %s6912_s16, 2048, %s524_s12, [#allocation8], %s6908_s1, %s6908_s1, %s6907_s7  }
  0xaa   : > { %s4949_s27 = scalar_lea.hbm %s6914_s14, 2048 }
  0xab   : > { %p4950_p1 = scmp.ne.s32.totalorder %s6914_s14, %s4949_s27  ;;  %p4956_p11 = scmp.lt.u32.totalorder %s4949_s27, %s6914_s14 }
  0xad   : > { %p4952_p0 = pnand %p4950_p1, %p5424_p7 }
  0xaf   : > { %p4953_p8 = pneg %p4952_p0 }
  0xb1   : > { %p4958_p4 = pnand %p4956_p11, %p4953_p8 }
  0xb3   : > { %4961 = shalt.err (!%p4958_p4)
}
  0xb4   : > { %s4962_s20 = scalar_lea.vmem %s562_s28, 2048  ;;  %p4970_p3 = scmp.lt.s32.totalorder %s562_s28, %s562_s28 }
  0xb5   : > { %p4963_p10 = scmp.ne.s32.totalorder %s562_s28, %s4962_s20  ;;  %p4971_p6 = scmp.lt.s32.totalorder %s4962_s20, %s4962_s20 }
  0xb7   : > { %p4965_p13 = pnand %p4963_p10, %p5424_p7  ;;  %p4972_p9 = por %p4971_p6, %p4970_p3 }
  0xb9   : > { %p4966_p2 = pneg %p4965_p13 }
  0xbb   : > { %p4973_p12 = pnand %p4972_p9, %p4966_p2 }
  0xbd   : > { %4976 = shalt.err (!%p4973_p12)
}
  0xbe   : > { %4614 = dma.hbm_to_vmem [thread:$0]  (!%p6913_p5), %s6914_s14, 2048, %s562_s28, [#allocation14], %s6908_s1, %s6908_s1, %s6907_s7  }
  0xbf   : > { %s5226_s13 = smov [#allocation16]   ;;  %s6915_s25 = sld [smem:[#allocation56_spill]] }
  0xc0   : > { %s577_s9 = sshll.u32 %s5226_s13, 4  ;;  %s578_s9 = int_to_ptr.vmem [resolvable:$true] %s577_s9 }
  0xc5   : > { %s4977_s8 = scalar_lea.hbm %s6915_s25, 2048 }
  0xc6   : > { %p4978_p12 = scmp.ne.s32.totalorder %s6915_s25, %s4977_s8  ;;  %p4984_p8 = scmp.lt.u32.totalorder %s4977_s8, %s6915_s25 }
  0xc8   : > { %p4980_p1 = pnand %p4978_p12, %p5424_p7 }
  0xca   : > { %p4981_p0 = pneg %p4980_p1 }
  0xcc   : > { %p4986_p11 = pnand %p4984_p8, %p4981_p0 }
  0xce   : > { %4989 = shalt.err (!%p4986_p11)
}
  0xcf   : > { %s4990_s28 = scalar_lea.vmem %s578_s9, 2048  ;;  %p4998_p2 = scmp.lt.s32.totalorder %s578_s9, %s578_s9 }
  0xd0   : > { %p4991_p4 = scmp.ne.s32.totalorder %s578_s9, %s4990_s28  ;;  %p4999_p3 = scmp.lt.s32.totalorder %s4990_s28, %s4990_s28 }
  0xd2   : > { %p4993_p10 = pnand %p4991_p4, %p5424_p7  ;;  %p5000_p6 = por %p4999_p3, %p4998_p2 }
  0xd4   : > { %p4994_p13 = pneg %p4993_p10 }
  0xd6   : > { %p5001_p9 = pnand %p5000_p6, %p4994_p13 }
  0xd8   : > { %5004 = shalt.err (!%p5001_p9)
}
  0xd9   : > { %s6916_s12 = sld [smem:[#allocation27_spill]]  ;;  %s6917_s18 = sld [smem:[#allocation26_spill]] }
  0xda   : > { %s6918_s11 = sld [smem:[#allocation32_spill]]  ;;  %s50_s15 = sadd.s32 1, %s5205_s22 }
  0xdb   : > { %s6919_s13 = sld [smem:[#allocation33_spill]]  ;;  %s53_s24 = sadd.s32 1, %s5209_s2 }
  0xdc   : > { %4617 = dma.hbm_to_vmem [thread:$0]  (!%p6913_p5), %s6915_s25, 2048, %s578_s9, [#allocation17], %s6908_s1, %s6908_s1, %s6907_s7  }
  0xdd   : > { %p51_p7 = scmp.ge.s32.totalorder %s50_s15, 2  ;;  %s66_s0 = sadd.s32 1, %s5189_s19 }
  0xde   : > { %s594_s21 = sand.u32 1, %s5189_s19   ;;  %s3781_s26 = sshll.u32 %s5209_s2, 5 }
  0xdf   : > { %p73_p12 = scmp.ne.s32.totalorder %s5189_s19, %s6916_s12  ;;  %p79_p1 = scmp.ne.s32.totalorder %s6916_s12, %s6917_s18 }
  0xe0   : > { %s7007_s15 = smov (%p51_p7, %s50_s15), 0  ;;  %s7009_s24 = smov (!%p51_p7, %s53_s24), %s5209_s2 }
  0xe1   : > { %6920 = sst [smem:[#allocation37_spill]] %s7007_s15  ;;  %s62_s8 = ssub.s32 %s5205_s22, %s7007_s15 }
  0xe2   : > { %p6921_p0 = scmp.eq.s32.totalorder %s6918_s11, 0  ;;  %p55_p5 = scmp.ge.s32.totalorder %s7009_s24, 2 }
  0xe3   : > { %p6923_p11 = scmp.eq.s32.totalorder %s6919_s13, 0  ;;  %s6927_s5 = sadd.s32 1, %s5213_s23 }
  0xe4   : > { %p5624_p8 = por %p6921_p0, %p73_p12  ;;  %s7011_s24 = smov (%p55_p5, %s7009_s24), 0 }
  0xe5   : > { %p5630_p4 = por %p6923_p11, %p79_p1  ;;  %6926 = sst [smem:[#allocation38_spill]] %s7011_s24 }
  0xe6   : > { %s7013_s5 = smov (!%p55_p5, %s6927_s5), %s5213_s23  ;;  %s61_s28 = ssub.s32 %s5209_s2, %s7011_s24 }
  0xe7   : > { %s6924_s9 = scalar_select %p5630_p4, 1, 0 }
  0xe8   : > { %p59_p10 = scmp.ge.s32.totalorder %s7013_s5, 2  ;;  %s63_s17 = sor.u32 %s62_s8, %s61_s28 }
  0xe9   : > { %6925 = sst [smem:[#allocation26_spill]] %s6924_s9  ;;  %p64_p13 = scmp.eq.s32.totalorder %s63_s17, 0 }
  0xea   : > { %s3736_s20 = sshll.u32 %s594_s21, 6  ;;  %s7015_s5 = smov (%p59_p10, %s7013_s5), 0 }
  0xeb   : > { %6928 = sst [smem:[#allocation39_spill]] %s7015_s5  ;;  %s152_s18 = ssub.s32 %s5213_s23, %s7015_s5 }
  0xec   : > { %s5646_s12 = scalar_select %p64_p13, %s5189_s19, %s66_s0  }
  0xed   : > { %p153_p2 = scmp.eq.s32.totalorder %s152_s18, 0  ;;  %s604_s13 = sadd.s32 %s5205_s22, %s3781_s26 }
  0xee   : > { %s3739_s3 = sshll.u32 %s604_s13, 6  ;;  %s598_s14 = scalar_lea.vmem [#allocation4], %s3736_s20 }
  0xef   : > { %s607_s16 = sshll.u32 %s598_s14, 4  ;;  %s6929_s25 = sadd.s32 1, %s5177_s29  ;;  %s5661_s16 = int_to_ptr.vmem [resolvable:$true] %s607_s16 }
  0xf0   : > { %s5654_s24 = scalar_select %p153_p2, %s5177_s29, %s6929_s25  }
  0xf1   : > { %s6930_s9 = sld [smem:[#allocation40_spill]]  ;;  %p6931_p3 = scmp.lt.s32.totalorder %s6918_s11, 8 }
  0xf2   : > { %s5674_s14 = scalar_lea.sflag [#allocation5], %s594_s21 }
  0xf3   : > { %p5667_p6 = pnand %p6931_p3, %p5624_p8 }
  0xf5   : > { %p5007_p7 = pneg %p5667_p6 }
  0xf7   : > { %s5659_s8 = scalar_lea.hbm %s6930_s9, %s3739_s3  ;;  %s5010_s11 = scalar_lea.hbm %s6930_s9, 4096 }
  0xf8   : > { %s5005_s2 = scalar_lea.hbm %s5659_s8, 1024  ;;  %p5011_p0 = scmp.lt.u32.totalorder %s5659_s8, %s6930_s9 }
  0xf9   : > { %p5006_p9 = scmp.ne.s32.totalorder %s5659_s8, %s5005_s2  ;;  %p5012_p8 = scmp.lt.u32.totalorder %s5010_s11, %s5005_s2 }
  0xfa   : > { %p5014_p11 = scmp.lt.u32.totalorder %s5005_s2, %s5659_s8 }
  0xfb   : > { %p5008_p12 = pnand %p5007_p7, %p5006_p9  ;;  %p5013_p5 = por %p5012_p8, %p5011_p0 }
  0xfd   : > { %p5009_p1 = pneg %p5008_p12  ;;  %p5015_p10 = por %p5014_p11, %p5013_p5 }
  0xff   : > { %p5016_p13 = pnand %p5015_p10, %p5009_p1 }
 0x101   : > { %5019 = shalt.err (!%p5016_p13)
}
 0x102   : > { %s5020_s21 = scalar_lea.vmem %s5661_s16, 1024  ;;  %s5227_s26 = smov [#allocation4]  }
 0x103   : > { %p5021_p2 = scmp.ne.s32.totalorder %s5661_s16, %s5020_s21  ;;  %s5025_s28 = sshll.u32 %s5227_s26, 4  ;;  %s5026_s28 = int_to_ptr.vmem [resolvable:$false] %s5025_s28 }
 0x104   : > { %s5027_s17 = scalar_lea.vmem %s5026_s28, 2048  ;;  %p5028_p12 = scmp.lt.s32.totalorder %s5661_s16, %s5026_s28 }
 0x105   : > { %p5023_p3 = pnand %p5021_p2, %p5007_p7  ;;  %p5029_p0 = scmp.lt.s32.totalorder %s5027_s17, %s5020_s21 }
 0x107   : > { %p5024_p9 = pneg %p5023_p3  ;;  %p5030_p8 = por %p5029_p0, %p5028_p12 }
 0x109   : > { %p5031_p5 = pnand %p5030_p8, %p5024_p9 }
 0x10b   : > { %5034 = shalt.err (!%p5031_p5)
}
 0x10c   : > { %s5228_s20 = smov 64   ;;  %s6933_s18 = sld [smem:[#allocation36_spill]] }
 0x10d   : > { %s5229_s13 = smov 4   ;;  %s5035_s2 = scalar_lea.hbm %s5542_s30, 2048 }
 0x10e   : > { %4621 = dma.hbm_to_vmem [thread:$0]  (!%p5667_p6), %s5659_s8, 1024, %s5661_s16, %s5674_s14, %s6908_s1, %s5228_s20, %s5229_s13  }
 0x10f   : > { %p5036_p7 = scmp.ne.s32.totalorder %s5542_s30, %s5035_s2  ;;  %s5040_s11 = scalar_lea.hbm %s6910_s6, 4096 }
 0x110   : > { %p5041_p2 = scmp.lt.u32.totalorder %s5542_s30, %s6910_s6  ;;  %p5042_p3 = scmp.lt.u32.totalorder %s5040_s11, %s5035_s2 }
 0x111   : > { %p5044_p12 = scmp.lt.u32.totalorder %s5035_s2, %s5542_s30 }
 0x112   : > { %p6934_p1 = scmp.ne.s32.totalorder %s6933_s18, 0  ;;  %p5043_p9 = por %p5042_p3, %p5041_p2 }
 0x114   : > { %p6935_p11 = pneg %p6934_p1  ;;  %p5045_p0 = por %p5044_p12, %p5043_p9 }
 0x116   : > { %p5038_p10 = pnand %p5036_p7, %p6935_p11 }
 0x118   : > { %p5039_p13 = pneg %p5038_p10 }
 0x11a   : > { %p5046_p8 = pnand %p5045_p0, %p5039_p13 }
 0x11c   : > { %5049 = shalt.err (!%p5046_p8)
}
 0x11d   : > { %s5050_s16 = scalar_lea.vmem %s5672_s4, 2048  ;;  %p6936_p5 = pmov %p6935_p11 }
 0x11e   : > { %p5051_p6 = scmp.ne.s32.totalorder %s5672_s4, %s5050_s16  ;;  %s5230_s8 = smov [#allocation12]  }
 0x11f   : > { %s5055_s0 = sshll.u32 %s5230_s8, 4  ;;  %s5056_s0 = int_to_ptr.vmem [resolvable:$false] %s5055_s0 }
 0x120   : > { %p5053_p7 = pnand %p5051_p6, %p6936_p5  ;;  %s5057_s14 = scalar_lea.vmem %s5056_s0, 4096 }
 0x121   : > { %p5058_p10 = scmp.lt.s32.totalorder %s5672_s4, %s5056_s0  ;;  %p5059_p2 = scmp.lt.s32.totalorder %s5057_s14, %s5050_s16 }
 0x122   : > { %p5054_p11 = pneg %p5053_p7 }
 0x123   : > { %p5060_p3 = por %p5059_p2, %p5058_p10 }
 0x125   : > { %p5061_p9 = pnand %p5060_p3, %p5054_p11 }
 0x127   : > { %5064 = shalt.err (!%p5061_p9)
}
 0x128   : > { %4627 = dma.hbm_to_vmem [thread:$0]  (!%p6934_p1), %s5542_s30, 2048, %s5672_s4, %s5505_s10, %s6908_s1, %s6908_s1, %s6907_s7  }
 0x129   : > { %s6937_s21 = sld [smem:[#allocation34_spill]] }
 0x12f   : > { %p6938_p13 = scmp.ne.s32.totalorder %s6937_s21, 0 }
 0x130   : > { %s6939_s26 = sld [smem:[#allocation27_spill]] (!%p6938_p13) }
 0x131   : > { %685 = sbr.rel (%p6938_p13) target bundleno = 2758 (0xac6), region = 92 }
 0x136   : > { %s687_s17 = sand.u32 (!%p6938_p13), 1, %s6939_s26  }
 0x137   : > { %s3747_s20 = sshll.u32 (!%p6938_p13), %s687_s17, 6  ;;  %s688_s13 = scalar_lea.sflag (!%p6938_p13), [#allocation5], %s687_s17 }
 0x138   : > { %s5733_s2 = scalar_lea.vmem [#allocation4], %s3747_s20 }
 0x139   : > { %5144 = dma.done.wait (%p5630_p4), %s688_s13, 1024  }
 0x13a   : > { %5146 = vsyncadd (%p5630_p4), %s688_s13, 4294966272  ;;  %s6941_s18 = sld [smem:[#allocation33_spill]] }
 0x140   : > { %p6942_p12 = scmp.eq.s32.totalorder %s6941_s18, 0 }
 0x142   : > { %5148 = dma.done.wait (%p6942_p12), [#allocation8], 6144   ;;  %p6943_p1 = pmov %p6942_p12 }
 0x143   : > { %s6944_s4 = sld [smem:[#allocation25_spill]]  ;;  %s6945_s10 = sld [smem:[#allocation35_spill]] }
 0x144   : > { %5150 = vsyncadd (%p6943_p1), [#allocation8], 4294961152  ;;  %s704_s7 = sand.u32 1, %s6941_s18  }
 0x145   : > { %s705_s3 = scalar_lea.sflag [#allocation11], %s704_s7 }
 0x149   : > { %s706_s1 = sand.u32 1, %s6944_s4   ;;  %p6946_p0 = scmp.ne.s32.totalorder %s6945_s10, 0 }
 0x14a   : > { %s3750_s30 = sshll.u32 %s706_s1, 7 }
 0x14b   : > { %s5745_s25 = scalar_lea.vmem [#allocation10], %s3750_s30 }
 0x14c   : > { %5152 = dma.done.wait (%p6946_p0), %s705_s3, 4096  }
 0x14d   : > { %5154 = vsyncadd (%p6946_p0), %s705_s3, 4294963200  ;;  %s5751_s11 = scalar_lea.vmem [#allocation12], %s3750_s30  ;;  %p6947_p4 = pmov %p6943_p1 }
 0x14e   : > { %p6948_p8 = pmov %p6943_p1 }
 0x14f   : > { %5156 = dma.done.wait (%p6947_p4), [#allocation14], 4096  }
 0x150   : > { %5158 = vsyncadd (%p6948_p8), [#allocation14], 4294963200  ;;  %p6949_p6 = pmov %p6943_p1 }
 0x151   : > { %p6950_p5 = pmov %p6943_p1 }
 0x152   : > { %5160 = dma.done.wait (%p6949_p6), [#allocation17], 2048  }
 0x153   : > { %5162 = vsyncadd (%p6950_p5), [#allocation17], 4294965248  ;;  %s6951_s15 = sld [smem:[#allocation30_spill]]  ;;  %s6952_s27 = sld [smem:[#allocation29_spill]] }
 0x154   : > { %s6953_s16 = sld [smem:[#allocation28_spill]]  ;;  %s6955_s26 = sld [smem:[#allocation45_spill]] }
 0x155   : > { %s6956_s13 = sld [smem:[#allocation47_spill]]  ;;  %s6957_s7 = sld [smem:[#allocation48_spill]] }
 0x156   : > { %s6958_s6 = sld [smem:[#allocation49_spill]] }
 0x159   : > { %p800_p7 = scmp.lt.s32.totalorder %s6951_s15, 1  ;;  %p813_p11 = scmp.eq.s32.totalorder %s6951_s15, 0 }
 0x15a   : > { %p814_p10 = scmp.eq.s32.totalorder %s6952_s27, 0  ;;  %p817_p2 = scmp.eq.s32.totalorder %s6953_s16, 0 }
 0x15b   : > { %s5766_s8 = scalar_select %p800_p7, %s6951_s15, 1 }
 0x15c   : > { %p815_p3 = pnand %p814_p10, %p813_p11  ;;  %p5768_p9 = pnand %p817_p2, %p814_p10 }
 0x15d   : > { %s802_s28 = scalar_lea.vmem %s6955_s26, %s5766_s8  ;;  %s805_s18 = scalar_lea.vmem %s6956_s13, %s5766_s8 }
 0x15e   : > { %s808_s1 = scalar_lea.vmem %s6957_s7, %s5766_s8  ;;  %s811_s9 = scalar_lea.vmem %s6958_s6, %s5766_s8 }
 0x15f   : > { %p816_p13 = pneg %p815_p3  ;;  %p822_p12 = scmp.eq.s32.totalorder %s6952_s27, 1 }
 0x160   : > { %p823_p1 = scmp.eq.s32.totalorder %s6953_s16, 1  ;;  %p826_p8 = scmp.eq.s32.totalorder %s6951_s15, 1 }
 0x161   : > { %p818_p0 = pnand %p817_p2, %p816_p13 }
 0x162   : > { %p5790_p4 = pnand %p823_p1, %p822_p12  ;;  %v863_v0 = vld [vmem:[#allocation9] sm:$0xff] (!%p818_p0)  ;;  %v864_v1 = vld [vmem:[#allocation9 + $0x8] sm:$0xff] (!%p818_p0)  ;;  %v865_v2 = vld [vmem:[#allocation9 + $0x10] sm:$0xff] (!%p818_p0)  ;;  %s6961_s27 = sld [smem:[#allocation43_spill]] (!%p818_p0) }
 0x163   : > { %830 = sbr.rel (%p818_p0) target bundleno = 635 (0x27b), region = 128  ;;  %v4372_v3 = vpack.c.bf16 (!%p818_p0), %v864_v1, %v863_v0  ;;  %v866_v4 = vld [vmem:[#allocation9 + $0x18] sm:$0xff] (!%p818_p0)  ;;  %v867_v6 = vld [vmem:[#allocation9 + $0x20] sm:$0xff] (!%p818_p0)  ;;  %v868_v7 = vld [vmem:[#allocation9 + $0x28] sm:$0xff] (!%p818_p0) }
 0x164   : > { %p825_p6 = pneg %p5790_p4  ;;  %v4376_v5 = vpack.c.bf16 (!%p818_p0), %v866_v4, %v865_v2  ;;  %v4380_v8 = vpack.c.bf16 (!%p818_p0), %v868_v7, %v867_v6  ;;  %v831_v9 = vld [vmem:[#allocation7] sm:$0xff] (!%p818_p0)  ;;  %v869_v11 = vld [vmem:[#allocation9 + $0x30] sm:$0xff] (!%p818_p0)  ;;  %v870_v12 = vld [vmem:[#allocation9 + $0x38] sm:$0xff] (!%p818_p0) }
 0x165   : > { %4373 = vmatprep.subr.bf16.mxu0 (!%p818_p0), %v4372_v3  ;;  %4540 = vmatprep.subr.bf16.mxu1 (!%p818_p0), %v4372_v3  ;;  %v847_v10 = vld [vmem:[#allocation7 + $0x80] sm:$0xff] (!%p818_p0)  ;;  %v4384_v13 = vpack.c.bf16 (!%p818_p0), %v870_v12, %v869_v11  ;;  %v872_v15 = vld [vmem:[#allocation9 + $0x48] sm:$0xff] (!%p818_p0)  ;;  %v873_v17 = vld [vmem:[#allocation9 + $0x50] sm:$0xff] (!%p818_p0) }
 0x166   : > { %p5797_p5 = pnand %p826_p8, %p825_p6  ;;  %4375 = vmatpush3.bf16.msra.mxu0 (!%p818_p0), %v4372_v3  ;;  %4548 = vmatpush3.bf16.msra.mxu1 (!%p818_p0), %v4372_v3  ;;  %v871_v14 = vld [vmem:[#allocation9 + $0x40] sm:$0xff] (!%p818_p0)  ;;  %v874_v18 = vld [vmem:[#allocation9 + $0x58] sm:$0xff] (!%p818_p0)  ;;  %v876_v21 = vld [vmem:[#allocation9 + $0x68] sm:$0xff] (!%p818_p0) }
 0x167   : > { %4377 = vmatprep.subr.bf16.mxu0 (!%p818_p0), %v4376_v5  ;;  %4541 = vmatprep.subr.bf16.mxu1 (!%p818_p0), %v4376_v5  ;;  %v4388_v16 = vpack.c.bf16 (!%p818_p0), %v872_v15, %v871_v14  ;;  %v4392_v19 = vpack.c.bf16 (!%p818_p0), %v874_v18, %v873_v17  ;;  %v875_v20 = vld [vmem:[#allocation9 + $0x60] sm:$0xff] (!%p818_p0)  ;;  %v877_v23 = vld [vmem:[#allocation9 + $0x70] sm:$0xff] (!%p818_p0)  ;;  %v878_v24 = vld [vmem:[#allocation9 + $0x78] sm:$0xff] (!%p818_p0) }
 0x168   : > { %4027 = vmatprep.mubr.f32.mxu0 (!%p818_p0), %v831_v9  ;;  %4051 = vmatprep.mubr.f32.mxu1 (!%p818_p0), %v847_v10  ;;  %v4396_v22 = vpack.c.bf16 (!%p818_p0), %v876_v21, %v875_v20  ;;  %v4400_v25 = vpack.c.bf16 (!%p818_p0), %v878_v24, %v877_v23  ;;  %v832_v26 = vld [vmem:[#allocation7 + $0x8] sm:$0xff] (!%p818_p0)  ;;  %v833_v28 = vld [vmem:[#allocation7 + $0x10] sm:$0xff] (!%p818_p0)  ;;  %v834_v30 = vld [vmem:[#allocation7 + $0x18] sm:$0xff] (!%p818_p0) }
 0x169   : > { %v848_v27 = vld [vmem:[#allocation7 + $0x88] sm:$0xff] (!%p818_p0)  ;;  %v849_v29 = vld [vmem:[#allocation7 + $0x90] sm:$0xff] (!%p818_p0)  ;;  %v850_v31 = vld [vmem:[#allocation7 + $0x98] sm:$0xff] (!%p818_p0) }
 0x16a   : > { %4379 = vmatpush3.bf16.msra.mxu0 %v4376_v5  ;;  %4549 = vmatpush3.bf16.msra.mxu1 %v4376_v5  ;;  %v835_v32 = vld [vmem:[#allocation7 + $0x20] sm:$0xff]  ;;  %v836_v34 = vld [vmem:[#allocation7 + $0x28] sm:$0xff]  ;;  %v837_v36 = vld [vmem:[#allocation7 + $0x30] sm:$0xff] }
 0x16b   : > { %4381 = vmatprep.subr.bf16.mxu0 %v4380_v8  ;;  %4542 = vmatprep.subr.bf16.mxu1 %v4380_v8  ;;  %v851_v33 = vld [vmem:[#allocation7 + $0xa0] sm:$0xff]  ;;  %v852_v35 = vld [vmem:[#allocation7 + $0xa8] sm:$0xff]  ;;  %v853_v37 = vld [vmem:[#allocation7 + $0xb0] sm:$0xff] }
 0x16c   : > { %v838_v38 = vld [vmem:[#allocation7 + $0x38] sm:$0xff]  ;;  %v839_v40 = vld [vmem:[#allocation7 + $0x40] sm:$0xff]  ;;  %v840_v42 = vld [vmem:[#allocation7 + $0x48] sm:$0xff] }
 0x16d   : > { %v854_v39 = vld [vmem:[#allocation7 + $0xb8] sm:$0xff]  ;;  %v855_v41 = vld [vmem:[#allocation7 + $0xc0] sm:$0xff]  ;;  %v856_v43 = vld [vmem:[#allocation7 + $0xc8] sm:$0xff] }
 0x16e   : > { %4383 = vmatpush3.bf16.msra.mxu0 %v4380_v8  ;;  %4550 = vmatpush3.bf16.msra.mxu1 %v4380_v8  ;;  %v841_v44 = vld [vmem:[#allocation7 + $0x50] sm:$0xff]  ;;  %v842_v46 = vld [vmem:[#allocation7 + $0x58] sm:$0xff]  ;;  %v843_v48 = vld [vmem:[#allocation7 + $0x60] sm:$0xff] }
 0x16f   : > { %4385 = vmatprep.subr.bf16.mxu0 %v4384_v13  ;;  %4543 = vmatprep.subr.bf16.mxu1 %v4384_v13  ;;  %v857_v45 = vld [vmem:[#allocation7 + $0xd0] sm:$0xff]  ;;  %v858_v47 = vld [vmem:[#allocation7 + $0xd8] sm:$0xff]  ;;  %v859_v49 = vld [vmem:[#allocation7 + $0xe0] sm:$0xff] }
 0x170   : > { %v844_v50 = vld [vmem:[#allocation7 + $0x68] sm:$0xff]  ;;  %v845_v52 = vld [vmem:[#allocation7 + $0x70] sm:$0xff]  ;;  %v846_v54 = vld [vmem:[#allocation7 + $0x78] sm:$0xff] }
 0x171   : > { %v860_v51 = vld [vmem:[#allocation7 + $0xe8] sm:$0xff]  ;;  %v861_v53 = vld [vmem:[#allocation7 + $0xf0] sm:$0xff]  ;;  %v862_v55 = vld [vmem:[#allocation7 + $0xf8] sm:$0xff] }
 0x172   : > { %4387 = vmatpush3.bf16.msra.mxu0 %v4384_v13  ;;  %4551 = vmatpush3.bf16.msra.mxu1 %v4384_v13  ;;  %v5804_v56 = vld [vmem:[%s6961_s27] ss:$0 sm:$0xff] }
 0x173   : > { %4389 = vmatprep.subr.bf16.mxu0 %v4388_v16  ;;  %4544 = vmatprep.subr.bf16.mxu1 %v4388_v16 }
 0x176   : > { %4391 = vmatpush3.bf16.msra.mxu0 %v4388_v16  ;;  %4552 = vmatpush3.bf16.msra.mxu1 %v4388_v16 }
 0x177   : > { %4393 = vmatprep.subr.bf16.mxu0 %v4392_v19  ;;  %4545 = vmatprep.subr.bf16.mxu1 %v4392_v19 }
 0x17a   : > { %4395 = vmatpush3.bf16.msra.mxu0 %v4392_v19  ;;  %4553 = vmatpush3.bf16.msra.mxu1 %v4392_v19 }
 0x17b   : > { %4397 = vmatprep.subr.bf16.mxu0 %v4396_v22  ;;  %4546 = vmatprep.subr.bf16.mxu1 %v4396_v22 }
 0x17e   : > { %4399 = vmatpush3.bf16.msra.mxu0 %v4396_v22  ;;  %4554 = vmatpush3.bf16.msra.mxu1 %v4396_v22 }
 0x17f   : > { %4401 = vmatprep.subr.bf16.mxu0 %v4400_v25  ;;  %4547 = vmatprep.subr.bf16.mxu1 %v4400_v25 }
 0x182   : > { %4403 = vmatpush3.bf16.msra.mxu0 %v4400_v25  ;;  %4555 = vmatpush3.bf16.msra.mxu1 %v4400_v25 }
 0x185   : > { %4028 = vmatmul.mubr.f32.vlgmr.msra.gmra.mrb[0].mxu0 %v832_v26  ;;  %4052 = vmatmul.mubr.f32.vlgmr.msra.gmra.mrb[0].mxu1 %v848_v27 }
 0x186   : > { %4030 = vmatprep.mubr.f32.mxu0 %v833_v28  ;;  %4054 = vmatprep.mubr.f32.mxu1 %v849_v29 }
 0x189   : > { %4031 = vmatmul.mubr.f32.gmra.mrb[2].mxu0 %v834_v30  ;;  %4055 = vmatmul.mubr.f32.gmra.mrb[2].mxu1 %v850_v31 }
 0x18a   : > { %4033 = vmatprep.mubr.f32.mxu0 %v835_v32  ;;  %4057 = vmatprep.mubr.f32.mxu1 %v851_v33 }
 0x18d   : > { %4034 = vmatmul.mubr.f32.gmra.mrb[4].mxu0 %v836_v34  ;;  %4058 = vmatmul.mubr.f32.gmra.mrb[4].mxu1 %v852_v35 }
 0x18e   : > { %4036 = vmatprep.mubr.f32.mxu0 %v837_v36  ;;  %4060 = vmatprep.mubr.f32.mxu1 %v853_v37 }
 0x191   : > { %4037 = vmatmul.mubr.f32.gmra.mrb[6].mxu0 %v838_v38  ;;  %4061 = vmatmul.mubr.f32.gmra.mrb[6].mxu1 %v854_v39 }
 0x192   : > { %4039 = vmatprep.mubr.f32.mxu0 %v839_v40  ;;  %4063 = vmatprep.mubr.f32.mxu1 %v855_v41 }
 0x195   : > { %4040 = vmatmul.mubr.f32.gmra.mrb[8].mxu0 %v840_v42  ;;  %4064 = vmatmul.mubr.f32.gmra.mrb[8].mxu1 %v856_v43 }
 0x196   : > { %4042 = vmatprep.mubr.f32.mxu0 %v841_v44  ;;  %4066 = vmatprep.mubr.f32.mxu1 %v857_v45 }
 0x199   : > { %4043 = vmatmul.mubr.f32.gmra.mrb[10].mxu0 %v842_v46  ;;  %4067 = vmatmul.mubr.f32.gmra.mrb[10].mxu1 %v858_v47 }
 0x19a   : > { %4045 = vmatprep.mubr.f32.mxu0 %v843_v48  ;;  %4069 = vmatprep.mubr.f32.mxu1 %v859_v49 }
 0x19d   : > { %4046 = vmatmul.mubr.f32.gmra.mrb[12].mxu0 %v844_v50  ;;  %4070 = vmatmul.mubr.f32.gmra.mrb[12].mxu1 %v860_v51 }
 0x19e   : > { %4048 = vmatprep.mubr.f32.mxu0 %v845_v52  ;;  %4072 = vmatprep.mubr.f32.mxu1 %v861_v53 }
 0x1a1   : > { %4049 = vmatmul.mubr.f32.gmra.mrb[14].mxu0 %v846_v54  ;;  %4073 = vmatmul.mubr.f32.gmra.mrb[14].mxu1 %v862_v55 }
 0x258   : > { %v4029_v57 = vpop.f32.mrb[0].mxu0  ;;  %v4053_v58 = vpop.f32.mrb[0].mxu1 }
 0x259   : > { %v958_v59 = vadd.f32 %v4029_v57, %v5804_v56  ;;  %v1038_v60 = vadd.f32 %v4053_v58, %v5804_v56  ;;  %v952_v61 = vpop.f32.mrb[1].mxu0  ;;  %v1032_v62 = vpop.f32.mrb[1].mxu1 }
 0x25a   : > { %v953_v63 = vadd.f32 %v5804_v56, %v952_v61  ;;  %v1033_v0 = vadd.f32 %v5804_v56, %v1032_v62 }
 0x25b   : > { %v1112_v1 = vmax.f32 %v958_v59, 0.0  ;;  %v1128_v2 = vmax.f32 %v1038_v60, 0.0 }
 0x25c   : > { %v1111_v3 = vmax.f32 %v953_v63, 0.0  ;;  %v1127_v4 = vmax.f32 %v1033_v0, 0.0  ;;  %v4032_v5 = vpop.f32.mrb[2].mxu0  ;;  %v4056_v6 = vpop.f32.mrb[2].mxu1 }
 0x25d   : > { %1144 = vst [vmem:[#allocation2 + $0x8] sm:$0xff] %v1112_v1  ;;  %1160 = vst [vmem:[#allocation2 + $0x88] sm:$0xff] %v1128_v2  ;;  %v968_v7 = vadd.f32 %v4032_v5, %v5804_v56  ;;  %v1048_v8 = vadd.f32 %v4056_v6, %v5804_v56  ;;  %v962_v9 = vpop.f32.mrb[3].mxu0  ;;  %v1042_v10 = vpop.f32.mrb[3].mxu1 }
 0x25e   : > { %1143 = vst [vmem:[#allocation2] sm:$0xff] %v1111_v3  ;;  %1159 = vst [vmem:[#allocation2 + $0x80] sm:$0xff] %v1127_v4  ;;  %v963_v11 = vadd.f32 %v5804_v56, %v962_v9  ;;  %v1043_v12 = vadd.f32 %v5804_v56, %v1042_v10 }
 0x25f   : > { %v1114_v13 = vmax.f32 %v968_v7, 0.0  ;;  %v1130_v14 = vmax.f32 %v1048_v8, 0.0 }
 0x260   : > { %v1113_v15 = vmax.f32 %v963_v11, 0.0  ;;  %v1129_v16 = vmax.f32 %v1043_v12, 0.0  ;;  %v4035_v17 = vpop.f32.mrb[4].mxu0  ;;  %v4059_v18 = vpop.f32.mrb[4].mxu1 }
 0x261   : > { %1146 = vst [vmem:[#allocation2 + $0x18] sm:$0xff] %v1114_v13  ;;  %1162 = vst [vmem:[#allocation2 + $0x98] sm:$0xff] %v1130_v14  ;;  %v978_v19 = vadd.f32 %v4035_v17, %v5804_v56  ;;  %v1058_v20 = vadd.f32 %v4059_v18, %v5804_v56  ;;  %v972_v21 = vpop.f32.mrb[5].mxu0  ;;  %v1052_v22 = vpop.f32.mrb[5].mxu1 }
 0x262   : > { %1145 = vst [vmem:[#allocation2 + $0x10] sm:$0xff] %v1113_v15  ;;  %1161 = vst [vmem:[#allocation2 + $0x90] sm:$0xff] %v1129_v16  ;;  %v973_v23 = vadd.f32 %v5804_v56, %v972_v21  ;;  %v1053_v24 = vadd.f32 %v5804_v56, %v1052_v22 }
 0x263   : > { %v1116_v25 = vmax.f32 %v978_v19, 0.0  ;;  %v1132_v26 = vmax.f32 %v1058_v20, 0.0 }
 0x264   : > { %v1115_v27 = vmax.f32 %v973_v23, 0.0  ;;  %v1131_v28 = vmax.f32 %v1053_v24, 0.0  ;;  %v4038_v29 = vpop.f32.mrb[6].mxu0  ;;  %v4062_v30 = vpop.f32.mrb[6].mxu1 }
 0x265   : > { %1148 = vst [vmem:[#allocation2 + $0x28] sm:$0xff] %v1116_v25  ;;  %1164 = vst [vmem:[#allocation2 + $0xa8] sm:$0xff] %v1132_v26  ;;  %v988_v31 = vadd.f32 %v4038_v29, %v5804_v56  ;;  %v1068_v32 = vadd.f32 %v4062_v30, %v5804_v56  ;;  %v982_v33 = vpop.f32.mrb[7].mxu0  ;;  %v1062_v34 = vpop.f32.mrb[7].mxu1 }
 0x266   : > { %1147 = vst [vmem:[#allocation2 + $0x20] sm:$0xff] %v1115_v27  ;;  %1163 = vst [vmem:[#allocation2 + $0xa0] sm:$0xff] %v1131_v28  ;;  %v983_v35 = vadd.f32 %v5804_v56, %v982_v33  ;;  %v1063_v36 = vadd.f32 %v5804_v56, %v1062_v34 }
 0x267   : > { %v1118_v37 = vmax.f32 %v988_v31, 0.0  ;;  %v1134_v38 = vmax.f32 %v1068_v32, 0.0 }
 0x268   : > { %v1117_v39 = vmax.f32 %v983_v35, 0.0  ;;  %v1133_v40 = vmax.f32 %v1063_v36, 0.0  ;;  %v4041_v41 = vpop.f32.mrb[8].mxu0  ;;  %v4065_v42 = vpop.f32.mrb[8].mxu1 }
 0x269   : > { %1150 = vst [vmem:[#allocation2 + $0x38] sm:$0xff] %v1118_v37  ;;  %1166 = vst [vmem:[#allocation2 + $0xb8] sm:$0xff] %v1134_v38  ;;  %v998_v43 = vadd.f32 %v4041_v41, %v5804_v56  ;;  %v1078_v44 = vadd.f32 %v4065_v42, %v5804_v56  ;;  %v992_v45 = vpop.f32.mrb[9].mxu0  ;;  %v1072_v46 = vpop.f32.mrb[9].mxu1 }
 0x26a   : > { %1149 = vst [vmem:[#allocation2 + $0x30] sm:$0xff] %v1117_v39  ;;  %1165 = vst [vmem:[#allocation2 + $0xb0] sm:$0xff] %v1133_v40  ;;  %v993_v47 = vadd.f32 %v5804_v56, %v992_v45  ;;  %v1073_v48 = vadd.f32 %v5804_v56, %v1072_v46 }
 0x26b   : > { %v1120_v49 = vmax.f32 %v998_v43, 0.0  ;;  %v1136_v50 = vmax.f32 %v1078_v44, 0.0 }
 0x26c   : > { %v1119_v51 = vmax.f32 %v993_v47, 0.0  ;;  %v1135_v52 = vmax.f32 %v1073_v48, 0.0  ;;  %v4044_v53 = vpop.f32.mrb[10].mxu0  ;;  %v4068_v54 = vpop.f32.mrb[10].mxu1 }
 0x26d   : > { %1152 = vst [vmem:[#allocation2 + $0x48] sm:$0xff] %v1120_v49  ;;  %1168 = vst [vmem:[#allocation2 + $0xc8] sm:$0xff] %v1136_v50  ;;  %v1008_v55 = vadd.f32 %v4044_v53, %v5804_v56  ;;  %v1088_v57 = vadd.f32 %v4068_v54, %v5804_v56  ;;  %v1002_v58 = vpop.f32.mrb[11].mxu0  ;;  %v1082_v59 = vpop.f32.mrb[11].mxu1 }
 0x26e   : > { %1151 = vst [vmem:[#allocation2 + $0x40] sm:$0xff] %v1119_v51  ;;  %1167 = vst [vmem:[#allocation2 + $0xc0] sm:$0xff] %v1135_v52  ;;  %v1003_v60 = vadd.f32 %v5804_v56, %v1002_v58  ;;  %v1083_v61 = vadd.f32 %v5804_v56, %v1082_v59 }
 0x26f   : > { %v1122_v62 = vmax.f32 %v1008_v55, 0.0  ;;  %v1138_v63 = vmax.f32 %v1088_v57, 0.0 }
 0x270   : > { %v1121_v0 = vmax.f32 %v1003_v60, 0.0  ;;  %v1137_v1 = vmax.f32 %v1083_v61, 0.0  ;;  %v4047_v2 = vpop.f32.mrb[12].mxu0  ;;  %v4071_v3 = vpop.f32.mrb[12].mxu1 }
 0x271   : > { %1154 = vst [vmem:[#allocation2 + $0x58] sm:$0xff] %v1122_v62  ;;  %1170 = vst [vmem:[#allocation2 + $0xd8] sm:$0xff] %v1138_v63  ;;  %v1018_v4 = vadd.f32 %v4047_v2, %v5804_v56  ;;  %v1098_v5 = vadd.f32 %v4071_v3, %v5804_v56  ;;  %v1012_v6 = vpop.f32.mrb[13].mxu0  ;;  %v1092_v7 = vpop.f32.mrb[13].mxu1 }
 0x272   : > { %1153 = vst [vmem:[#allocation2 + $0x50] sm:$0xff] %v1121_v0  ;;  %1169 = vst [vmem:[#allocation2 + $0xd0] sm:$0xff] %v1137_v1  ;;  %v1013_v8 = vadd.f32 %v5804_v56, %v1012_v6  ;;  %v1093_v9 = vadd.f32 %v5804_v56, %v1092_v7 }
 0x273   : > { %v1124_v10 = vmax.f32 %v1018_v4, 0.0  ;;  %v1140_v11 = vmax.f32 %v1098_v5, 0.0 }
 0x274   : > { %v1123_v12 = vmax.f32 %v1013_v8, 0.0  ;;  %v1139_v13 = vmax.f32 %v1093_v9, 0.0  ;;  %v4050_v14 = vpop.f32.mrb[14].mxu0  ;;  %v4074_v15 = vpop.f32.mrb[14].mxu1 }
 0x275   : > { %1156 = vst [vmem:[#allocation2 + $0x68] sm:$0xff] %v1124_v10  ;;  %1172 = vst [vmem:[#allocation2 + $0xe8] sm:$0xff] %v1140_v11  ;;  %v1028_v16 = vadd.f32 %v4050_v14, %v5804_v56  ;;  %v1108_v17 = vadd.f32 %v4074_v15, %v5804_v56  ;;  %v1022_v18 = vpop.f32.mrb[15].mxu0  ;;  %v1102_v19 = vpop.f32.mrb[15].mxu1 }
 0x276   : > { %1155 = vst [vmem:[#allocation2 + $0x60] sm:$0xff] %v1123_v12  ;;  %1171 = vst [vmem:[#allocation2 + $0xe0] sm:$0xff] %v1139_v13  ;;  %v1023_v20 = vadd.f32 %v5804_v56, %v1022_v18  ;;  %v1103_v21 = vadd.f32 %v5804_v56, %v1102_v19 }
 0x277   : > { %v1126_v22 = vmax.f32 %v1028_v16, 0.0  ;;  %v1142_v23 = vmax.f32 %v1108_v17, 0.0 }
 0x278   : > { %v1125_v24 = vmax.f32 %v1023_v20, 0.0  ;;  %v1141_v25 = vmax.f32 %v1103_v21, 0.0 }
 0x279   : > { %1158 = vst [vmem:[#allocation2 + $0x78] sm:$0xff] %v1126_v22  ;;  %1174 = vst [vmem:[#allocation2 + $0xf8] sm:$0xff] %v1142_v23 }
 0x27a   : > { %1157 = vst [vmem:[#allocation2 + $0x70] sm:$0xff] %v1125_v24  ;;  %1173 = vst [vmem:[#allocation2 + $0xf0] sm:$0xff] %v1141_v25 }
 0x27b PF: > { %1176 = sbr.rel (%p5768_p9) target bundleno = 652 (0x28c), region = 132  ;;  %v5231_v26 = vmov (!%p5768_p9), 0.0  }
 0x27c   : > { %1177 = vst [vmem:[#allocation3] sm:$0xff] (!%p5768_p9), %v5231_v26  ;;  %1178 = vst [vmem:[#allocation3 + $0x8] sm:$0xff] (!%p5768_p9), %v5231_v26 }
 0x27d   : > { %1179 = vst [vmem:[#allocation3 + $0x10] sm:$0xff] (!%p5768_p9), %v5231_v26  ;;  %1180 = vst [vmem:[#allocation3 + $0x18] sm:$0xff] (!%p5768_p9), %v5231_v26 }
 0x27e   : > { %1181 = vst [vmem:[#allocation3 + $0x20] sm:$0xff] (!%p5768_p9), %v5231_v26  ;;  %1182 = vst [vmem:[#allocation3 + $0x28] sm:$0xff] (!%p5768_p9), %v5231_v26 }
 0x27f   : > { %1183 = vst [vmem:[#allocation3 + $0x30] sm:$0xff] (!%p5768_p9), %v5231_v26  ;;  %1184 = vst [vmem:[#allocation3 + $0x38] sm:$0xff] (!%p5768_p9), %v5231_v26 }
 0x280   : > { %1185 = vst [vmem:[#allocation3 + $0x40] sm:$0xff] (!%p5768_p9), %v5231_v26  ;;  %1186 = vst [vmem:[#allocation3 + $0x48] sm:$0xff] (!%p5768_p9), %v5231_v26 }
 0x281   : > { %1187 = vst [vmem:[#allocation3 + $0x50] sm:$0xff] (!%p5768_p9), %v5231_v26  ;;  %1188 = vst [vmem:[#allocation3 + $0x58] sm:$0xff] (!%p5768_p9), %v5231_v26 }
 0x282   : > { %1189 = vst [vmem:[#allocation3 + $0x60] sm:$0xff] %v5231_v26  ;;  %1190 = vst [vmem:[#allocation3 + $0x68] sm:$0xff] %v5231_v26 }
 0x283   : > { %1191 = vst [vmem:[#allocation3 + $0x70] sm:$0xff] %v5231_v26  ;;  %1192 = vst [vmem:[#allocation3 + $0x78] sm:$0xff] %v5231_v26 }
 0x284   : > { %1193 = vst [vmem:[#allocation3 + $0x80] sm:$0xff] %v5231_v26  ;;  %1194 = vst [vmem:[#allocation3 + $0x88] sm:$0xff] %v5231_v26 }
 0x285   : > { %1195 = vst [vmem:[#allocation3 + $0x90] sm:$0xff] %v5231_v26  ;;  %1196 = vst [vmem:[#allocation3 + $0x98] sm:$0xff] %v5231_v26 }
 0x286   : > { %1197 = vst [vmem:[#allocation3 + $0xa0] sm:$0xff] %v5231_v26  ;;  %1198 = vst [vmem:[#allocation3 + $0xa8] sm:$0xff] %v5231_v26 }
 0x287   : > { %1199 = vst [vmem:[#allocation3 + $0xb0] sm:$0xff] %v5231_v26  ;;  %1200 = vst [vmem:[#allocation3 + $0xb8] sm:$0xff] %v5231_v26 }
 0x288   : > { %1201 = vst [vmem:[#allocation3 + $0xc0] sm:$0xff] %v5231_v26  ;;  %1202 = vst [vmem:[#allocation3 + $0xc8] sm:$0xff] %v5231_v26 }
 0x289   : > { %1203 = vst [vmem:[#allocation3 + $0xd0] sm:$0xff] %v5231_v26  ;;  %1204 = vst [vmem:[#allocation3 + $0xd8] sm:$0xff] %v5231_v26 }
 0x28a   : > { %1205 = vst [vmem:[#allocation3 + $0xe0] sm:$0xff] %v5231_v26  ;;  %1206 = vst [vmem:[#allocation3 + $0xe8] sm:$0xff] %v5231_v26 }
 0x28b   : > { %1207 = vst [vmem:[#allocation3 + $0xf0] sm:$0xff] %v5231_v26  ;;  %1208 = vst [vmem:[#allocation3 + $0xf8] sm:$0xff] %v5231_v26 }
 0x28c PF: > { %s6962_s16 = sld [smem:[#allocation28_spill]]  ;;  %v4759_v56 = vld [vmem:[%s5733_s2] sm:$0xff]   ;;  %s6963_s26 = sld [smem:[#allocation29_spill]]  ;;  %v4761_v52 = vld [vmem:[%s5733_s2 + $0x8] sm:$0xff]   ;;  %v4763_v54 = vld [vmem:[%s5733_s2 + $0x10] sm:$0xff]  }
 0x28d   : > { %v4760_v27 = vld [vmem:[%s5733_s2 + $0x20] sm:$0xff]   ;;  %4091 = vmatprep.mubr.bf16.mxu0 %v4759_v56  ;;  %v4762_v53 = vld [vmem:[%s5733_s2 + $0x28] sm:$0xff]   ;;  %v4764_v55 = vld [vmem:[%s5733_s2 + $0x30] sm:$0xff]   ;;  %s6966_s7 = sld [smem:[#allocation50_spill]] (!%p5790_p4) }
 0x28e   : > { %4099 = vmatprep.mubr.bf16.mxu1 %v4760_v27  ;;  %v4765_v57 = vld [vmem:[%s5733_s2 + $0x18] sm:$0xff]  }
 0x28f   : > { %v4766_v58 = vld [vmem:[%s5733_s2 + $0x38] sm:$0xff]  }
 0x292   : > { %s3757_s0 = sshll.u32 %s6962_s16, 7  ;;  %s3756_s17 = sshll.u32 %s6963_s26, 7 }
 0x293   : > { %s5843_s21 = scalar_lea.vmem [#allocation2], %s3757_s0  ;;  %s5868_s20 = scalar_lea.vmem [#allocation3], %s3756_s17 }
 0x294   : > { %v1212_v28 = vld [vmem:[%s5843_s21] sm:$0xff]  ;;  %v1213_v29 = vld [vmem:[%s5843_s21 + $0x8] sm:$0xff]  ;;  %v1214_v30 = vld [vmem:[%s5843_s21 + $0x10] sm:$0xff] }
 0x295   : > { %v1228_v31 = vpack.c.bf16 %v1213_v29, %v1212_v28  ;;  %v1215_v32 = vld [vmem:[%s5843_s21 + $0x18] sm:$0xff]  ;;  %v1216_v34 = vld [vmem:[%s5843_s21 + $0x20] sm:$0xff]  ;;  %v1217_v35 = vld [vmem:[%s5843_s21 + $0x28] sm:$0xff] }
 0x296   : > { %v1229_v33 = vpack.c.bf16 %v1215_v32, %v1214_v30  ;;  %v1230_v36 = vpack.c.bf16 %v1217_v35, %v1216_v34  ;;  %v1218_v37 = vld [vmem:[%s5843_s21 + $0x30] sm:$0xff]  ;;  %v1219_v38 = vld [vmem:[%s5843_s21 + $0x38] sm:$0xff]  ;;  %v1220_v40 = vld [vmem:[%s5843_s21 + $0x40] sm:$0xff] }
 0x297   : > { %4075 = vmatprep.subr.bf16.mxu0 %v1228_v31  ;;  %4556 = vmatprep.subr.bf16.mxu1 %v1228_v31  ;;  %v1231_v39 = vpack.c.bf16 %v1219_v38, %v1218_v37  ;;  %v1221_v41 = vld [vmem:[%s5843_s21 + $0x48] sm:$0xff]  ;;  %v1222_v43 = vld [vmem:[%s5843_s21 + $0x50] sm:$0xff]  ;;  %v1223_v44 = vld [vmem:[%s5843_s21 + $0x58] sm:$0xff] }
 0x298   : > { %4076 = vmatpush3.bf16.msra.mxu0 %v1228_v31  ;;  %4564 = vmatpush3.bf16.msra.mxu1 %v1228_v31  ;;  %v1232_v42 = vpack.c.bf16 %v1221_v41, %v1220_v40  ;;  %v1233_v45 = vpack.c.bf16 %v1223_v44, %v1222_v43  ;;  %v1224_v46 = vld [vmem:[%s5843_s21 + $0x60] sm:$0xff]  ;;  %v1225_v47 = vld [vmem:[%s5843_s21 + $0x68] sm:$0xff]  ;;  %v1226_v49 = vld [vmem:[%s5843_s21 + $0x70] sm:$0xff] }
 0x299   : > { %4077 = vmatprep.subr.bf16.mxu0 %v1229_v33  ;;  %4557 = vmatprep.subr.bf16.mxu1 %v1229_v33  ;;  %v1234_v48 = vpack.c.bf16 %v1225_v47, %v1224_v46  ;;  %v1227_v50 = vld [vmem:[%s5843_s21 + $0x78] sm:$0xff]  ;;  %v1239_v59 = vld [vmem:[%s5868_s20 + $0x10] sm:$0xff]  ;;  %v1237_v61 = vld [vmem:[%s5868_s20] sm:$0xff] }
 0x29a   : > { %v1235_v51 = vpack.c.bf16 %v1227_v50, %v1226_v49  ;;  %v1247_v60 = vld [vmem:[%s5868_s20 + $0x50] sm:$0xff]  ;;  %v1245_v62 = vld [vmem:[%s5868_s20 + $0x40] sm:$0xff]  ;;  %v1240_v1 = vld [vmem:[%s5868_s20 + $0x18] sm:$0xff] }
 0x29b   : > { %v1248_v2 = vld [vmem:[%s5868_s20 + $0x58] sm:$0xff]  ;;  %v1238_v7 = vld [vmem:[%s5868_s20 + $0x8] sm:$0xff]  ;;  %v1243_v19 = vld [vmem:[%s5868_s20 + $0x30] sm:$0xff] }
 0x29c   : > { %4078 = vmatpush3.bf16.msra.mxu0 %v1229_v33  ;;  %4565 = vmatpush3.bf16.msra.mxu1 %v1229_v33  ;;  %v1246_v8 = vld [vmem:[%s5868_s20 + $0x48] sm:$0xff]  ;;  %v1251_v20 = vld [vmem:[%s5868_s20 + $0x70] sm:$0xff]  ;;  %v1241_v21 = vld [vmem:[%s5868_s20 + $0x20] sm:$0xff] }
 0x29d   : > { %4079 = vmatprep.subr.bf16.mxu0 %v1230_v36  ;;  %4558 = vmatprep.subr.bf16.mxu1 %v1230_v36  ;;  %v1249_v22 = vld [vmem:[%s5868_s20 + $0x60] sm:$0xff]  ;;  %v1244_v25 = vld [vmem:[%s5868_s20 + $0x38] sm:$0xff]  ;;  %v1242_v30 = vld [vmem:[%s5868_s20 + $0x28] sm:$0xff] }
 0x29e   : > { %v1252_v26 = vld [vmem:[%s5868_s20 + $0x78] sm:$0xff]  ;;  %v1250_v31 = vld [vmem:[%s5868_s20 + $0x68] sm:$0xff]  ;;  %v1482_v44 = vld [vmem:[%s5745_s25 + $0x10] sm:$0xff] (!%p5790_p4) }
 0x29f   : > { %v1481_v43 = vld [vmem:[%s5745_s25 + $0x8] sm:$0xff] (!%p5790_p4)  ;;  %v1483_v46 = vld [vmem:[%s5745_s25 + $0x18] sm:$0xff] (!%p5790_p4) }
 0x2a0   : > { %4080 = vmatpush3.bf16.msra.mxu0 %v1230_v36  ;;  %4566 = vmatpush3.bf16.msra.mxu1 %v1230_v36  ;;  %v4408_v47 = vpack.c.bf16 (!%p5790_p4), %v1483_v46, %v1482_v44  ;;  %v1485_v49 = vld [vmem:[%s5745_s25 + $0x28] sm:$0xff] (!%p5790_p4) }
 0x2a1   : > { %4081 = vmatprep.subr.bf16.mxu0 %v1231_v39  ;;  %4559 = vmatprep.subr.bf16.mxu1 %v1231_v39 }
 0x2a4   : > { %4082 = vmatpush3.bf16.msra.mxu0 %v1231_v39  ;;  %4567 = vmatpush3.bf16.msra.mxu1 %v1231_v39 }
 0x2a5   : > { %4083 = vmatprep.subr.bf16.mxu0 %v1232_v42  ;;  %4560 = vmatprep.subr.bf16.mxu1 %v1232_v42 }
 0x2a8   : > { %4084 = vmatpush3.bf16.msra.mxu0 %v1232_v42  ;;  %4568 = vmatpush3.bf16.msra.mxu1 %v1232_v42  ;;  %v1480_v42 = vld [vmem:[%s5745_s25] sm:$0xff] (!%p5790_p4) }
 0x2a9   : > { %4085 = vmatprep.subr.bf16.mxu0 %v1233_v45  ;;  %4561 = vmatprep.subr.bf16.mxu1 %v1233_v45 }
 0x2ac   : > { %4086 = vmatpush3.bf16.msra.mxu0 %v1233_v45  ;;  %4569 = vmatpush3.bf16.msra.mxu1 %v1233_v45  ;;  %v4404_v45 = vpack.c.bf16 (!%p5790_p4), %v1481_v43, %v1480_v42 }
 0x2ad   : > { %4087 = vmatprep.subr.bf16.mxu0 %v1234_v48  ;;  %4562 = vmatprep.subr.bf16.mxu1 %v1234_v48 }
 0x2b0   : > { %4088 = vmatpush3.bf16.msra.mxu0 %v1234_v48  ;;  %4570 = vmatpush3.bf16.msra.mxu1 %v1234_v48  ;;  %v1484_v48 = vld [vmem:[%s5745_s25 + $0x20] sm:$0xff] (!%p5790_p4) }
 0x2b1   : > { %4089 = vmatprep.subr.bf16.mxu0 %v1235_v51  ;;  %4563 = vmatprep.subr.bf16.mxu1 %v1235_v51  ;;  %v4412_v50 = vpack.c.bf16 (!%p5790_p4), %v1485_v49, %v1484_v48 }
 0x2b4   : > { %4090 = vmatpush3.bf16.msra.mxu0 %v1235_v51  ;;  %4571 = vmatpush3.bf16.msra.mxu1 %v1235_v51 }
 0x2b5   : > { %4405 = vmatprep.subr.bf16.mxu0 (!%p5790_p4), %v4404_v45 }
 0x2b7   : > { %4092 = vmatmul.mubr.bf16.vlgmr.msra.gmra.mrb[0].mxu0 %v4761_v52  ;;  %4100 = vmatmul.mubr.bf16.vlgmr.msra.gmra.mrb[0].mxu1 %v4762_v53  ;;  %v1486_v52 = vld [vmem:[%s5745_s25 + $0x30] sm:$0xff] (!%p5790_p4)  ;;  %v1487_v53 = vld [vmem:[%s5745_s25 + $0x38] sm:$0xff] (!%p5790_p4) }
 0x2b8   : > { %4095 = vmatprep.mubr.bf16.mxu0 %v4763_v54  ;;  %4103 = vmatprep.mubr.bf16.mxu1 %v4764_v55  ;;  %v4416_v54 = vpack.c.bf16 (!%p5790_p4), %v1487_v53, %v1486_v52  ;;  %v1488_v55 = vld [vmem:[%s5745_s25 + $0x40] sm:$0xff] (!%p5790_p4) }
 0x2b9   : > { %4407 = vmatpush3.bf16.msra.mxu0 (!%p5790_p4), %v4404_v45 }
 0x2ba   : > { %4409 = vmatprep.subr.bf16.mxu0 (!%p5790_p4), %v4408_v47 }
 0x2bd   : > { %4411 = vmatpush3.bf16.msra.mxu0 (!%p5790_p4), %v4408_v47 }
 0x2be   : > { %4413 = vmatprep.subr.bf16.mxu0 (!%p5790_p4), %v4412_v50 }
 0x2bf   : > { %4096 = vmatmul.mubr.bf16.gmra.mrb[4].mxu0 %v4765_v57  ;;  %4104 = vmatmul.mubr.bf16.gmra.mrb[4].mxu1 %v4766_v58  ;;  %v1489_v57 = vld [vmem:[%s5745_s25 + $0x48] sm:$0xff] (!%p5790_p4) }
 0x2c0   : > { %v4420_v58 = vpack.c.bf16 (!%p5790_p4), %v1489_v57, %v1488_v55  ;;  %v1774_v55 = vld [vmem:[%s5751_s11 + $0x70] sm:$0xff] (!%p5790_p4)  ;;  %v1775_v57 = vld [vmem:[%s5751_s11 + $0x78] sm:$0xff] (!%p5790_p4) }
 0x2c1   : > { %4415 = vmatpush3.bf16.msra.mxu0 (!%p5790_p4), %v4412_v50 }
 0x2c2   : > { %4417 = vmatprep.subr.bf16.mxu0 (!%p5790_p4), %v4416_v54 }
 0x2c5   : > { %4419 = vmatpush3.bf16.msra.mxu0 (!%p5790_p4), %v4416_v54 }
 0x2c6   : > { %4421 = vmatprep.subr.bf16.mxu0 (!%p5790_p4), %v4420_v58 }
 0x2c9   : > { %4423 = vmatpush3.bf16.msra.mxu0 (!%p5790_p4), %v4420_v58  ;;  %v4464_v58 = vpack.c.bf16 (!%p5790_p4), %v1775_v57, %v1774_v55 }
 0x38a   : > { %v4093_v63 = vpop.f32.mrb[0].mxu0  ;;  %v4101_v0 = vpop.f32.mrb[0].mxu1 }
 0x38b   : > { %v1416_v3 = vadd.f32 %v4093_v63, %v1239_v59  ;;  %v1424_v4 = vadd.f32 %v4101_v0, %v1247_v60  ;;  %v1351_v5 = vpop.f32.mrb[1].mxu0  ;;  %v1383_v6 = vpop.f32.mrb[1].mxu1  ;;  %v1490_v59 = vld [vmem:[%s5745_s25 + $0x50] sm:$0xff] (!%p5790_p4)  ;;  %v1491_v60 = vld [vmem:[%s5745_s25 + $0x58] sm:$0xff] (!%p5790_p4) }
 0x38c   : > { %v1414_v9 = vadd.f32 %v1351_v5, %v1237_v61  ;;  %v1422_v10 = vadd.f32 %v1383_v6, %v1245_v62  ;;  %v4094_v11 = vpop.f32.mrb[2].mxu0  ;;  %v4102_v12 = vpop.f32.mrb[2].mxu1  ;;  %v1760_v61 = vld [vmem:[%s5751_s11] sm:$0xff] (!%p5790_p4)  ;;  %v1761_v62 = vld [vmem:[%s5751_s11 + $0x8] sm:$0xff] (!%p5790_p4)  ;;  %v1762_v63 = vld [vmem:[%s5751_s11 + $0x10] sm:$0xff] (!%p5790_p4)  ;;  %v4424_v0 = vpack.c.bf16 (!%p5790_p4), %v1491_v60, %v1490_v59 }
 0x38d   : > { %1432 = vst [vmem:[%s5868_s20 + $0x10] sm:$0xff] %v1416_v3  ;;  %1440 = vst [vmem:[%s5868_s20 + $0x50] sm:$0xff] %v1424_v4  ;;  %v1417_v13 = vadd.f32 %v4094_v11, %v1240_v1  ;;  %v1425_v14 = vadd.f32 %v4102_v12, %v1248_v2  ;;  %v1354_v15 = vpop.f32.mrb[3].mxu0  ;;  %v1386_v16 = vpop.f32.mrb[3].mxu1  ;;  %v1492_v1 = vld [vmem:[%s5745_s25 + $0x60] sm:$0xff] (!%p5790_p4)  ;;  %v4436_v2 = vpack.c.bf16 (!%p5790_p4), %v1761_v62, %v1760_v61  ;;  %v1763_v3 = vld [vmem:[%s5751_s11 + $0x18] sm:$0xff] (!%p5790_p4) }
 0x38e   : > { %1430 = vst [vmem:[%s5868_s20] sm:$0xff] %v1414_v9  ;;  %1438 = vst [vmem:[%s5868_s20 + $0x40] sm:$0xff] %v1422_v10  ;;  %v1415_v17 = vadd.f32 %v1354_v15, %v1238_v7  ;;  %v1423_v18 = vadd.f32 %v1386_v16, %v1246_v8  ;;  %v1493_v4 = vld [vmem:[%s5745_s25 + $0x68] sm:$0xff] (!%p5790_p4)  ;;  %v4440_v5 = vpack.c.bf16 (!%p5790_p4), %v1763_v3, %v1762_v63  ;;  %v1764_v6 = vld [vmem:[%s5751_s11 + $0x20] sm:$0xff] (!%p5790_p4)  ;;  %4425 = vmatprep.subr.bf16.mxu0 (!%p5790_p4), %v4424_v0 }
 0x38f   : > { %1433 = vst [vmem:[%s5868_s20 + $0x18] sm:$0xff] %v1417_v13  ;;  %1441 = vst [vmem:[%s5868_s20 + $0x58] sm:$0xff] %v1425_v14  ;;  %v1765_v7 = vld [vmem:[%s5751_s11 + $0x28] sm:$0xff] (!%p5790_p4)  ;;  %4437 = vmatprep.subr.bf16.mxu1 (!%p5790_p4), %v4436_v2  ;;  %v4428_v8 = vpack.c.bf16 (!%p5790_p4), %v1493_v4, %v1492_v1  ;;  %v1494_v9 = vld [vmem:[%s5745_s25 + $0x70] sm:$0xff] (!%p5790_p4)  ;;  %4427 = vmatpush3.bf16.msra.mxu0 (!%p5790_p4), %v4424_v0 }
 0x390   : > { %1431 = vst [vmem:[%s5868_s20 + $0x8] sm:$0xff] %v1415_v17  ;;  %1439 = vst [vmem:[%s5868_s20 + $0x48] sm:$0xff] %v1423_v18  ;;  %4439 = vmatpush3.bf16.msra.mxu1 (!%p5790_p4), %v4436_v2  ;;  %v4444_v10 = vpack.c.bf16 (!%p5790_p4), %v1765_v7, %v1764_v6  ;;  %v1495_v11 = vld [vmem:[%s5745_s25 + $0x78] sm:$0xff] (!%p5790_p4)  ;;  %v1766_v12 = vld [vmem:[%s5751_s11 + $0x30] sm:$0xff] (!%p5790_p4) }
 0x391   : > { %4441 = vmatprep.subr.bf16.mxu1 (!%p5790_p4), %v4440_v5  ;;  %v1767_v13 = vld [vmem:[%s5751_s11 + $0x38] sm:$0xff] (!%p5790_p4)  ;;  %4429 = vmatprep.subr.bf16.mxu0 (!%p5790_p4), %v4428_v8  ;;  %v4432_v14 = vpack.c.bf16 (!%p5790_p4), %v1495_v11, %v1494_v9  ;;  %v1768_v16 = vld [vmem:[%s5751_s11 + $0x40] sm:$0xff] (!%p5790_p4)  ;;  %v1769_v17 = vld [vmem:[%s5751_s11 + $0x48] sm:$0xff] (!%p5790_p4) }
 0x392   : > { %v4097_v23 = vpop.f32.mrb[4].mxu0  ;;  %v4105_v24 = vpop.f32.mrb[4].mxu1  ;;  %1447 = sbr.rel (%p5790_p4) target bundleno = 1744 (0x6d0), region = 136  ;;  %v4448_v15 = vpack.c.bf16 (!%p5790_p4), %v1767_v13, %v1766_v12  ;;  %v4452_v18 = vpack.c.bf16 (!%p5790_p4), %v1769_v17, %v1768_v16  ;;  %v5941_v59 = vld [vmem:[%s802_s28] ss:$0 sm:$0xff] (!%p5790_p4) }
 0x393   : > { %v1420_v56 = vadd.f32 %v4097_v23, %v1243_v19  ;;  %v1428_v27 = vadd.f32 %v4105_v24, %v1251_v20  ;;  %v1367_v28 = vpop.f32.mrb[5].mxu0  ;;  %v1399_v29 = vpop.f32.mrb[5].mxu1  ;;  %4431 = vmatpush3.bf16.msra.mxu0 (!%p5790_p4), %v4428_v8  ;;  %v1770_v19 = vld [vmem:[%s5751_s11 + $0x50] sm:$0xff] (!%p5790_p4)  ;;  %v1771_v20 = vld [vmem:[%s5751_s11 + $0x58] sm:$0xff] (!%p5790_p4)  ;;  %v1772_v24 = vld [vmem:[%s5751_s11 + $0x60] sm:$0xff] (!%p5790_p4) }
 0x394   : > { %v1418_v32 = vadd.f32 %v1367_v28, %v1241_v21  ;;  %v1426_v33 = vadd.f32 %v1399_v29, %v1249_v22  ;;  %v4098_v34 = vpop.f32.mrb[6].mxu0  ;;  %v4106_v35 = vpop.f32.mrb[6].mxu1  ;;  %4443 = vmatpush3.bf16.msra.mxu1 (!%p5790_p4), %v4440_v5  ;;  %4433 = vmatprep.subr.bf16.mxu0 (!%p5790_p4), %v4432_v14  ;;  %v4456_v23 = vpack.c.bf16 (!%p5790_p4), %v1771_v20, %v1770_v19 }
 0x395   : > { %1436 = vst [vmem:[%s5868_s20 + $0x30] sm:$0xff] %v1420_v56  ;;  %1444 = vst [vmem:[%s5868_s20 + $0x70] sm:$0xff] %v1428_v27  ;;  %v1421_v36 = vadd.f32 %v4098_v34, %v1244_v25  ;;  %v1429_v37 = vadd.f32 %v4106_v35, %v1252_v26  ;;  %v1370_v38 = vpop.f32.mrb[7].mxu0  ;;  %v1402_v39 = vpop.f32.mrb[7].mxu1  ;;  %4445 = vmatprep.subr.bf16.mxu1 (!%p5790_p4), %v4444_v10  ;;  %v1773_v25 = vld [vmem:[%s5751_s11 + $0x68] sm:$0xff] (!%p5790_p4) }
 0x396   : > { %1434 = vst [vmem:[%s5868_s20 + $0x20] sm:$0xff] %v1418_v32  ;;  %1442 = vst [vmem:[%s5868_s20 + $0x60] sm:$0xff] %v1426_v33  ;;  %v1419_v40 = vadd.f32 %v1370_v38, %v1242_v30  ;;  %v1427_v41 = vadd.f32 %v1402_v39, %v1250_v31  ;;  %v4460_v27 = vpack.c.bf16 (!%p5790_p4), %v1773_v25, %v1772_v24 }
 0x397   : > { %1437 = vst [vmem:[%s5868_s20 + $0x38] sm:$0xff] %v1421_v36  ;;  %1445 = vst [vmem:[%s5868_s20 + $0x78] sm:$0xff] %v1429_v37  ;;  %4435 = vmatpush3.bf16.msra.mxu0 (!%p5790_p4), %v4432_v14 }
 0x398   : > { %1435 = vst [vmem:[%s5868_s20 + $0x28] sm:$0xff] %v1419_v40  ;;  %1443 = vst [vmem:[%s5868_s20 + $0x68] sm:$0xff] %v1427_v41  ;;  %4447 = vmatpush3.bf16.msra.mxu1 (!%p5790_p4), %v4444_v10 }
 0x399   : > { %4449 = vmatprep.subr.bf16.mxu1 %v4448_v15 }
 0x39c   : > { %4451 = vmatpush3.bf16.msra.mxu1 %v4448_v15 }
 0x39d   : > { %4453 = vmatprep.subr.bf16.mxu1 %v4452_v18 }
 0x39f   : > { %v1448_v51 = vld [vmem:[#allocation3] sm:$0xff]  ;;  %v1449_v21 = vld [vmem:[#allocation3 + $0x8] sm:$0xff]  ;;  %v1450_v22 = vld [vmem:[#allocation3 + $0x10] sm:$0xff] }
 0x3a0   : > { %4139 = vmatprep.mubr.f32.mxu0 %v1448_v51  ;;  %v1451_v26 = vld [vmem:[#allocation3 + $0x18] sm:$0xff]  ;;  %4455 = vmatpush3.bf16.msra.mxu1 %v4452_v18  ;;  %v1452_v56 = vld [vmem:[#allocation3 + $0x20] sm:$0xff]  ;;  %v1453_v28 = vld [vmem:[#allocation3 + $0x28] sm:$0xff] }
 0x3a1   : > { %4140 = vmatmul.mubr.f32.vlgmr.msra.gmra.mrb[0].mxu0 %v1449_v21  ;;  %4457 = vmatprep.subr.bf16.mxu1 %v4456_v23  ;;  %v1454_v29 = vld [vmem:[#allocation3 + $0x30] sm:$0xff]  ;;  %v1455_v30 = vld [vmem:[#allocation3 + $0x38] sm:$0xff]  ;;  %v1456_v31 = vld [vmem:[#allocation3 + $0x40] sm:$0xff] }
 0x3a2   : > { %4142 = vmatprep.mubr.f32.mxu0 %v1450_v22  ;;  %v1457_v32 = vld [vmem:[#allocation3 + $0x48] sm:$0xff]  ;;  %v1458_v33 = vld [vmem:[#allocation3 + $0x50] sm:$0xff]  ;;  %v1459_v34 = vld [vmem:[#allocation3 + $0x58] sm:$0xff] }
 0x3a3   : > { %v1460_v35 = vld [vmem:[#allocation3 + $0x60] sm:$0xff]  ;;  %v1461_v36 = vld [vmem:[#allocation3 + $0x68] sm:$0xff]  ;;  %v1462_v37 = vld [vmem:[#allocation3 + $0x70] sm:$0xff] }
 0x3a4   : > { %4459 = vmatpush3.bf16.msra.mxu1 %v4456_v23  ;;  %v1463_v38 = vld [vmem:[#allocation3 + $0x78] sm:$0xff]  ;;  %v1464_v39 = vld [vmem:[#allocation3 + $0x80] sm:$0xff]  ;;  %v1465_v40 = vld [vmem:[#allocation3 + $0x88] sm:$0xff] }
 0x3a5   : > { %4143 = vmatmul.mubr.f32.gmra.mrb[2].mxu0 %v1451_v26  ;;  %4461 = vmatprep.subr.bf16.mxu1 %v4460_v27  ;;  %v1466_v41 = vld [vmem:[#allocation3 + $0x90] sm:$0xff]  ;;  %v1467_v42 = vld [vmem:[#allocation3 + $0x98] sm:$0xff]  ;;  %v1468_v43 = vld [vmem:[#allocation3 + $0xa0] sm:$0xff] }
 0x3a6   : > { %4145 = vmatprep.mubr.f32.mxu0 %v1452_v56  ;;  %v1469_v44 = vld [vmem:[#allocation3 + $0xa8] sm:$0xff]  ;;  %v1470_v45 = vld [vmem:[#allocation3 + $0xb0] sm:$0xff]  ;;  %v1471_v46 = vld [vmem:[#allocation3 + $0xb8] sm:$0xff] }
 0x3a7   : > { %v1472_v47 = vld [vmem:[#allocation3 + $0xc0] sm:$0xff]  ;;  %v1473_v48 = vld [vmem:[#allocation3 + $0xc8] sm:$0xff]  ;;  %v1474_v49 = vld [vmem:[#allocation3 + $0xd0] sm:$0xff] }
 0x3a8   : > { %4463 = vmatpush3.bf16.msra.mxu1 %v4460_v27  ;;  %v1475_v50 = vld [vmem:[#allocation3 + $0xd8] sm:$0xff]  ;;  %v1476_v51 = vld [vmem:[#allocation3 + $0xe0] sm:$0xff]  ;;  %v1477_v52 = vld [vmem:[#allocation3 + $0xe8] sm:$0xff] }
 0x3a9   : > { %4146 = vmatmul.mubr.f32.gmra.mrb[4].mxu0 %v1453_v28  ;;  %v1478_v53 = vld [vmem:[#allocation3 + $0xf0] sm:$0xff]  ;;  %v1479_v54 = vld [vmem:[#allocation3 + $0xf8] sm:$0xff]  ;;  %4465 = vmatprep.subr.bf16.mxu1 %v4464_v58 }
 0x3aa   : > { %4148 = vmatprep.mubr.f32.mxu0 %v1454_v29 }
 0x3ac   : > { %4467 = vmatpush3.bf16.msra.mxu1 %v4464_v58 }
 0x3ad   : > { %4149 = vmatmul.mubr.f32.gmra.mrb[6].mxu0 %v1455_v30 }
 0x3ae   : > { %4151 = vmatprep.mubr.f32.mxu0 %v1456_v31 }
 0x3b1   : > { %4152 = vmatmul.mubr.f32.gmra.mrb[8].mxu0 %v1457_v32 }
 0x3b2   : > { %4154 = vmatprep.mubr.f32.mxu0 %v1458_v33 }
 0x3b5   : > { %4155 = vmatmul.mubr.f32.gmra.mrb[10].mxu0 %v1459_v34 }
 0x3b6   : > { %4157 = vmatprep.mubr.f32.mxu0 %v1460_v35 }
 0x3b9   : > { %4158 = vmatmul.mubr.f32.gmra.mrb[12].mxu0 %v1461_v36 }
 0x3ba   : > { %4160 = vmatprep.mubr.f32.mxu0 %v1462_v37 }
 0x3bd   : > { %4161 = vmatmul.mubr.f32.gmra.mrb[14].mxu0 %v1463_v38 }
 0x3be   : > { %4163 = vmatprep.mubr.f32.mxu0 %v1464_v39 }
 0x3c1   : > { %4164 = vmatmul.mubr.f32.gmra.mrb[16].mxu0 %v1465_v40 }
 0x3c2   : > { %4166 = vmatprep.mubr.f32.mxu0 %v1466_v41 }
 0x3c5   : > { %4167 = vmatmul.mubr.f32.gmra.mrb[18].mxu0 %v1467_v42 }
 0x3c6   : > { %4169 = vmatprep.mubr.f32.mxu0 %v1468_v43 }
 0x3c9   : > { %4170 = vmatmul.mubr.f32.gmra.mrb[20].mxu0 %v1469_v44 }
 0x3ca   : > { %4172 = vmatprep.mubr.f32.mxu0 %v1470_v45 }
 0x3cd   : > { %4173 = vmatmul.mubr.f32.gmra.mrb[22].mxu0 %v1471_v46 }
 0x3ce   : > { %4175 = vmatprep.mubr.f32.mxu0 %v1472_v47 }
 0x3d1   : > { %4176 = vmatmul.mubr.f32.gmra.mrb[24].mxu0 %v1473_v48 }
 0x3d2   : > { %4178 = vmatprep.mubr.f32.mxu0 %v1474_v49 }
 0x3d5   : > { %4179 = vmatmul.mubr.f32.gmra.mrb[26].mxu0 %v1475_v50 }
 0x3d6   : > { %4181 = vmatprep.mubr.f32.mxu0 %v1476_v51 }
 0x3d9   : > { %4182 = vmatmul.mubr.f32.gmra.mrb[28].mxu0 %v1477_v52 }
 0x3da   : > { %4184 = vmatprep.mubr.f32.mxu0 %v1478_v53 }
 0x3dd   : > { %4185 = vmatmul.mubr.f32.gmra.mrb[30].mxu0 %v1479_v54 }
 0x474   : > { %v4141_v60 = vpop.f32.mrb[0].mxu0 }
 0x475   : > { %v1575_v61 = vadd.f32 %v4141_v60, %v5941_v59  ;;  %v1569_v62 = vpop.f32.mrb[1].mxu0 }
 0x476   : > { %v1570_v63 = vadd.f32 %v5941_v59, %v1569_v62 }
 0x477   : > { %v1729_v2 = vmax.f32 %v1575_v61, 0.0 }
 0x478   : > { %v4144_v0 = vpop.f32.mrb[2].mxu0  ;;  %v1728_v1 = vmax.f32 %v1570_v63, 0.0 }
 0x479   : > { %v1585_v3 = vadd.f32 %v4144_v0, %v5941_v59  ;;  %v1579_v4 = vpop.f32.mrb[3].mxu0 }
 0x47a   : > { %v1580_v5 = vadd.f32 %v5941_v59, %v1579_v4  ;;  %4219 = vmatprep.mubr.f32.mxu1 %v1728_v1 }
 0x47b   : > { %4220 = vmatmul.mubr.f32.vlgmr.msra.gmra.mrb[0].mxu1 %v1729_v2  ;;  %v1731_v8 = vmax.f32 %v1585_v3, 0.0 }
 0x47c   : > { %v1730_v6 = vmax.f32 %v1580_v5, 0.0  ;;  %v4147_v7 = vpop.f32.mrb[4].mxu0 }
 0x47d   : > { %v1595_v9 = vadd.f32 %v4147_v7, %v5941_v59  ;;  %v1589_v10 = vpop.f32.mrb[5].mxu0 }
 0x47e   : > { %v1590_v11 = vadd.f32 %v5941_v59, %v1589_v10  ;;  %4222 = vmatprep.mubr.f32.mxu1 %v1730_v6 }
 0x47f   : > { %v1733_v12 = vmax.f32 %v1595_v9, 0.0  ;;  %4223 = vmatmul.mubr.f32.gmra.mrb[2].mxu1 %v1731_v8 }
 0x480   : > { %v1732_v13 = vmax.f32 %v1590_v11, 0.0  ;;  %v4150_v14 = vpop.f32.mrb[6].mxu0 }
 0x481   : > { %v1605_v15 = vadd.f32 %v4150_v14, %v5941_v59  ;;  %v1599_v16 = vpop.f32.mrb[7].mxu0 }
 0x482   : > { %v1600_v17 = vadd.f32 %v5941_v59, %v1599_v16  ;;  %4225 = vmatprep.mubr.f32.mxu1 %v1732_v13 }
 0x483   : > { %v1735_v18 = vmax.f32 %v1605_v15, 0.0  ;;  %4226 = vmatmul.mubr.f32.gmra.mrb[4].mxu1 %v1733_v12 }
 0x484   : > { %v1734_v19 = vmax.f32 %v1600_v17, 0.0  ;;  %v4153_v20 = vpop.f32.mrb[8].mxu0 }
 0x485   : > { %v1615_v21 = vadd.f32 %v4153_v20, %v5941_v59  ;;  %v1609_v22 = vpop.f32.mrb[9].mxu0 }
 0x486   : > { %v1610_v23 = vadd.f32 %v5941_v59, %v1609_v22  ;;  %4228 = vmatprep.mubr.f32.mxu1 %v1734_v19 }
 0x487   : > { %v1737_v24 = vmax.f32 %v1615_v21, 0.0  ;;  %4229 = vmatmul.mubr.f32.gmra.mrb[6].mxu1 %v1735_v18 }
 0x488   : > { %v1736_v25 = vmax.f32 %v1610_v23, 0.0  ;;  %v4156_v26 = vpop.f32.mrb[10].mxu0 }
 0x489   : > { %v1625_v56 = vadd.f32 %v4156_v26, %v5941_v59  ;;  %v1619_v27 = vpop.f32.mrb[11].mxu0 }
 0x48a   : > { %v1620_v28 = vadd.f32 %v5941_v59, %v1619_v27  ;;  %4231 = vmatprep.mubr.f32.mxu1 %v1736_v25 }
 0x48b   : > { %v1739_v29 = vmax.f32 %v1625_v56, 0.0  ;;  %4232 = vmatmul.mubr.f32.gmra.mrb[8].mxu1 %v1737_v24 }
 0x48c   : > { %v1738_v30 = vmax.f32 %v1620_v28, 0.0  ;;  %v4159_v31 = vpop.f32.mrb[12].mxu0  ;;  %v5980_v28 = vld [vmem:[%s805_s18] ss:$0 sm:$0xff] }
 0x48d   : > { %v1635_v32 = vadd.f32 %v4159_v31, %v5941_v59  ;;  %v1629_v33 = vpop.f32.mrb[13].mxu0 }
 0x48e   : > { %v1630_v34 = vadd.f32 %v5941_v59, %v1629_v33  ;;  %4234 = vmatprep.mubr.f32.mxu1 %v1738_v30 }
 0x48f   : > { %v1741_v35 = vmax.f32 %v1635_v32, 0.0  ;;  %4235 = vmatmul.mubr.f32.gmra.mrb[10].mxu1 %v1739_v29 }
 0x490   : > { %v1740_v36 = vmax.f32 %v1630_v34, 0.0  ;;  %v4162_v37 = vpop.f32.mrb[14].mxu0 }
 0x491   : > { %v1645_v38 = vadd.f32 %v4162_v37, %v5941_v59  ;;  %v1639_v39 = vpop.f32.mrb[15].mxu0 }
 0x492   : > { %v1640_v40 = vadd.f32 %v5941_v59, %v1639_v39  ;;  %4237 = vmatprep.mubr.f32.mxu1 %v1740_v36 }
 0x493   : > { %v1743_v41 = vmax.f32 %v1645_v38, 0.0  ;;  %4238 = vmatmul.mubr.f32.gmra.mrb[12].mxu1 %v1741_v35 }
 0x494   : > { %v1742_v42 = vmax.f32 %v1640_v40, 0.0  ;;  %v4165_v43 = vpop.f32.mrb[16].mxu0 }
 0x495   : > { %v1655_v44 = vadd.f32 %v4165_v43, %v5941_v59  ;;  %v1649_v45 = vpop.f32.mrb[17].mxu0 }
 0x496   : > { %v1650_v46 = vadd.f32 %v5941_v59, %v1649_v45  ;;  %4240 = vmatprep.mubr.f32.mxu1 %v1742_v42 }
 0x497   : > { %v1745_v47 = vmax.f32 %v1655_v44, 0.0  ;;  %4241 = vmatmul.mubr.f32.gmra.mrb[14].mxu1 %v1743_v41 }
 0x498   : > { %v1744_v48 = vmax.f32 %v1650_v46, 0.0  ;;  %v4168_v49 = vpop.f32.mrb[18].mxu0 }
 0x499   : > { %v1665_v50 = vadd.f32 %v4168_v49, %v5941_v59  ;;  %v1659_v51 = vpop.f32.mrb[19].mxu0 }
 0x49a   : > { %v1660_v52 = vadd.f32 %v5941_v59, %v1659_v51  ;;  %4243 = vmatprep.mubr.f32.mxu1 %v1744_v48 }
 0x49b   : > { %v1747_v53 = vmax.f32 %v1665_v50, 0.0  ;;  %4244 = vmatmul.mubr.f32.gmra.mrb[16].mxu1 %v1745_v47 }
 0x49c   : > { %v1746_v54 = vmax.f32 %v1660_v52, 0.0  ;;  %v4171_v55 = vpop.f32.mrb[20].mxu0 }
 0x49d   : > { %v1675_v57 = vadd.f32 %v4171_v55, %v5941_v59  ;;  %v1669_v58 = vpop.f32.mrb[21].mxu0 }
 0x49e   : > { %v1670_v60 = vadd.f32 %v5941_v59, %v1669_v58  ;;  %4246 = vmatprep.mubr.f32.mxu1 %v1746_v54 }
 0x49f   : > { %v1749_v61 = vmax.f32 %v1675_v57, 0.0  ;;  %4247 = vmatmul.mubr.f32.gmra.mrb[18].mxu1 %v1747_v53 }
 0x4a0   : > { %v1748_v62 = vmax.f32 %v1670_v60, 0.0  ;;  %v4174_v63 = vpop.f32.mrb[22].mxu0 }
 0x4a1   : > { %v1685_v0 = vadd.f32 %v4174_v63, %v5941_v59  ;;  %v1679_v1 = vpop.f32.mrb[23].mxu0 }
 0x4a2   : > { %v1680_v2 = vadd.f32 %v5941_v59, %v1679_v1  ;;  %4249 = vmatprep.mubr.f32.mxu1 %v1748_v62 }
 0x4a3   : > { %v1751_v3 = vmax.f32 %v1685_v0, 0.0  ;;  %4250 = vmatmul.mubr.f32.gmra.mrb[20].mxu1 %v1749_v61 }
 0x4a4   : > { %v1750_v4 = vmax.f32 %v1680_v2, 0.0  ;;  %v4177_v5 = vpop.f32.mrb[24].mxu0 }
 0x4a5   : > { %v1695_v6 = vadd.f32 %v4177_v5, %v5941_v59  ;;  %v1689_v7 = vpop.f32.mrb[25].mxu0 }
 0x4a6   : > { %v1690_v8 = vadd.f32 %v5941_v59, %v1689_v7  ;;  %4252 = vmatprep.mubr.f32.mxu1 %v1750_v4 }
 0x4a7   : > { %v1753_v9 = vmax.f32 %v1695_v6, 0.0  ;;  %4253 = vmatmul.mubr.f32.gmra.mrb[22].mxu1 %v1751_v3 }
 0x4a8   : > { %v1752_v10 = vmax.f32 %v1690_v8, 0.0  ;;  %v4180_v11 = vpop.f32.mrb[26].mxu0 }
 0x4a9   : > { %v1705_v12 = vadd.f32 %v4180_v11, %v5941_v59  ;;  %v1699_v13 = vpop.f32.mrb[27].mxu0 }
 0x4aa   : > { %v1700_v14 = vadd.f32 %v5941_v59, %v1699_v13  ;;  %4255 = vmatprep.mubr.f32.mxu1 %v1752_v10 }
 0x4ab   : > { %v1755_v15 = vmax.f32 %v1705_v12, 0.0  ;;  %4256 = vmatmul.mubr.f32.gmra.mrb[24].mxu1 %v1753_v9 }
 0x4ac   : > { %v1754_v16 = vmax.f32 %v1700_v14, 0.0  ;;  %v4183_v17 = vpop.f32.mrb[28].mxu0 }
 0x4ad   : > { %v1715_v18 = vadd.f32 %v4183_v17, %v5941_v59  ;;  %v1709_v19 = vpop.f32.mrb[29].mxu0 }
 0x4ae   : > { %v1710_v20 = vadd.f32 %v5941_v59, %v1709_v19  ;;  %4258 = vmatprep.mubr.f32.mxu1 %v1754_v16 }
 0x4af   : > { %v1757_v21 = vmax.f32 %v1715_v18, 0.0  ;;  %4259 = vmatmul.mubr.f32.gmra.mrb[26].mxu1 %v1755_v15 }
 0x4b0   : > { %v1756_v22 = vmax.f32 %v1710_v20, 0.0  ;;  %v4186_v23 = vpop.f32.mrb[30].mxu0 }
 0x4b1   : > { %v1725_v24 = vadd.f32 %v4186_v23, %v5941_v59  ;;  %v1719_v25 = vpop.f32.mrb[31].mxu0 }
 0x4b2   : > { %v1720_v26 = vadd.f32 %v5941_v59, %v1719_v25  ;;  %4261 = vmatprep.mubr.f32.mxu1 %v1756_v22  ;;  %v5991_v59 = vld [vmem:[%s6966_s7] ss:$0 sm:$0xff] }
 0x4b3   : > { %v1759_v56 = vmax.f32 %v1725_v24, 0.0  ;;  %4262 = vmatmul.mubr.f32.gmra.mrb[28].mxu1 %v1757_v21 }
 0x4b4   : > { %v1758_v27 = vmax.f32 %v1720_v26, 0.0 }
 0x4b6   : > { %4264 = vmatprep.mubr.f32.mxu1 %v1758_v27 }
 0x4b7   : > { %4265 = vmatmul.mubr.f32.gmra.mrb[30].mxu1 %v1759_v56 }
 0x54e   : > { %v4221_v29 = vpop.f32.mrb[0].mxu1 }
 0x54f   : > { %v5983_v30 = vadd.f32 %v4221_v29, %v5980_v28  ;;  %v1849_v31 = vpop.f32.mrb[1].mxu1 }
 0x550   : > { %v5986_v32 = vadd.f32 %v5980_v28, %v1849_v31 }
 0x551   : > { %v2009_v33 = vmax.f32 %v5983_v30, 0.0 }
 0x552   : > { %v4224_v34 = vpop.f32.mrb[2].mxu1  ;;  %v2008_v35 = vmax.f32 %v5986_v32, 0.0 }
 0x553   : > { %v5996_v36 = vadd.f32 %v4224_v34, %v5980_v28  ;;  %v1859_v37 = vpop.f32.mrb[3].mxu1  ;;  %v2048_v38 = vmul.f32 %v5991_v59, %v2009_v33 }
 0x554   : > { %v6002_v39 = vadd.f32 %v5980_v28, %v1859_v37  ;;  %v2047_v46 = vmul.f32 %v5991_v59, %v2008_v35 }
 0x555   : > { %v2011_v40 = vmax.f32 %v5996_v36, 0.0  ;;  %2081 = vadd.xlane.f32.xlu0 %v2048_v38 }
 0x556   : > { %v4227_v41 = vpop.f32.mrb[4].mxu1  ;;  %v2010_v42 = vmax.f32 %v6002_v39, 0.0 }
 0x557   : > { %v6007_v43 = vadd.f32 %v4227_v41, %v5980_v28  ;;  %v1869_v44 = vpop.f32.mrb[5].mxu1  ;;  %v2050_v45 = vmul.f32 %v5991_v59, %v2011_v40 }
 0x558   : > { %v6016_v47 = vadd.f32 %v5980_v28, %v1869_v44  ;;  %v2049_v53 = vmul.f32 %v5991_v59, %v2010_v42 }
 0x559   : > { %2085 = vadd.xlane.f32.xlu1 %v2050_v45  ;;  %2079 = vadd.xlane.f32.xlu0 %v2047_v46  ;;  %v2013_v50 = vmax.f32 %v6007_v43, 0.0 }
 0x55a   : > { %v2012_v48 = vmax.f32 %v6016_v47, 0.0  ;;  %v4230_v49 = vpop.f32.mrb[6].mxu1 }
 0x55b   : > { %v6021_v51 = vadd.f32 %v4230_v49, %v5980_v28  ;;  %v1879_v52 = vpop.f32.mrb[7].mxu1  ;;  %v2052_v63 = vmul.f32 %v5991_v59, %v2013_v50 }
 0x55c   : > { %v6027_v54 = vadd.f32 %v5980_v28, %v1879_v52  ;;  %v2051_v55 = vmul.f32 %v5991_v59, %v2012_v48 }
 0x55d   : > { %2083 = vadd.xlane.f32.xlu1 %v2049_v53  ;;  %v2015_v60 = vmax.f32 %v6021_v51, 0.0 }
 0x55e   : > { %v2014_v57 = vmax.f32 %v6027_v54, 0.0  ;;  %v4233_v58 = vpop.f32.mrb[8].mxu1  ;;  %2087 = vadd.xlane.f32.xlu0 %v2051_v55 }
 0x55f   : > { %v6035_v61 = vadd.f32 %v4233_v58, %v5980_v28  ;;  %v1889_v62 = vpop.f32.mrb[9].mxu1  ;;  %v2054_v7 = vmul.f32 %v5991_v59, %v2015_v60 }
 0x560   : > { %v6041_v0 = vadd.f32 %v5980_v28, %v1889_v62  ;;  %v2053_v1 = vmul.f32 %v5991_v59, %v2014_v57 }
 0x561   : > { %2089 = vadd.xlane.f32.xlu1 %v2052_v63  ;;  %v2017_v4 = vmax.f32 %v6035_v61, 0.0 }
 0x562   : > { %v2016_v2 = vmax.f32 %v6041_v0, 0.0  ;;  %v4236_v3 = vpop.f32.mrb[10].mxu1  ;;  %2091 = vadd.xlane.f32.xlu0 %v2053_v1 }
 0x563   : > { %v6049_v5 = vadd.f32 %v4236_v3, %v5980_v28  ;;  %v1899_v6 = vpop.f32.mrb[11].mxu1  ;;  %v2056_v15 = vmul.f32 %v5991_v59, %v2017_v4 }
 0x564   : > { %v6055_v8 = vadd.f32 %v5980_v28, %v1899_v6  ;;  %v2055_v9 = vmul.f32 %v5991_v59, %v2016_v2 }
 0x565   : > { %2093 = vadd.xlane.f32.xlu1 %v2054_v7  ;;  %v2019_v12 = vmax.f32 %v6049_v5, 0.0 }
 0x566   : > { %v2018_v10 = vmax.f32 %v6055_v8, 0.0  ;;  %v4239_v11 = vpop.f32.mrb[12].mxu1  ;;  %2095 = vadd.xlane.f32.xlu0 %v2055_v9 }
 0x567   : > { %v6063_v13 = vadd.f32 %v4239_v11, %v5980_v28  ;;  %v1909_v14 = vpop.f32.mrb[13].mxu1  ;;  %v2058_v23 = vmul.f32 %v5991_v59, %v2019_v12 }
 0x568   : > { %v6069_v16 = vadd.f32 %v5980_v28, %v1909_v14  ;;  %v2057_v17 = vmul.f32 %v5991_v59, %v2018_v10 }
 0x569   : > { %2097 = vadd.xlane.f32.xlu1 %v2056_v15  ;;  %v2021_v20 = vmax.f32 %v6063_v13, 0.0 }
 0x56a   : > { %v2020_v18 = vmax.f32 %v6069_v16, 0.0  ;;  %v4242_v19 = vpop.f32.mrb[14].mxu1  ;;  %2099 = vadd.xlane.f32.xlu0 %v2057_v17 }
 0x56b   : > { %v6077_v21 = vadd.f32 %v4242_v19, %v5980_v28  ;;  %v1919_v22 = vpop.f32.mrb[15].mxu1  ;;  %v2060_v34 = vmul.f32 %v5991_v59, %v2021_v20 }
 0x56c   : > { %v6083_v24 = vadd.f32 %v5980_v28, %v1919_v22  ;;  %v2059_v25 = vmul.f32 %v5991_v59, %v2020_v18 }
 0x56d   : > { %2101 = vadd.xlane.f32.xlu1 %v2058_v23  ;;  %v2023_v27 = vmax.f32 %v6077_v21, 0.0 }
 0x56e   : > { %v2022_v26 = vmax.f32 %v6083_v24, 0.0  ;;  %v4245_v56 = vpop.f32.mrb[16].mxu1  ;;  %2103 = vadd.xlane.f32.xlu0 %v2059_v25 }
 0x56f   : > { %v6091_v29 = vadd.f32 %v4245_v56, %v5980_v28  ;;  %v1929_v31 = vpop.f32.mrb[17].mxu1  ;;  %v2062_v52 = vmul.f32 %v5991_v59, %v2023_v27 }
 0x570   : > { %v6097_v37 = vadd.f32 %v5980_v28, %v1929_v31  ;;  %v2061_v38 = vmul.f32 %v5991_v59, %v2022_v26 }
 0x571   : > { %2105 = vadd.xlane.f32.xlu1 %v2060_v34  ;;  %v2025_v45 = vmax.f32 %v6091_v29, 0.0 }
 0x572   : > { %v2024_v41 = vmax.f32 %v6097_v37, 0.0  ;;  %v4248_v44 = vpop.f32.mrb[18].mxu1  ;;  %2107 = vadd.xlane.f32.xlu0 %v2061_v38 }
 0x573   : > { %v6105_v46 = vadd.f32 %v4248_v44, %v5980_v28  ;;  %v1939_v49 = vpop.f32.mrb[19].mxu1  ;;  %v2064_v6 = vmul.f32 %v5991_v59, %v2025_v45 }
 0x574   : > { %v6111_v53 = vadd.f32 %v5980_v28, %v1939_v49  ;;  %v2063_v55 = vmul.f32 %v5991_v59, %v2024_v41 }
 0x575   : > { %2109 = vadd.xlane.f32.xlu1 %v2062_v52  ;;  %v6863_v63 = vmax.f32 %v6105_v46, 0.0 }
 0x576   : > { %v6865_v58 = vmax.f32 %v6111_v53, 0.0  ;;  %v4251_v62 = vpop.f32.mrb[20].mxu1  ;;  %2111 = vadd.xlane.f32.xlu0 %v2063_v55 }
 0x577   : > { %v6119_v1 = vadd.f32 %v4251_v62, %v5980_v28  ;;  %v1949_v3 = vpop.f32.mrb[21].mxu1  ;;  %v2066_v22 = vmul.f32 %v5991_v59, %v6863_v63 }
 0x578   : > { %v6125_v7 = vadd.f32 %v5980_v28, %v1949_v3  ;;  %v2065_v9 = vmul.f32 %v5991_v59, %v6865_v58 }
 0x579   : > { %2113 = vadd.xlane.f32.xlu1 %v2064_v6  ;;  %v6857_v15 = vmax.f32 %v6119_v1, 0.0 }
 0x57a   : > { %v6862_v11 = vmax.f32 %v6125_v7, 0.0  ;;  %v4254_v14 = vpop.f32.mrb[22].mxu1  ;;  %2115 = vadd.xlane.f32.xlu0 %v2065_v9 }
 0x57b   : > { %v6133_v17 = vadd.f32 %v4254_v14, %v5980_v28  ;;  %v1959_v19 = vpop.f32.mrb[23].mxu1  ;;  %v2068_v49 = vmul.f32 %v5991_v59, %v6857_v15 }
 0x57c   : > { %v6139_v23 = vadd.f32 %v5980_v28, %v1959_v19  ;;  %v2067_v25 = vmul.f32 %v5991_v59, %v6862_v11 }
 0x57d   : > { %2117 = vadd.xlane.f32.xlu1 %v2066_v22  ;;  %v6854_v34 = vmax.f32 %v6133_v17, 0.0 }
 0x57e   : > { %v6856_v56 = vmax.f32 %v6139_v23, 0.0  ;;  %v4257_v31 = vpop.f32.mrb[24].mxu1  ;;  %2119 = vadd.xlane.f32.xlu0 %v2067_v25 }
 0x57f   : > { %v6147_v38 = vadd.f32 %v4257_v31, %v5980_v28  ;;  %v1969_v44 = vpop.f32.mrb[25].mxu1  ;;  %v2070_v19 = vmul.f32 %v5991_v59, %v6854_v34 }
 0x580   : > { %v6153_v52 = vadd.f32 %v5980_v28, %v1969_v44  ;;  %v2069_v55 = vmul.f32 %v5991_v59, %v6856_v56 }
 0x581   : > { %2121 = vadd.xlane.f32.xlu1 %v2068_v49  ;;  %v6858_v6 = vmax.f32 %v6147_v38, 0.0 }
 0x582   : > { %v6855_v62 = vmax.f32 %v6153_v52, 0.0  ;;  %v4260_v3 = vpop.f32.mrb[26].mxu1  ;;  %2123 = vadd.xlane.f32.xlu0 %v2069_v55 }
 0x583   : > { %v6161_v9 = vadd.f32 %v4260_v3, %v5980_v28  ;;  %v1979_v14 = vpop.f32.mrb[27].mxu1 }
 0x584   : > { %v6167_v22 = vadd.f32 %v5980_v28, %v1979_v14  ;;  %v2071_v25 = vmul.f32 %v5991_v59, %v6855_v62  ;;  %v2072_v14 = vmul.f32 %v5991_v59, %v6858_v6 }
 0x585   : > { %2125 = vadd.xlane.f32.xlu1 %v2070_v19  ;;  %v6860_v49 = vmax.f32 %v6161_v9, 0.0 }
 0x586   : > { %v6859_v31 = vmax.f32 %v6167_v22, 0.0  ;;  %v4263_v44 = vpop.f32.mrb[28].mxu1  ;;  %2127 = vadd.xlane.f32.xlu0 %v2071_v25 }
 0x587   : > { %v6175_v55 = vadd.f32 %v4263_v44, %v5980_v28  ;;  %v1989_v3 = vpop.f32.mrb[29].mxu1 }
 0x588   : > { %v6181_v34 = vadd.f32 %v5980_v28, %v1989_v3  ;;  %v2073_v19 = vmul.f32 %v5991_v59, %v6859_v31  ;;  %v2074_v3 = vmul.f32 %v5991_v59, %v6860_v49 }
 0x589   : > { %2129 = vadd.xlane.f32.xlu1 %v2072_v14  ;;  %v6864_v44 = vmax.f32 %v6175_v55, 0.0 }
 0x58a   : > { %v6861_v25 = vmax.f32 %v6181_v34, 0.0  ;;  %v4266_v62 = vpop.f32.mrb[30].mxu1  ;;  %2131 = vadd.xlane.f32.xlu0 %v2073_v19 }
 0x58b   : > { %v6189_v56 = vadd.f32 %v4266_v62, %v5980_v28  ;;  %v1999_v15 = vpop.f32.mrb[31].mxu1  ;;  %v2076_v62 = vmul.f32 %v5991_v59, %v6864_v44 }
 0x58c   : > { %v6195_v6 = vadd.f32 %v5980_v28, %v1999_v15  ;;  %v2075_v14 = vmul.f32 %v5991_v59, %v6861_v25 }
 0x58d   : > { %2133 = vadd.xlane.f32.xlu1 %v2074_v3  ;;  %v6866_v31 = vmax.f32 %v6189_v56, 0.0 }
 0x58e   : > { %v2038_v19 = vmax.f32 %v6195_v6, 0.0  ;;  %2135 = vadd.xlane.f32.xlu0 %v2075_v14 }
 0x58f   : > { %v2078_v28 = vmul.f32 %v5991_v59, %v6866_v31 }
 0x590   : > { %v2077_v49 = vmul.f32 %v5991_v59, %v2038_v19 }
 0x591   : > { %2137 = vadd.xlane.f32.xlu1 %v2076_v62 }
 0x592   : > { %2139 = vadd.xlane.f32.xlu0 %v2077_v49 }
 0x595   : > { %2141 = vadd.xlane.f32.xlu1 %v2078_v28 }
 0x5e2   : > { %v2082_v15 = vpop.xlane.xlu0 %2081 }
 0x5e3   : > { %v2144_v3 = vmul.f32 0.03125, %v2082_v15 }
 0x5e5   : > { %v2176_v14 = vsub.f32 %v2009_v33, %v2144_v3 }
 0x5e6   : > { %v2086_v25 = vpop.xlane.xlu1 %2085  ;;  %v2080_v11 = vpop.xlane.xlu0 %2079 }
 0x5e7   : > { %v2146_v63 = vmul.f32 0.03125, %v2086_v25  ;;  %v2143_v44 = vmul.f32 0.03125, %v2080_v11  ;;  %v6214_v58 = vmul.f32 %v5991_v59, %v2176_v14 }
 0x5e9   : > { %v2178_v49 = vsub.f32 %v2011_v40, %v2146_v63  ;;  %v2175_v62 = vsub.f32 %v2008_v35, %v2143_v44  ;;  %v2240_v28 = vmul.f32 %v6214_v58, %v6214_v58 }
 0x5ea   : > { %v2084_v15 = vpop.xlane.xlu1 %2083 }
 0x5eb   : > { %v2145_v31 = vmul.f32 0.03125, %v2084_v15  ;;  %2273 = vadd.xlane.f32.xlu1 %v2240_v28  ;;  %v2088_v30 = vpop.xlane.xlu0 %2087  ;;  %v6223_v33 = vmul.f32 %v5991_v59, %v2178_v49  ;;  %v6226_v11 = vmul.f32 %v5991_v59, %v2175_v62 }
 0x5ec   : > { %v2147_v25 = vmul.f32 0.03125, %v2088_v30 }
 0x5ed   : > { %v2177_v36 = vsub.f32 %v2010_v42, %v2145_v31  ;;  %v2242_v32 = vmul.f32 %v6223_v33, %v6223_v33  ;;  %v2239_v35 = vmul.f32 %v6226_v11, %v6226_v11 }
 0x5ee   : > { %v2179_v40 = vsub.f32 %v2012_v48, %v2147_v25  ;;  %v2090_v63 = vpop.xlane.xlu1 %2089 }
 0x5ef   : > { %v2148_v44 = vmul.f32 0.03125, %v2090_v63  ;;  %2277 = vadd.xlane.f32.xlu1 %v2242_v32  ;;  %2271 = vadd.xlane.f32.xlu0 %v2239_v35  ;;  %v2092_v3 = vpop.xlane.xlu0 %2091  ;;  %v6237_v14 = vmul.f32 %v5991_v59, %v2177_v36 }
 0x5f0   : > { %v2149_v49 = vmul.f32 0.03125, %v2092_v3  ;;  %v6244_v31 = vmul.f32 %v5991_v59, %v2179_v40 }
 0x5f1   : > { %v2180_v39 = vsub.f32 %v2013_v50, %v2148_v44  ;;  %v2241_v42 = vmul.f32 %v6237_v14, %v6237_v14 }
 0x5f2   : > { %v2181_v47 = vsub.f32 %v2014_v57, %v2149_v49  ;;  %v2094_v48 = vpop.xlane.xlu1 %2093  ;;  %v2243_v25 = vmul.f32 %v6244_v31, %v6244_v31 }
 0x5f3   : > { %v2150_v62 = vmul.f32 0.03125, %v2094_v48  ;;  %2275 = vadd.xlane.f32.xlu0 %v2241_v42  ;;  %v2096_v28 = vpop.xlane.xlu0 %2095  ;;  %v6249_v15 = vmul.f32 %v5991_v59, %v2180_v39 }
 0x5f4   : > { %v2151_v30 = vmul.f32 0.03125, %v2096_v28  ;;  %v6258_v54 = vmul.f32 %v5991_v59, %v2181_v47 }
 0x5f5   : > { %v2182_v43 = vsub.f32 %v2015_v60, %v2150_v62  ;;  %v2244_v50 = vmul.f32 %v6249_v15, %v6249_v15 }
 0x5f6   : > { %v2183_v57 = vsub.f32 %v2016_v2, %v2151_v30  ;;  %v2098_v36 = vpop.xlane.xlu1 %2097  ;;  %v2245_v44 = vmul.f32 %v6258_v54, %v6258_v54 }
 0x5f7   : > { %v2152_v32 = vmul.f32 0.03125, %v2098_v36  ;;  %2281 = vadd.xlane.f32.xlu1 %v2244_v50  ;;  %2279 = vadd.xlane.f32.xlu0 %v2243_v25  ;;  %v2100_v35 = vpop.xlane.xlu0 %2099  ;;  %v6263_v51 = vmul.f32 %v5991_v59, %v2182_v43 }
 0x5f8   : > { %v2153_v60 = vmul.f32 0.03125, %v2100_v35  ;;  %v6272_v0 = vmul.f32 %v5991_v59, %v2183_v57 }
 0x5f9   : > { %v2184_v40 = vsub.f32 %v2017_v4, %v2152_v32  ;;  %v2246_v63 = vmul.f32 %v6263_v51, %v6263_v51 }
 0x5fa   : > { %v2185_v2 = vsub.f32 %v2018_v10, %v2153_v60  ;;  %v2102_v3 = vpop.xlane.xlu1 %2101  ;;  %v2247_v48 = vmul.f32 %v6272_v0, %v6272_v0 }
 0x5fb   : > { %v2154_v49 = vmul.f32 0.03125, %v2102_v3  ;;  %2285 = vadd.xlane.f32.xlu1 %v2246_v63  ;;  %2283 = vadd.xlane.f32.xlu0 %v2245_v44  ;;  %v2104_v39 = vpop.xlane.xlu0 %2103  ;;  %v6277_v61 = vmul.f32 %v5991_v59, %v2184_v40 }
 0x5fc   : > { %v2155_v4 = vmul.f32 0.03125, %v2104_v39  ;;  %v6286_v8 = vmul.f32 %v5991_v59, %v2185_v2 }
 0x5fd   : > { %v2186_v42 = vsub.f32 %v2019_v12, %v2154_v49  ;;  %v2248_v47 = vmul.f32 %v6277_v61, %v6277_v61 }
 0x5fe   : > { %v2187_v10 = vsub.f32 %v2020_v18, %v2155_v4  ;;  %v2106_v62 = vpop.xlane.xlu1 %2105  ;;  %v2249_v25 = vmul.f32 %v6286_v8, %v6286_v8 }
 0x5ff   : > { %v2156_v28 = vmul.f32 0.03125, %v2106_v62  ;;  %2289 = vadd.xlane.f32.xlu1 %v2248_v47  ;;  %2287 = vadd.xlane.f32.xlu0 %v2247_v48  ;;  %v2108_v30 = vpop.xlane.xlu0 %2107  ;;  %v6291_v5 = vmul.f32 %v5991_v59, %v2186_v42 }
 0x600   : > { %v2157_v12 = vmul.f32 0.03125, %v2108_v30  ;;  %v6300_v16 = vmul.f32 %v5991_v59, %v2187_v10  ;;  %v6968_v10 = vmax.f32 %v6105_v46, 0.0 }
 0x601   : > { %v2188_v43 = vsub.f32 %v2021_v20, %v2156_v28  ;;  %v2250_v50 = vmul.f32 %v6291_v5, %v6291_v5 }
 0x602   : > { %v2189_v18 = vsub.f32 %v2022_v26, %v2157_v12  ;;  %v2110_v57 = vpop.xlane.xlu1 %2109  ;;  %v2251_v40 = vmul.f32 %v6300_v16, %v6300_v16  ;;  %v6969_v12 = vmax.f32 %v6125_v7, 0.0 }
 0x603   : > { %v2158_v36 = vmul.f32 0.03125, %v2110_v57  ;;  %2293 = vadd.xlane.f32.xlu1 %v2250_v50  ;;  %2291 = vadd.xlane.f32.xlu0 %v2249_v25  ;;  %v2112_v32 = vpop.xlane.xlu0 %2111  ;;  %v6305_v13 = vmul.f32 %v5991_v59, %v2188_v43 }
 0x604   : > { %v2159_v20 = vmul.f32 0.03125, %v2112_v32  ;;  %v6314_v24 = vmul.f32 %v5991_v59, %v2189_v18 }
 0x605   : > { %v2190_v35 = vsub.f32 %v2023_v27, %v2158_v36  ;;  %v2252_v60 = vmul.f32 %v6305_v13, %v6305_v13  ;;  %v6970_v36 = vmax.f32 %v6119_v1, 0.0 }
 0x606   : > { %v2191_v26 = vsub.f32 %v2024_v41, %v2159_v20  ;;  %v2114_v63 = vpop.xlane.xlu1 %2113  ;;  %v2253_v39 = vmul.f32 %v6314_v24, %v6314_v24  ;;  %v6967_v41 = vmax.f32 %v6111_v53, 0.0 }
 0x607   : > { %v2160_v44 = vmul.f32 0.03125, %v2114_v63  ;;  %2297 = vadd.xlane.f32.xlu1 %v2252_v60  ;;  %2295 = vadd.xlane.f32.xlu0 %v2251_v40  ;;  %v2116_v2 = vpop.xlane.xlu0 %2115  ;;  %v6319_v21 = vmul.f32 %v5991_v59, %v2190_v35  ;;  %v6971_v60 = vmax.f32 %v6139_v23, 0.0 }
 0x608   : > { %v2161_v27 = vmul.f32 0.03125, %v2116_v2  ;;  %v6328_v37 = vmul.f32 %v5991_v59, %v2191_v26 }
 0x609   : > { %v2192_v3 = vsub.f32 %v2025_v45, %v2160_v44  ;;  %v2254_v49 = vmul.f32 %v6319_v21, %v6319_v21 }
 0x60a   : > { %v2193_v4 = vsub.f32 %v6967_v41, %v2161_v27  ;;  %v2118_v42 = vpop.xlane.xlu1 %2117  ;;  %v2255_v30 = vmul.f32 %v6328_v37, %v6328_v37  ;;  %v6972_v27 = vmax.f32 %v6133_v17, 0.0  ;;  %v6973_v41 = vmax.f32 %v6153_v52, 0.0 }
 0x60b   : > { %v2162_v47 = vmul.f32 0.03125, %v2118_v42  ;;  %2301 = vadd.xlane.f32.xlu1 %v2254_v49  ;;  %2299 = vadd.xlane.f32.xlu0 %v2253_v39  ;;  %v2120_v48 = vpop.xlane.xlu0 %2119  ;;  %v6333_v29 = vmul.f32 %v5991_v59, %v2192_v3 }
 0x60c   : > { %v2163_v45 = vmul.f32 0.03125, %v2120_v48  ;;  %v6342_v53 = vmul.f32 %v5991_v59, %v2193_v4 }
 0x60d   : > { %v2194_v62 = vsub.f32 %v6968_v10, %v2162_v47  ;;  %v2256_v28 = vmul.f32 %v6333_v29, %v6333_v29  ;;  %v6974_v10 = vmax.f32 %v6147_v38, 0.0 }
 0x60e   : > { %v2195_v43 = vsub.f32 %v6969_v12, %v2163_v45  ;;  %v2122_v50 = vpop.xlane.xlu1 %2121  ;;  %v2257_v35 = vmul.f32 %v6342_v53, %v6342_v53  ;;  %v6975_v12 = vmax.f32 %v6167_v22, 0.0 }
 0x60f   : > { %v2164_v25 = vmul.f32 0.03125, %v2122_v50  ;;  %2305 = vadd.xlane.f32.xlu1 %v2256_v28  ;;  %2303 = vadd.xlane.f32.xlu0 %v2255_v30  ;;  %v2124_v18 = vpop.xlane.xlu0 %2123  ;;  %v6347_v46 = vmul.f32 %v5991_v59, %v2194_v62 }
 0x610   : > { %v2165_v57 = vmul.f32 0.03125, %v2124_v18  ;;  %v6356_v7 = vmul.f32 %v5991_v59, %v2195_v43 }
 0x611   : > { %v2196_v32 = vsub.f32 %v6970_v36, %v2164_v25  ;;  %v2258_v20 = vmul.f32 %v6347_v46, %v6347_v46  ;;  %v6976_v36 = vmax.f32 %v6161_v9, 0.0 }
 0x612   : > { %v2197_v40 = vsub.f32 %v6971_v60, %v2165_v57  ;;  %v2126_v26 = vpop.xlane.xlu1 %2125  ;;  %v2259_v39 = vmul.f32 %v6356_v7, %v6356_v7  ;;  %v6977_v60 = vmax.f32 %v6181_v34, 0.0 }
 0x613   : > { %v2166_v63 = vmul.f32 0.03125, %v2126_v26  ;;  %2309 = vadd.xlane.f32.xlu1 %v2258_v20  ;;  %2307 = vadd.xlane.f32.xlu0 %v2257_v35  ;;  %v2128_v44 = vpop.xlane.xlu0 %2127  ;;  %v6361_v1 = vmul.f32 %v5991_v59, %v2196_v32 }
 0x614   : > { %v2167_v2 = vmul.f32 0.03125, %v2128_v44  ;;  %v6370_v23 = vmul.f32 %v5991_v59, %v2197_v40 }
 0x615   : > { %v2198_v3 = vsub.f32 %v6972_v27, %v2166_v63  ;;  %v2260_v49 = vmul.f32 %v6361_v1, %v6361_v1  ;;  %v6978_v27 = vmax.f32 %v6175_v55, 0.0  ;;  %v6979_v55 = vmax.f32 %v6189_v56, 0.0 }
 0x616   : > { %v2199_v4 = vsub.f32 %v6973_v41, %v2167_v2  ;;  %v2130_v42 = vpop.xlane.xlu1 %2129  ;;  %v2261_v30 = vmul.f32 %v6370_v23, %v6370_v23 }
 0x617   : > { %v2168_v47 = vmul.f32 0.03125, %v2130_v42  ;;  %2313 = vadd.xlane.f32.xlu1 %v2260_v49  ;;  %2311 = vadd.xlane.f32.xlu0 %v2259_v39  ;;  %v2132_v48 = vpop.xlane.xlu0 %2131  ;;  %v6375_v17 = vmul.f32 %v5991_v59, %v2198_v3 }
 0x618   : > { %v2169_v45 = vmul.f32 0.03125, %v2132_v48  ;;  %v6384_v52 = vmul.f32 %v5991_v59, %v2199_v4 }
 0x619   : > { %v2200_v62 = vsub.f32 %v6974_v10, %v2168_v47  ;;  %v2262_v28 = vmul.f32 %v6375_v17, %v6375_v17 }
 0x61a   : > { %v2201_v43 = vsub.f32 %v6975_v12, %v2169_v45  ;;  %v2134_v50 = vpop.xlane.xlu1 %2133  ;;  %v2263_v35 = vmul.f32 %v6384_v52, %v6384_v52 }
 0x61b   : > { %v2170_v25 = vmul.f32 0.03125, %v2134_v50  ;;  %2317 = vadd.xlane.f32.xlu1 %v2262_v28  ;;  %2315 = vadd.xlane.f32.xlu0 %v2261_v30  ;;  %v2136_v18 = vpop.xlane.xlu0 %2135  ;;  %v6389_v38 = vmul.f32 %v5991_v59, %v2200_v62 }
 0x61c   : > { %v2171_v57 = vmul.f32 0.03125, %v2136_v18  ;;  %v6398_v22 = vmul.f32 %v5991_v59, %v2201_v43 }
 0x61d   : > { %v2202_v32 = vsub.f32 %v6976_v36, %v2170_v25  ;;  %v2264_v20 = vmul.f32 %v6389_v38, %v6389_v38 }
 0x61e   : > { %v2203_v40 = vsub.f32 %v6977_v60, %v2171_v57  ;;  %v2138_v26 = vpop.xlane.xlu1 %2137  ;;  %v2265_v39 = vmul.f32 %v6398_v22, %v6398_v22 }
 0x61f   : > { %v2172_v63 = vmul.f32 0.03125, %v2138_v26  ;;  %2321 = vadd.xlane.f32.xlu1 %v2264_v20  ;;  %2319 = vadd.xlane.f32.xlu0 %v2263_v35  ;;  %v2140_v44 = vpop.xlane.xlu0 %2139  ;;  %v6403_v9 = vmul.f32 %v5991_v59, %v2202_v32 }
 0x620   : > { %v2173_v2 = vmul.f32 0.03125, %v2140_v44  ;;  %v6412_v34 = vmul.f32 %v5991_v59, %v2203_v40  ;;  %v6440_v44 = vld [vmem:[%s808_s1] ss:$0 sm:$0xff] }
 0x621   : > { %v2204_v3 = vsub.f32 %v6978_v27, %v2172_v63  ;;  %v2266_v49 = vmul.f32 %v6403_v9, %v6403_v9 }
 0x622   : > { %v2205_v41 = vsub.f32 %v2038_v19, %v2173_v2  ;;  %v2142_v4 = vpop.xlane.xlu1 %2141  ;;  %v2267_v10 = vmul.f32 %v6412_v34, %v6412_v34 }
 0x623   : > { %v2174_v42 = vmul.f32 0.03125, %v2142_v4  ;;  %2325 = vadd.xlane.f32.xlu1 %v2266_v49  ;;  %2323 = vadd.xlane.f32.xlu0 %v2265_v39  ;;  %v6417_v47 = vmul.f32 %v5991_v59, %v2204_v3 }
 0x624   : > { %v6426_v62 = vmul.f32 %v5991_v59, %v2205_v41  ;;  %v6448_v41 = vld [vmem:[%s811_s9] ss:$0 sm:$0xff] }
 0x625   : > { %v2206_v48 = vsub.f32 %v6979_v55, %v2174_v42  ;;  %v2268_v45 = vmul.f32 %v6417_v47, %v6417_v47 }
 0x626   : > { %v2269_v56 = vmul.f32 %v6426_v62, %v6426_v62 }
 0x627   : > { %2329 = vadd.xlane.f32.xlu1 %v2268_v45  ;;  %2327 = vadd.xlane.f32.xlu0 %v2267_v10  ;;  %v6429_v6 = vmul.f32 %v5991_v59, %v2206_v48 }
 0x629   : > { %v2270_v19 = vmul.f32 %v6429_v6, %v6429_v6 }
 0x62b   : > { %2333 = vadd.xlane.f32.xlu1 %v2270_v19  ;;  %2331 = vadd.xlane.f32.xlu0 %v2269_v56 }
 0x678   : > { %v2274_v28 = vpop.xlane.xlu1 %2273 }
 0x679   : > { %v2336_v30 = vmul.f32 0.03125, %v2274_v28 }
 0x67b   : > { %v2368_v12 = vadd.f32 1e-05, %v2336_v30 }
 0x67c   : > { %v2278_v43 = vpop.xlane.xlu1 %2277  ;;  %v2272_v50 = vpop.xlane.xlu0 %2271 }
 0x67d   : > { %4767 = vrsqrt.f32 %v2368_v12  ;;  %v2338_v25 = vmul.f32 0.03125, %v2278_v43  ;;  %v2335_v18 = vmul.f32 0.03125, %v2272_v50 }
 0x67f   : > { %v2370_v57 = vadd.f32 1e-05, %v2338_v25  ;;  %v2367_v59 = vadd.f32 1e-05, %v2335_v18 }
 0x680   : > { %v2276_v36 = vpop.xlane.xlu0 %2275 }
 0x681   : > { %4769 = vrsqrt.f32 %v2370_v57  ;;  %v2337_v32 = vmul.f32 0.03125, %v2276_v36 }
 0x682   : > { %4771 = vrsqrt.f32 %v2367_v59 }
 0x683   : > { %v2369_v20 = vadd.f32 1e-05, %v2337_v32 }
 0x684   : > { %v2282_v35 = vpop.xlane.xlu1 %2281  ;;  %v2280_v60 = vpop.xlane.xlu0 %2279 }
 0x685   : > { %4773 = vrsqrt.f32 %v2369_v20  ;;  %v2340_v40 = vmul.f32 0.03125, %v2282_v35  ;;  %v2339_v26 = vmul.f32 0.03125, %v2280_v60 }
 0x687   : > { %v4768_v63 = vpop.eup %4767  ;;  %v2372_v2 = vadd.f32 1e-05, %v2340_v40  ;;  %v2371_v27 = vadd.f32 1e-05, %v2339_v26 }
 0x688   : > { %v2432_v3 = vmul.f32 %v4768_v63, %v6214_v58  ;;  %v2286_v49 = vpop.xlane.xlu1 %2285  ;;  %v2284_v39 = vpop.xlane.xlu0 %2283 }
 0x689   : > { %4775 = vrsqrt.f32 %v2372_v2  ;;  %v2342_v4 = vmul.f32 0.03125, %v2286_v49  ;;  %v2341_v42 = vmul.f32 0.03125, %v2284_v39 }
 0x68a   : > { %v2471_v55 = vmul.f32 %v6440_v44, %v2432_v3  ;;  %4777 = vrsqrt.f32 %v2371_v27 }
 0x68b   : > { %v4770_v48 = vpop.eup %4769  ;;  %v2374_v45 = vadd.f32 1e-05, %v2342_v4  ;;  %v2373_v10 = vadd.f32 1e-05, %v2341_v42 }
 0x68c   : > { %v4772_v19 = vpop.eup %4771  ;;  %v2510_v58 = vadd.f32 %v6448_v41, %v2471_v55  ;;  %v2434_v56 = vmul.f32 %v4770_v48, %v6223_v33  ;;  %v2290_v28 = vpop.xlane.xlu1 %2289 }
 0x68d   : > { %v2288_v30 = vpop.xlane.xlu0 %2287  ;;  %v2431_v12 = vmul.f32 %v4772_v19, %v6226_v11  ;;  %4779 = vrsqrt.f32 %v2374_v45  ;;  %v2344_v43 = vmul.f32 0.03125, %v2290_v28 }
 0x68e   : > { %v2343_v50 = vmul.f32 0.03125, %v2288_v30  ;;  %2542 = vst [vmem:[#allocation2 + $0x8] sm:$0xff] %v2510_v58  ;;  %v2473_v25 = vmul.f32 %v6440_v44, %v2434_v56  ;;  %4781 = vrsqrt.f32 %v2373_v10 }
 0x68f   : > { %v4774_v18 = vpop.eup %4773  ;;  %v2470_v57 = vmul.f32 %v6440_v44, %v2431_v12  ;;  %v2376_v59 = vadd.f32 1e-05, %v2344_v43 }
 0x690   : > { %v2375_v36 = vadd.f32 1e-05, %v2343_v50  ;;  %v2512_v32 = vadd.f32 %v6448_v41, %v2473_v25  ;;  %v2433_v33 = vmul.f32 %v4774_v18, %v6237_v14  ;;  %v2294_v20 = vpop.xlane.xlu1 %2293 }
 0x691   : > { %v2292_v35 = vpop.xlane.xlu0 %2291  ;;  %v2509_v11 = vadd.f32 %v6448_v41, %v2470_v57  ;;  %4783 = vrsqrt.f32 %v2376_v59  ;;  %v2346_v60 = vmul.f32 0.03125, %v2294_v20 }
 0x692   : > { %v2345_v40 = vmul.f32 0.03125, %v2292_v35  ;;  %2544 = vst [vmem:[#allocation2 + $0x18] sm:$0xff] %v2512_v32  ;;  %v2472_v26 = vmul.f32 %v6440_v44, %v2433_v33  ;;  %4785 = vrsqrt.f32 %v2375_v36 }
 0x693   : > { %v4776_v63 = vpop.eup %4775  ;;  %2541 = vst [vmem:[#allocation2] sm:$0xff] %v2509_v11  ;;  %v2378_v2 = vadd.f32 1e-05, %v2346_v60 }
 0x694   : > { %v2377_v27 = vadd.f32 1e-05, %v2345_v40  ;;  %v4778_v3 = vpop.eup %4777  ;;  %v2511_v49 = vadd.f32 %v6448_v41, %v2472_v26  ;;  %v2436_v14 = vmul.f32 %v4776_v63, %v6249_v15  ;;  %v2298_v39 = vpop.xlane.xlu1 %2297 }
 0x695   : > { %v2296_v4 = vpop.xlane.xlu0 %2295  ;;  %v2435_v42 = vmul.f32 %v4778_v3, %v6244_v31  ;;  %4787 = vrsqrt.f32 %v2378_v2  ;;  %v2348_v55 = vmul.f32 0.03125, %v2298_v39 }
 0x696   : > { %v2347_v48 = vmul.f32 0.03125, %v2296_v4  ;;  %2543 = vst [vmem:[#allocation2 + $0x10] sm:$0xff] %v2511_v49  ;;  %v2475_v45 = vmul.f32 %v6440_v44, %v2436_v14  ;;  %4789 = vrsqrt.f32 %v2377_v27 }
 0x697   : > { %v4780_v10 = vpop.eup %4779  ;;  %v2474_v19 = vmul.f32 %v6440_v44, %v2435_v42  ;;  %v2380_v58 = vadd.f32 1e-05, %v2348_v55 }
 0x698   : > { %v2379_v56 = vadd.f32 1e-05, %v2347_v48  ;;  %v4782_v28 = vpop.eup %4781  ;;  %v2514_v30 = vadd.f32 %v6448_v41, %v2475_v45  ;;  %v2438_v15 = vmul.f32 %v4780_v10, %v6263_v51  ;;  %v2302_v12 = vpop.xlane.xlu1 %2301 }
 0x699   : > { %v2300_v43 = vpop.xlane.xlu0 %2299  ;;  %v2513_v31 = vadd.f32 %v6448_v41, %v2474_v19  ;;  %v2437_v50 = vmul.f32 %v4782_v28, %v6258_v54  ;;  %4791 = vrsqrt.f32 %v2380_v58  ;;  %v2350_v25 = vmul.f32 0.03125, %v2302_v12 }
 0x69a   : > { %2546 = vst [vmem:[#allocation2 + $0x28] sm:$0xff] %v2514_v30  ;;  %v2477_v18 = vmul.f32 %v6440_v44, %v2438_v15  ;;  %4793 = vrsqrt.f32 %v2379_v56  ;;  %v2349_v57 = vmul.f32 0.03125, %v2300_v43 }
 0x69b   : > { %v4784_v59 = vpop.eup %4783  ;;  %2545 = vst [vmem:[#allocation2 + $0x20] sm:$0xff] %v2513_v31  ;;  %v2476_v36 = vmul.f32 %v6440_v44, %v2437_v50  ;;  %v2382_v32 = vadd.f32 1e-05, %v2350_v25 }
 0x69c   : > { %v4786_v33 = vpop.eup %4785  ;;  %v2516_v51 = vadd.f32 %v6448_v41, %v2477_v18  ;;  %v2440_v20 = vmul.f32 %v4784_v59, %v6277_v61  ;;  %v2381_v35 = vadd.f32 1e-05, %v2349_v57  ;;  %v2306_v11 = vpop.xlane.xlu1 %2305 }
 0x69d   : > { %v2304_v54 = vpop.xlane.xlu0 %2303  ;;  %v2515_v60 = vadd.f32 %v6448_v41, %v2476_v36  ;;  %v2439_v40 = vmul.f32 %v4786_v33, %v6272_v0  ;;  %4795 = vrsqrt.f32 %v2382_v32  ;;  %v2352_v26 = vmul.f32 0.03125, %v2306_v11 }
 0x69e   : > { %2548 = vst [vmem:[#allocation2 + $0x38] sm:$0xff] %v2516_v51  ;;  %v2479_v63 = vmul.f32 %v6440_v44, %v2440_v20  ;;  %4797 = vrsqrt.f32 %v2381_v35  ;;  %v2351_v2 = vmul.f32 0.03125, %v2304_v54 }
 0x69f   : > { %v4788_v27 = vpop.eup %4787  ;;  %2547 = vst [vmem:[#allocation2 + $0x30] sm:$0xff] %v2515_v60  ;;  %v2478_v3 = vmul.f32 %v6440_v44, %v2439_v40  ;;  %v2384_v49 = vadd.f32 1e-05, %v2352_v26 }
 0x6a0   : > { %v4790_v61 = vpop.eup %4789  ;;  %v2518_v14 = vadd.f32 %v6448_v41, %v2479_v63  ;;  %v2442_v39 = vmul.f32 %v4788_v27, %v6291_v5  ;;  %v2383_v4 = vadd.f32 1e-05, %v2351_v2  ;;  %v2310_v42 = vpop.xlane.xlu1 %2309 }
 0x6a1   : > { %v2308_v0 = vpop.xlane.xlu0 %2307  ;;  %v2517_v55 = vadd.f32 %v6448_v41, %v2478_v3  ;;  %v2441_v48 = vmul.f32 %v4790_v61, %v6286_v8  ;;  %4799 = vrsqrt.f32 %v2384_v49  ;;  %v2354_v45 = vmul.f32 0.03125, %v2310_v42 }
 0x6a2   : > { %2550 = vst [vmem:[#allocation2 + $0x48] sm:$0xff] %v2518_v14  ;;  %v2481_v10 = vmul.f32 %v6440_v44, %v2442_v39  ;;  %4801 = vrsqrt.f32 %v2383_v4  ;;  %v2353_v19 = vmul.f32 0.03125, %v2308_v0 }
 0x6a3   : > { %v4792_v58 = vpop.eup %4791  ;;  %2549 = vst [vmem:[#allocation2 + $0x40] sm:$0xff] %v2517_v55  ;;  %v2480_v56 = vmul.f32 %v6440_v44, %v2441_v48  ;;  %v2386_v28 = vadd.f32 1e-05, %v2354_v45 }
 0x6a4   : > { %v4794_v5 = vpop.eup %4793  ;;  %v2520_v30 = vadd.f32 %v6448_v41, %v2481_v10  ;;  %v2444_v15 = vmul.f32 %v4792_v58, %v6305_v13  ;;  %v2385_v12 = vadd.f32 1e-05, %v2353_v19  ;;  %v2314_v43 = vpop.xlane.xlu1 %2313 }
 0x6a5   : > { %v2312_v8 = vpop.xlane.xlu0 %2311  ;;  %v2519_v31 = vadd.f32 %v6448_v41, %v2480_v56  ;;  %v2443_v50 = vmul.f32 %v4794_v5, %v6300_v16  ;;  %4803 = vrsqrt.f32 %v2386_v28  ;;  %v2356_v25 = vmul.f32 0.03125, %v2314_v43 }
 0x6a6   : > { %2552 = vst [vmem:[#allocation2 + $0x58] sm:$0xff] %v2520_v30  ;;  %v2483_v18 = vmul.f32 %v6440_v44, %v2444_v15  ;;  %4805 = vrsqrt.f32 %v2385_v12  ;;  %v2355_v57 = vmul.f32 0.03125, %v2312_v8 }
 0x6a7   : > { %v4796_v59 = vpop.eup %4795  ;;  %2551 = vst [vmem:[#allocation2 + $0x50] sm:$0xff] %v2519_v31  ;;  %v2482_v36 = vmul.f32 %v6440_v44, %v2443_v50  ;;  %v2388_v32 = vadd.f32 1e-05, %v2356_v25 }
 0x6a8   : > { %v4798_v13 = vpop.eup %4797  ;;  %v2522_v33 = vadd.f32 %v6448_v41, %v2483_v18  ;;  %v2446_v51 = vmul.f32 %v4796_v59, %v6319_v21  ;;  %v2387_v20 = vadd.f32 1e-05, %v2355_v57  ;;  %v2318_v35 = vpop.xlane.xlu1 %2317 }
 0x6a9   : > { %v2316_v16 = vpop.xlane.xlu0 %2315  ;;  %v2521_v11 = vadd.f32 %v6448_v41, %v2482_v36  ;;  %v2445_v54 = vmul.f32 %v4798_v13, %v6314_v24  ;;  %4807 = vrsqrt.f32 %v2388_v32  ;;  %v2358_v60 = vmul.f32 0.03125, %v2318_v35 }
 0x6aa   : > { %2554 = vst [vmem:[#allocation2 + $0x68] sm:$0xff] %v2522_v33  ;;  %v2485_v40 = vmul.f32 %v6440_v44, %v2446_v51  ;;  %4809 = vrsqrt.f32 %v2387_v20  ;;  %v2357_v26 = vmul.f32 0.03125, %v2316_v16 }
 0x6ab   : > { %v4800_v63 = vpop.eup %4799  ;;  %2553 = vst [vmem:[#allocation2 + $0x60] sm:$0xff] %v2521_v11  ;;  %v2484_v2 = vmul.f32 %v6440_v44, %v2445_v54  ;;  %v2390_v27 = vadd.f32 1e-05, %v2358_v60 }
 0x6ac   : > { %v4802_v21 = vpop.eup %4801  ;;  %v2524_v3 = vadd.f32 %v6448_v41, %v2485_v40  ;;  %v2448_v49 = vmul.f32 %v4800_v63, %v6333_v29  ;;  %v2389_v61 = vadd.f32 1e-05, %v2357_v26  ;;  %v2322_v14 = vpop.xlane.xlu1 %2321 }
 0x6ad   : > { %v2320_v24 = vpop.xlane.xlu0 %2319  ;;  %v2523_v39 = vadd.f32 %v6448_v41, %v2484_v2  ;;  %v2447_v4 = vmul.f32 %v4802_v21, %v6328_v37  ;;  %4811 = vrsqrt.f32 %v2390_v27  ;;  %v2360_v42 = vmul.f32 0.03125, %v2322_v14 }
 0x6ae   : > { %2556 = vst [vmem:[#allocation2 + $0x78] sm:$0xff] %v2524_v3  ;;  %v2487_v0 = vmul.f32 %v6440_v44, %v2448_v49  ;;  %4813 = vrsqrt.f32 %v2389_v61  ;;  %v2359_v55 = vmul.f32 0.03125, %v2320_v24 }
 0x6af   : > { %v4804_v48 = vpop.eup %4803  ;;  %2555 = vst [vmem:[#allocation2 + $0x70] sm:$0xff] %v2523_v39  ;;  %v2486_v45 = vmul.f32 %v6440_v44, %v2447_v4  ;;  %v2392_v10 = vadd.f32 1e-05, %v2360_v42 }
 0x6b0   : > { %v4806_v29 = vpop.eup %4805  ;;  %v2526_v19 = vadd.f32 %v6448_v41, %v2487_v0  ;;  %v2450_v58 = vmul.f32 %v4804_v48, %v6347_v46  ;;  %v2391_v56 = vadd.f32 1e-05, %v2359_v55  ;;  %v2326_v28 = vpop.xlane.xlu1 %2325 }
 0x6b1   : > { %v2324_v37 = vpop.xlane.xlu0 %2323  ;;  %v2525_v5 = vadd.f32 %v6448_v41, %v2486_v45  ;;  %v2449_v30 = vmul.f32 %v4806_v29, %v6342_v53  ;;  %4815 = vrsqrt.f32 %v2392_v10  ;;  %v2362_v15 = vmul.f32 0.03125, %v2326_v28 }
 0x6b2   : > { %2558 = vst [vmem:[#allocation2 + $0x88] sm:$0xff] %v2526_v19  ;;  %v2489_v12 = vmul.f32 %v6440_v44, %v2450_v58  ;;  %4817 = vrsqrt.f32 %v2391_v56  ;;  %v2361_v43 = vmul.f32 0.03125, %v2324_v37 }
 0x6b3   : > { %v4808_v8 = vpop.eup %4807  ;;  %2557 = vst [vmem:[#allocation2 + $0x80] sm:$0xff] %v2525_v5  ;;  %v2488_v31 = vmul.f32 %v6440_v44, %v2449_v30  ;;  %v2394_v50 = vadd.f32 1e-05, %v2362_v15 }
 0x6b4   : > { %v4810_v46 = vpop.eup %4809  ;;  %v2528_v25 = vadd.f32 %v6448_v41, %v2489_v12  ;;  %v2452_v18 = vmul.f32 %v4808_v8, %v6361_v1  ;;  %v2393_v57 = vadd.f32 1e-05, %v2361_v43  ;;  %v2330_v59 = vpop.xlane.xlu1 %2329 }
 0x6b5   : > { %v2328_v53 = vpop.xlane.xlu0 %2327  ;;  %v2527_v36 = vadd.f32 %v6448_v41, %v2488_v31  ;;  %v2451_v32 = vmul.f32 %v4810_v46, %v6356_v7  ;;  %4819 = vrsqrt.f32 %v2394_v50  ;;  %v2364_v13 = vmul.f32 0.03125, %v2330_v59 }
 0x6b6   : > { %2560 = vst [vmem:[#allocation2 + $0x98] sm:$0xff] %v2528_v25  ;;  %v2491_v33 = vmul.f32 %v6440_v44, %v2452_v18  ;;  %4821 = vrsqrt.f32 %v2393_v57  ;;  %v2363_v51 = vmul.f32 0.03125, %v2328_v53 }
 0x6b7   : > { %v4812_v20 = vpop.eup %4811  ;;  %2559 = vst [vmem:[#allocation2 + $0x90] sm:$0xff] %v2527_v36  ;;  %v2490_v35 = vmul.f32 %v6440_v44, %v2451_v32  ;;  %v2396_v16 = vadd.f32 1e-05, %v2364_v13 }
 0x6b8   : > { %v4814_v1 = vpop.eup %4813  ;;  %v2530_v11 = vadd.f32 %v6448_v41, %v2491_v33  ;;  %v2454_v54 = vmul.f32 %v4812_v20, %v6375_v17  ;;  %v2395_v60 = vadd.f32 1e-05, %v2363_v51  ;;  %v2334_v40 = vpop.xlane.xlu1 %2333 }
 0x6b9   : > { %v2332_v7 = vpop.xlane.xlu0 %2331  ;;  %v2529_v26 = vadd.f32 %v6448_v41, %v2490_v35  ;;  %v2453_v63 = vmul.f32 %v4814_v1, %v6370_v23  ;;  %4823 = vrsqrt.f32 %v2396_v16  ;;  %v2366_v2 = vmul.f32 0.03125, %v2334_v40 }
 0x6ba   : > { %2562 = vst [vmem:[#allocation2 + $0xa8] sm:$0xff] %v2530_v11  ;;  %v2493_v27 = vmul.f32 %v6440_v44, %v2454_v54  ;;  %4825 = vrsqrt.f32 %v2395_v60  ;;  %v2365_v21 = vmul.f32 0.03125, %v2332_v7 }
 0x6bb   : > { %v4816_v3 = vpop.eup %4815  ;;  %2561 = vst [vmem:[#allocation2 + $0xa0] sm:$0xff] %v2529_v26  ;;  %v2492_v49 = vmul.f32 %v6440_v44, %v2453_v63  ;;  %v2398_v61 = vadd.f32 1e-05, %v2366_v2 }
 0x6bc   : > { %v4818_v17 = vpop.eup %4817  ;;  %v2532_v14 = vadd.f32 %v6448_v41, %v2493_v27  ;;  %v2456_v24 = vmul.f32 %v4816_v3, %v6389_v38  ;;  %v2397_v39 = vadd.f32 1e-05, %v2365_v21 }
 0x6bd   : > { %v2531_v23 = vadd.f32 %v6448_v41, %v2492_v49  ;;  %v2455_v4 = vmul.f32 %v4818_v17, %v6384_v52  ;;  %4827 = vrsqrt.f32 %v2398_v61 }
 0x6be   : > { %2564 = vst [vmem:[#allocation2 + $0xb8] sm:$0xff] %v2532_v14  ;;  %v2495_v42 = vmul.f32 %v6440_v44, %v2456_v24  ;;  %4829 = vrsqrt.f32 %v2397_v39 }
 0x6bf   : > { %v4820_v0 = vpop.eup %4819  ;;  %2563 = vst [vmem:[#allocation2 + $0xb0] sm:$0xff] %v2531_v23  ;;  %v2494_v55 = vmul.f32 %v6440_v44, %v2455_v4 }
 0x6c0   : > { %v4822_v48 = vpop.eup %4821  ;;  %v2534_v45 = vadd.f32 %v6448_v41, %v2495_v42  ;;  %v2458_v10 = vmul.f32 %v4820_v0, %v6403_v9 }
 0x6c1   : > { %v2533_v38 = vadd.f32 %v6448_v41, %v2494_v55  ;;  %v2457_v29 = vmul.f32 %v4822_v48, %v6398_v22 }
 0x6c2   : > { %2566 = vst [vmem:[#allocation2 + $0xc8] sm:$0xff] %v2534_v45  ;;  %v2497_v52 = vmul.f32 %v6440_v44, %v2458_v10 }
 0x6c3   : > { %v4824_v19 = vpop.eup %4823  ;;  %2565 = vst [vmem:[#allocation2 + $0xc0] sm:$0xff] %v2533_v38  ;;  %v2496_v58 = vmul.f32 %v6440_v44, %v2457_v29 }
 0x6c4   : > { %v4826_v56 = vpop.eup %4825  ;;  %v2536_v28 = vadd.f32 %v6448_v41, %v2497_v52  ;;  %v2460_v37 = vmul.f32 %v4824_v19, %v6417_v47 }
 0x6c5   : > { %v2535_v5 = vadd.f32 %v6448_v41, %v2496_v58  ;;  %v2459_v9 = vmul.f32 %v4826_v56, %v6412_v34 }
 0x6c6   : > { %2568 = vst [vmem:[#allocation2 + $0xd8] sm:$0xff] %v2536_v28  ;;  %v2499_v30 = vmul.f32 %v6440_v44, %v2460_v37 }
 0x6c7   : > { %v4828_v22 = vpop.eup %4827  ;;  %2567 = vst [vmem:[#allocation2 + $0xd0] sm:$0xff] %v2535_v5  ;;  %v2498_v15 = vmul.f32 %v6440_v44, %v2459_v9 }
 0x6c8   : > { %v4830_v12 = vpop.eup %4829  ;;  %v2538_v43 = vadd.f32 %v6448_v41, %v2499_v30  ;;  %v2462_v8 = vmul.f32 %v4828_v22, %v6429_v6 }
 0x6c9   : > { %v2537_v31 = vadd.f32 %v6448_v41, %v2498_v15  ;;  %v2461_v47 = vmul.f32 %v4830_v12, %v6426_v62 }
 0x6ca   : > { %2570 = vst [vmem:[#allocation2 + $0xe8] sm:$0xff] %v2538_v43  ;;  %v2501_v50 = vmul.f32 %v6440_v44, %v2462_v8 }
 0x6cb   : > { %2569 = vst [vmem:[#allocation2 + $0xe0] sm:$0xff] %v2537_v31  ;;  %v2500_v34 = vmul.f32 %v6440_v44, %v2461_v47 }
 0x6cc   : > { %v2540_v46 = vadd.f32 %v6448_v41, %v2501_v50 }
 0x6cd   : > { %v2539_v25 = vadd.f32 %v6448_v41, %v2500_v34 }
 0x6ce   : > { %2572 = vst [vmem:[#allocation2 + $0xf8] sm:$0xff] %v2540_v46 }
 0x6cf   : > { %2571 = vst [vmem:[#allocation2 + $0xf0] sm:$0xff] %v2539_v25 }
 0x6d0 PF: > { %2574 = sbr.rel (%p5797_p5) target bundleno = 2724 (0xaa4), region = 140  ;;  %v2619_v6 = vlaneseq (!%p5797_p5)  ;;  %s6982_s1 = sld [smem:[#allocation51_spill]] (!%p5797_p5)  ;;  %vm3217_vm0 = vcmask (!%p5797_p5), 1041408   ;;  %v2577_v20 = vld [vmem:[#allocation2 + $0x10] sm:$0xff] (!%p5797_p5)  ;;  %v2575_v35 = vld [vmem:[#allocation2] sm:$0xff] (!%p5797_p5)  ;;  %v2578_v40 = vld [vmem:[#allocation2 + $0x18] sm:$0xff] (!%p5797_p5) }
 0x6d1   : > { %v2576_v7 = vld [vmem:[#allocation2 + $0x8] sm:$0xff] (!%p5797_p5)  ;;  %v3232_v61 = vld [vmem:[#allocation13] sm:$0xff] (!%p5797_p5)  ;;  %v3234_v14 = vld [vmem:[#allocation13 + $0x10] sm:$0xff] (!%p5797_p5)  ;;  %v5232_v39 = vmov (!%p5797_p5), 0.0|0.0   ;;  %s6983_s0 = sld [smem:[#allocation53_spill]] (!%p5797_p5)  ;;  %s6984_s17 = sld [smem:[#allocation55_spill]] (!%p5797_p5) }
 0x6d2   : > { %v2620_v18 = vshrl.u32 (!%p5797_p5), %v2619_v6, 7  ;;  %v3233_v17 = vld [vmem:[#allocation13 + $0x8] sm:$0xff] (!%p5797_p5)  ;;  %4468 = vmatprep.subr.bf16.mxu0 (!%p5797_p5), %v5232_v39  ;;  %v3235_v23 = vld [vmem:[#allocation13 + $0x18] sm:$0xff] (!%p5797_p5)  ;;  %4492 = vmatprep.subr.bf16.mxu1 (!%p5797_p5), %v5232_v39  ;;  %v3236_v48 = vld [vmem:[#allocation13 + $0x20] sm:$0xff] (!%p5797_p5)  ;;  %s6985_s2 = sld [smem:[#allocation57_spill]] (!%p5797_p5) }
 0x6d3   : > { %v4469_v24 = vpack.c.bf16 (!%p5797_p5), %v3233_v17, %v3232_v61  ;;  %v4472_v55 = vpack.c.bf16 (!%p5797_p5), %v3235_v23, %v3234_v14  ;;  %v3237_v45 = vld [vmem:[#allocation13 + $0x28] sm:$0xff] (!%p5797_p5)  ;;  %v2579_v56 = vld [vmem:[#allocation2 + $0x20] sm:$0xff] (!%p5797_p5)  ;;  %v3238_v9 = vld [vmem:[#allocation13 + $0x30] sm:$0xff] (!%p5797_p5) }
 0x6d4   : > { %v2621_v57 = vsub.s32 (!%p5797_p5), 0, %v2620_v18  ;;  %v2755_v44 = vsub.s32 (!%p5797_p5), 1, %v2620_v18  ;;  %v2580_v58 = vld [vmem:[#allocation2 + $0x28] sm:$0xff] (!%p5797_p5)  ;;  %v4475_v5 = vpack.c.bf16 (!%p5797_p5), %v3237_v45, %v3236_v48  ;;  %v3239_v30 = vld [vmem:[#allocation13 + $0x38] sm:$0xff] (!%p5797_p5)  ;;  %v3240_v50 = vld [vmem:[#allocation13 + $0x40] sm:$0xff] (!%p5797_p5) }
 0x6d5   : > { %4470 = vmatpush3.bf16.msra.mxu0 (!%p5797_p5), %v4469_v24  ;;  %v4478_v47 = vpack.c.bf16 (!%p5797_p5), %v3239_v30, %v3238_v9  ;;  %v3241_v34 = vld [vmem:[#allocation13 + $0x48] sm:$0xff] (!%p5797_p5)  ;;  %v3246_v17 = vld [vmem:[#allocation13 + $0x70] sm:$0xff] (!%p5797_p5)  ;;  %v3247_v14 = vld [vmem:[#allocation13 + $0x78] sm:$0xff] (!%p5797_p5) }
 0x6d6   : > { %v3771_v62 = vld.sshfl [vmem:[%s6982_s1] sm:$0x33 pattern:$0x76325410] (!%p5797_p5)  ;;  %4471 = vmatprep.subr.bf16.mxu0 (!%p5797_p5), %v5232_v39  ;;  %v4490_v48 = vpack.c.bf16 (!%p5797_p5), %v3247_v14, %v3246_v17 }
 0x6d7   : > { %v2622_v59 = vrot.slane %v3771_v62, %v2621_v57  ;;  %v2756_v41 = vrot.slane %v3771_v62, %v2755_v44  ;;  %v2616_v53 = vcombine.high %v3771_v62, %v3771_v62  ;;  %v6550_v36 = vsel %vm3217_vm0, %v3771_v62, -inf  ;;  %v2582_v62 = vld [vmem:[#allocation2 + $0x38] sm:$0xff] }
 0x6d9   : > { %2632 = vbcast.lane.b32.xlu1 %v2622_v59, 272  ;;  %2624 = vbcast.lane.b32.xlu0 %v2622_v59, 256  ;;  %v6552_v32 = vsel %vm3217_vm0, %v2616_v53, -inf  ;;  %v2689_v33 = vrot.slane %v2616_v53, %v2621_v57  ;;  %v2823_v51 = vrot.slane %v2616_v53, %v2755_v44  ;;  %v2581_v57 = vld [vmem:[#allocation2 + $0x30] sm:$0xff] }
 0x6da   : > { %v3220_v13 = vmax.f32 %v6550_v36, %v6552_v32  ;;  %4473 = vmatpush3.bf16.msra.mxu0 %v4472_v55  ;;  %v3242_v53 = vld [vmem:[#allocation13 + $0x50] sm:$0xff] }
 0x6db   : > { %4474 = vmatprep.subr.bf16.mxu0 %v5232_v39 }
 0x6dd   : > { %2636 = vbcast.lane.b32.xlu1 %v2622_v59, 280  ;;  %2628 = vbcast.lane.b32.xlu0 %v2622_v59, 264 }
 0x6de   : > { %4476 = vmatpush3.bf16.msra.mxu0 %v4475_v5 }
 0x6df   : > { %4477 = vmatprep.subr.bf16.mxu0 %v5232_v39 }
 0x6e1   : > { %2762 = vbcast.lane.b32.xlu1 %v2756_v41, 264  ;;  %2758 = vbcast.lane.b32.xlu0 %v2756_v41, 256 }
 0x6e2   : > { %4479 = vmatpush3.bf16.msra.mxu0 %v4478_v47  ;;  %v3327_v47 = vld [vmem:[#allocation15 + $0x8] sm:$0xff] }
 0x6e3   : > { %4480 = vmatprep.subr.bf16.mxu0 %v5232_v39 }
 0x6e5   : > { %2770 = vbcast.lane.b32.xlu1 %v2756_v41, 280  ;;  %2766 = vbcast.lane.b32.xlu0 %v2756_v41, 272 }
 0x6e9   : > { %2644 = vbcast.lane.b32.xlu1 %v2622_v59, 296  ;;  %2640 = vbcast.lane.b32.xlu0 %v2622_v59, 288 }
 0x6ed   : > { %2778 = vbcast.lane.b32.xlu1 %v2756_v41, 296  ;;  %2774 = vbcast.lane.b32.xlu0 %v2756_v41, 288 }
 0x6f1   : > { %2652 = vbcast.lane.b32.xlu1 %v2622_v59, 312  ;;  %2648 = vbcast.lane.b32.xlu0 %v2622_v59, 304 }
 0x6f5   : > { %2786 = vbcast.lane.b32.xlu1 %v2756_v41, 312  ;;  %2782 = vbcast.lane.b32.xlu0 %v2756_v41, 304 }
 0x6f9   : > { %2660 = vbcast.lane.b32.xlu1 %v2622_v59, 328  ;;  %2656 = vbcast.lane.b32.xlu0 %v2622_v59, 320 }
 0x6fd   : > { %2794 = vbcast.lane.b32.xlu1 %v2756_v41, 328  ;;  %2790 = vbcast.lane.b32.xlu0 %v2756_v41, 320 }
 0x701   : > { %2668 = vbcast.lane.b32.xlu1 %v2622_v59, 344  ;;  %2664 = vbcast.lane.b32.xlu0 %v2622_v59, 336 }
 0x705   : > { %2802 = vbcast.lane.b32.xlu1 %v2756_v41, 344  ;;  %2798 = vbcast.lane.b32.xlu0 %v2756_v41, 336 }
 0x709   : > { %2676 = vbcast.lane.b32.xlu1 %v2622_v59, 360  ;;  %2672 = vbcast.lane.b32.xlu0 %v2622_v59, 352 }
 0x70d   : > { %2810 = vbcast.lane.b32.xlu1 %v2756_v41, 360  ;;  %2806 = vbcast.lane.b32.xlu0 %v2756_v41, 352 }
 0x711   : > { %2684 = vbcast.lane.b32.xlu1 %v2622_v59, 376  ;;  %2680 = vbcast.lane.b32.xlu0 %v2622_v59, 368 }
 0x715   : > { %2818 = vbcast.lane.b32.xlu1 %v2756_v41, 376  ;;  %2814 = vbcast.lane.b32.xlu0 %v2756_v41, 368  ;;  %v4481_v41 = vpack.c.bf16 %v3241_v34, %v3240_v50  ;;  %v3328_v50 = vld [vmem:[#allocation15 + $0x10] sm:$0xff] }
 0x717   : > { %4482 = vmatpush3.bf16.msra.mxu0 %v4481_v41 }
 0x718   : > { %4483 = vmatprep.subr.bf16.mxu0 %v5232_v39 }
 0x719   : > { %2695 = vbcast.lane.b32.xlu1 %v2689_v33, 264  ;;  %2691 = vbcast.lane.b32.xlu0 %v2689_v33, 256 }
 0x71d   : > { %2829 = vbcast.lane.b32.xlu1 %v2823_v51, 264  ;;  %2825 = vbcast.lane.b32.xlu0 %v2823_v51, 256 }
 0x721   : > { %2703 = vbcast.lane.b32.xlu1 %v2689_v33, 280  ;;  %2699 = vbcast.lane.b32.xlu0 %v2689_v33, 272 }
 0x725   : > { %2837 = vbcast.lane.b32.xlu1 %v2823_v51, 280  ;;  %2833 = vbcast.lane.b32.xlu0 %v2823_v51, 272 }
 0x729   : > { %2711 = vbcast.lane.b32.xlu1 %v2689_v33, 296  ;;  %2707 = vbcast.lane.b32.xlu0 %v2689_v33, 288 }
 0x72d   : > { %2845 = vbcast.lane.b32.xlu1 %v2823_v51, 296  ;;  %2841 = vbcast.lane.b32.xlu0 %v2823_v51, 288 }
 0x731   : > { %2719 = vbcast.lane.b32.xlu1 %v2689_v33, 312  ;;  %2715 = vbcast.lane.b32.xlu0 %v2689_v33, 304 }
 0x735   : > { %2853 = vbcast.lane.b32.xlu1 %v2823_v51, 312  ;;  %2849 = vbcast.lane.b32.xlu0 %v2823_v51, 304 }
 0x739   : > { %2727 = vbcast.lane.b32.xlu1 %v2689_v33, 328  ;;  %2723 = vbcast.lane.b32.xlu0 %v2689_v33, 320 }
 0x73d   : > { %2861 = vbcast.lane.b32.xlu1 %v2823_v51, 328  ;;  %2857 = vbcast.lane.b32.xlu0 %v2823_v51, 320 }
 0x741   : > { %2735 = vbcast.lane.b32.xlu1 %v2689_v33, 344  ;;  %2731 = vbcast.lane.b32.xlu0 %v2689_v33, 336 }
 0x745   : > { %2869 = vbcast.lane.b32.xlu1 %v2823_v51, 344  ;;  %2865 = vbcast.lane.b32.xlu0 %v2823_v51, 336 }
 0x749   : > { %2743 = vbcast.lane.b32.xlu1 %v2689_v33, 360  ;;  %2739 = vbcast.lane.b32.xlu0 %v2689_v33, 352 }
 0x74b   : > { %v2633_v16 = vpop.permute.xlu1 %2632  ;;  %v2625_v1 = vpop.permute.xlu0 %2624 }
 0x74c   : > { %vm2889_vm1 = vcmp.gt.f32.partialorder %v2633_v16, 0.5  ;;  %vm2887_vm2 = vcmp.gt.f32.partialorder %v2625_v1, 0.5 }
 0x74d   : > { %v3081_v11 = vsel %vm2889_vm1, %v2577_v20, -3.4028235e+38  ;;  %v3079_v54 = vsel %vm2887_vm2, %v2575_v35, -3.4028235e+38  ;;  %2877 = vbcast.lane.b32.xlu1 %v2823_v51, 360  ;;  %2873 = vbcast.lane.b32.xlu0 %v2823_v51, 352 }
 0x74e   : > { %v3143_v60 = vmax.f32 %v3079_v54, %v3081_v11 }
 0x74f   : > { %v2637_v26 = vpop.permute.xlu1 %2636  ;;  %v2629_v63 = vpop.permute.xlu0 %2628 }
 0x750   : > { %vm2890_vm3 = vcmp.gt.f32.partialorder %v2637_v26, 0.5  ;;  %vm2888_vm4 = vcmp.gt.f32.partialorder %v2629_v63, 0.5 }
 0x751   : > { %v3082_v2 = vsel %vm2890_vm3, %v2578_v40, -3.4028235e+38  ;;  %v3080_v27 = vsel %vm2888_vm4, %v2576_v7, -3.4028235e+38  ;;  %2751 = vbcast.lane.b32.xlu1 %v2689_v33, 376  ;;  %2747 = vbcast.lane.b32.xlu0 %v2689_v33, 368 }
 0x752   : > { %v3144_v21 = vmax.f32 %v3080_v27, %v3082_v2  ;;  %v3243_v33 = vld [vmem:[#allocation13 + $0x58] sm:$0xff]  ;;  %v2584_v27 = vld [vmem:[#allocation2 + $0x48] sm:$0xff] }
 0x753   : > { %v2763_v3 = vpop.permute.xlu1 %2762  ;;  %v2759_v49 = vpop.permute.xlu0 %2758  ;;  %v4484_v54 = vpack.c.bf16 %v3243_v33, %v3242_v53  ;;  %v3332_v53 = vld [vmem:[#allocation15 + $0x30] sm:$0xff]  ;;  %v3333_v33 = vld [vmem:[#allocation15 + $0x38] sm:$0xff] }
 0x754   : > { %vm2920_vm5 = vcmp.gt.f32.partialorder %v2763_v3, 0.5  ;;  %vm2919_vm6 = vcmp.gt.f32.partialorder %v2759_v49, 0.5 }
 0x755   : > { %2885 = vbcast.lane.b32.xlu1 %v2823_v51, 376  ;;  %2881 = vbcast.lane.b32.xlu0 %v2823_v51, 368  ;;  %v3112_v4 = vsel %vm2920_vm5, %v2576_v7, -3.4028235e+38  ;;  %v3111_v10 = vsel %vm2919_vm6, %v2575_v35, -3.4028235e+38 }
 0x756   : > { %4485 = vmatpush3.bf16.msra.mxu0 %v4484_v54 }
 0x757   : > { %v2771_v42 = vpop.permute.xlu1 %2770  ;;  %v2767_v0 = vpop.permute.xlu0 %2766  ;;  %4486 = vmatprep.subr.bf16.mxu0 %v5232_v39 }
 0x758   : > { %vm2922_vm7 = vcmp.gt.f32.partialorder %v2771_v42, 0.5  ;;  %vm2921_vm8 = vcmp.gt.f32.partialorder %v2767_v0, 0.5 }
 0x759   : > { %v3114_v38 = vsel %vm2922_vm7, %v2578_v40, -3.4028235e+38  ;;  %v3113_v29 = vsel %vm2921_vm8, %v2577_v20, -3.4028235e+38  ;;  %v3245_v40 = vld [vmem:[#allocation13 + $0x68] sm:$0xff]  ;;  %vm5233_vm7 = vmmov 0  }
 0x75a   : > { %v3181_v52 = vmax.f32 %v3112_v4, %v3114_v38  ;;  %v3180_v19 = vmax.f32 %v3111_v10, %v3113_v29 }
 0x75b   : > { %v2645_v28 = vpop.permute.xlu1 %2644  ;;  %v2641_v37 = vpop.permute.xlu0 %2640 }
 0x75c   : > { %vm2892_vm9 = vcmp.gt.f32.partialorder %v2645_v28, 0.5  ;;  %vm2891_vm10 = vcmp.gt.f32.partialorder %v2641_v37, 0.5 }
 0x75d   : > { %v3084_v22 = vsel %vm2892_vm9, %v2580_v58, -3.4028235e+38  ;;  %v3083_v15 = vsel %vm2891_vm10, %v2579_v56, -3.4028235e+38 }
 0x75e   : > { %v3146_v12 = vmax.f32 %v3144_v21, %v3084_v22  ;;  %v3145_v43 = vmax.f32 %v3143_v60, %v3083_v15  ;;  %v3244_v60 = vld [vmem:[#allocation13 + $0x60] sm:$0xff] }
 0x75f   : > { %v2779_v8 = vpop.permute.xlu1 %2778  ;;  %v2775_v31 = vpop.permute.xlu0 %2774  ;;  %v2583_v21 = vld [vmem:[#allocation2 + $0x40] sm:$0xff]  ;;  %v4487_v61 = vpack.c.bf16 %v3245_v40, %v3244_v60  ;;  %v3336_v40 = vld [vmem:[#allocation15 + $0x50] sm:$0xff] }
 0x760   : > { %vm2924_vm11 = vcmp.gt.f32.partialorder %v2779_v8, 0.5  ;;  %vm2923_vm12 = vcmp.gt.f32.partialorder %v2775_v31, 0.5  ;;  %v3326_v31 = vld [vmem:[#allocation15] sm:$0xff] }
 0x761   : > { %v3116_v46 = vsel %vm2924_vm11, %v2580_v58, -3.4028235e+38  ;;  %v3115_v25 = vsel %vm2923_vm12, %v2579_v56, -3.4028235e+38  ;;  %4488 = vmatpush3.bf16.msra.mxu0 %v4487_v61  ;;  %v4493_v34 = vpack.c.bf16 %v3327_v47, %v3326_v31 }
 0x762   : > { %v3183_v6 = vmax.f32 %v3181_v52, %v3116_v46  ;;  %v3182_v18 = vmax.f32 %v3180_v19, %v3115_v25  ;;  %4489 = vmatprep.subr.bf16.mxu0 %v5232_v39  ;;  %v6573_v52 = vld [vmem:[#allocation2 + $0x58] sm:$0xff]  ;;  %v6575_v19 = vld [vmem:[#allocation2 + $0x50] sm:$0xff] }
 0x763   : > { %v2653_v59 = vpop.permute.xlu1 %2652  ;;  %v2649_v44 = vpop.permute.xlu0 %2648  ;;  %v3329_v46 = vld [vmem:[#allocation15 + $0x18] sm:$0xff]  ;;  %4494 = vmatpush3.bf16.msra.mxu1 %v4493_v34 }
 0x764   : > { %vm2894_vm13 = vcmp.gt.f32.partialorder %v2653_v59, 0.5  ;;  %vm2893_vm14 = vcmp.gt.f32.partialorder %v2649_v44, 0.5  ;;  %v4496_v25 = vpack.c.bf16 %v3329_v46, %v3328_v50  ;;  %4495 = vmatprep.subr.bf16.mxu1 %v5232_v39  ;;  %v2592_v50 = vld [vmem:[#allocation2 + $0x88] sm:$0xff]  ;;  %v2591_v46 = vld [vmem:[#allocation2 + $0x80] sm:$0xff] }
 0x765   : > { %v3086_v51 = vsel %vm2894_vm13, %v2582_v62, -3.4028235e+38  ;;  %v3085_v20 = vsel %vm2893_vm14, %v2581_v57, -3.4028235e+38  ;;  %4491 = vmatpush3.bf16.msra.mxu0 %v4490_v48 }
 0x766   : > { %v3148_v35 = vmax.f32 %v3146_v12, %v3086_v51  ;;  %v3147_v16 = vmax.f32 %v3145_v43, %v3085_v20  ;;  %4516 = vmatprep.subr.bf16.mxu0 %v5232_v39  ;;  %v5234_v12 = vmov 0.0   ;;  %v4502_v51 = vpack.c.bf16 %v3333_v33, %v3332_v53  ;;  %v2596_v33 = vld [vmem:[#allocation2 + $0xa8] sm:$0xff] }
 0x767   : > { %v2787_v1 = vpop.permute.xlu1 %2786  ;;  %v2783_v11 = vpop.permute.xlu0 %2782  ;;  %4299 = vmatprep.mubr.msk.f32.mxu0 %vm5233_vm7, %v5234_v12  ;;  %4334 = vmatprep.mubr.msk.f32.mxu1 %vm5233_vm7, %v5234_v12 }
 0x768   : > { %vm2926_vm15 = vcmp.gt.f32.partialorder %v2787_v1, 0.5  ;;  %vm2925_vm0 = vcmp.gt.f32.partialorder %v2783_v11, 0.5  ;;  %4497 = vmatpush3.bf16.msra.mxu1 %v4496_v25  ;;  %v3335_v1 = vld [vmem:[#allocation15 + $0x48] sm:$0xff] }
 0x769   : > { %v3118_v7 = vsel %vm2926_vm15, %v2582_v62, -3.4028235e+38  ;;  %v3117_v26 = vsel %vm2925_vm0, %v2581_v57, -3.4028235e+38  ;;  %v3330_v62 = vld [vmem:[#allocation15 + $0x20] sm:$0xff]  ;;  %v3331_v57 = vld [vmem:[#allocation15 + $0x28] sm:$0xff]  ;;  %4498 = vmatprep.subr.bf16.mxu1 %v5232_v39 }
 0x76a   : > { %v3185_v63 = vmax.f32 %v3183_v6, %v3118_v7  ;;  %v3184_v2 = vmax.f32 %v3182_v18, %v3117_v26  ;;  %v4499_v59 = vpack.c.bf16 %v3331_v57, %v3330_v62  ;;  %v3337_v7 = vld [vmem:[#allocation15 + $0x58] sm:$0xff] }
 0x76b   : > { %v2661_v3 = vpop.permute.xlu1 %2660  ;;  %v2657_v49 = vpop.permute.xlu0 %2656  ;;  %v4508_v26 = vpack.c.bf16 %v3337_v7, %v3336_v40 }
 0x76c   : > { %vm2896_vm1 = vcmp.gt.f32.partialorder %v2661_v3, 0.5  ;;  %vm2895_vm2 = vcmp.gt.f32.partialorder %v2657_v49, 0.5  ;;  %4500 = vmatpush3.bf16.msra.mxu1 %v4499_v59 }
 0x76d   : > { %v3088_v24 = vsel %vm2896_vm1, %v2584_v27, -3.4028235e+38  ;;  %v3087_v23 = vsel %vm2895_vm2, %v2583_v21, -3.4028235e+38  ;;  %4501 = vmatprep.subr.bf16.mxu1 %v5232_v39 }
 0x76e   : > { %v6564_v4 = vmax.f32 %v3148_v35, %v3088_v24  ;;  %v6566_v42 = vmax.f32 %v3147_v16, %v3087_v23  ;;  %v3334_v16 = vld [vmem:[#allocation15 + $0x40] sm:$0xff] }
 0x76f   : > { %v2795_v0 = vpop.permute.xlu1 %2794  ;;  %v2791_v55 = vpop.permute.xlu0 %2790  ;;  %v4505_v11 = vpack.c.bf16 %v3335_v1, %v3334_v16  ;;  %v2595_v1 = vld [vmem:[#allocation2 + $0xa0] sm:$0xff] }
 0x770   : > { %vm2928_vm3 = vcmp.gt.f32.partialorder %v2795_v0, 0.5  ;;  %vm2927_vm4 = vcmp.gt.f32.partialorder %v2791_v55, 0.5  ;;  %4503 = vmatpush3.bf16.msra.mxu1 %v4502_v51 }
 0x771   : > { %v3120_v45 = vsel %vm2928_vm3, %v2584_v27, -3.4028235e+38  ;;  %v3119_v10 = vsel %vm2927_vm4, %v2583_v21, -3.4028235e+38  ;;  %4504 = vmatprep.subr.bf16.mxu1 %v5232_v39  ;;  %v3338_v27 = vld [vmem:[#allocation15 + $0x60] sm:$0xff]  ;;  %v3339_v21 = vld [vmem:[#allocation15 + $0x68] sm:$0xff] }
 0x772   : > { %v6569_v38 = vmax.f32 %v3185_v63, %v3120_v45  ;;  %v6571_v29 = vmax.f32 %v3184_v2, %v3119_v10  ;;  %v4511_v3 = vpack.c.bf16 %v3339_v21, %v3338_v27  ;;  %v2588_v45 = vld [vmem:[#allocation2 + $0x68] sm:$0xff] }
 0x773   : > { %v2669_v58 = vpop.permute.xlu1 %2668  ;;  %v2665_v56 = vpop.permute.xlu0 %2664 }
 0x774   : > { %vm2898_vm5 = vcmp.gt.f32.partialorder %v2669_v58, 0.5  ;;  %vm2897_vm6 = vcmp.gt.f32.partialorder %v2665_v56, 0.5  ;;  %3221 = vmax.xlane.f32.xlu0 %v3220_v13  ;;  %4506 = vmatpush3.bf16.msra.mxu1 %v4505_v11  ;;  %v2587_v56 = vld [vmem:[#allocation2 + $0x60] sm:$0xff] }
 0x775   : > { %v6582_v28 = vsel %vm2898_vm5, %v6573_v52, -3.4028235e+38  ;;  %v6585_v37 = vsel %vm2897_vm6, %v6575_v19, -3.4028235e+38  ;;  %4507 = vmatprep.subr.bf16.mxu1 %v5232_v39 }
 0x776   : > { %v3152_v5 = vmax.f32 %v6564_v4, %v6582_v28  ;;  %v3151_v9 = vmax.f32 %v6566_v42, %v6585_v37 }
 0x777   : > { %v6591_v30 = vpop.permute.xlu1 %2802  ;;  %v6593_v22 = vpop.permute.xlu0 %2798 }
 0x778   : > { %4509 = vmatpush3.bf16.msra.mxu1 %v4508_v26  ;;  %vm2930_vm8 = vcmp.gt.f32.partialorder %v6591_v30, 0.5  ;;  %vm2929_vm9 = vcmp.gt.f32.partialorder %v6593_v22, 0.5 }
 0x779   : > { %4510 = vmatprep.subr.bf16.mxu1 %v5232_v39  ;;  %v3122_v0 = vsel %vm2930_vm8, %v6573_v52, -3.4028235e+38  ;;  %v3121_v58 = vsel %vm2929_vm9, %v6575_v19, -3.4028235e+38  ;;  %v2590_v52 = vld [vmem:[#allocation2 + $0x78] sm:$0xff] }
 0x77a   : > { %v3189_v10 = vmax.f32 %v6569_v38, %v3122_v0  ;;  %v3188_v19 = vmax.f32 %v6571_v29, %v3121_v58 }
 0x77b   : > { %v6595_v36 = vpop.permute.xlu1 %2676  ;;  %v6597_v32 = vpop.permute.xlu0 %2672 }
 0x77c   : > { %4512 = vmatpush3.bf16.msra.mxu1 %v4511_v3  ;;  %vm2900_vm11 = vcmp.gt.f32.partialorder %v6595_v36, 0.5  ;;  %vm2899_vm12 = vcmp.gt.f32.partialorder %v6597_v32, 0.5  ;;  %v2597_v3 = vld [vmem:[#allocation2 + $0xb0] sm:$0xff] }
 0x77d   : > { %4513 = vmatprep.subr.bf16.mxu1 %v5232_v39  ;;  %v3092_v22 = vsel %vm2900_vm11, %v2588_v45, -3.4028235e+38  ;;  %v3091_v31 = vsel %vm2899_vm12, %v2587_v56, -3.4028235e+38 }
 0x77e   : > { %v3153_v29 = vmax.f32 %v3151_v9, %v3091_v31  ;;  %v2593_v9 = vld [vmem:[#allocation2 + $0x90] sm:$0xff] }
 0x77f   : > { %v6599_v13 = vpop.permute.xlu1 %2810  ;;  %v6601_v15 = vpop.permute.xlu0 %2806 }
 0x780   : > { %vm2932_vm10 = vcmp.gt.f32.partialorder %v6599_v13, 0.5  ;;  %vm2931_vm13 = vcmp.gt.f32.partialorder %v6601_v15, 0.5  ;;  %v2589_v13 = vld [vmem:[#allocation2 + $0x70] sm:$0xff] }
 0x781   : > { %v3124_v30 = vsel %vm2932_vm10, %v2588_v45, -3.4028235e+38  ;;  %v3123_v15 = vsel %vm2931_vm13, %v2587_v56, -3.4028235e+38  ;;  %v2600_v56 = vld [vmem:[#allocation2 + $0xc8] sm:$0xff] }
 0x782   : > { %v3191_v32 = vmax.f32 %v3189_v10, %v3124_v30  ;;  %v3190_v62 = vmax.f32 %v3188_v19, %v3123_v15  ;;  %v2602_v19 = vld [vmem:[#allocation2 + $0xd8] sm:$0xff] }
 0x783   : > { %v6607_v43 = vpop.permute.xlu1 %2684  ;;  %v6609_v8 = vpop.permute.xlu0 %2680 }
 0x784   : > { %vm2902_vm14 = vcmp.gt.f32.partialorder %v6607_v43, 0.5  ;;  %vm2901_vm15 = vcmp.gt.f32.partialorder %v6609_v8, 0.5  ;;  %v3154_v43 = vmax.f32 %v3152_v5, %v3092_v22  ;;  %v2599_v22 = vld [vmem:[#allocation2 + $0xc0] sm:$0xff] }
 0x785   : > { %v3094_v47 = vsel %vm2902_vm14, %v2590_v52, -3.4028235e+38  ;;  %v3093_v8 = vsel %vm2901_vm15, %v2589_v13, -3.4028235e+38 }
 0x786   : > { %v3156_v57 = vmax.f32 %v3154_v43, %v3094_v47  ;;  %v3155_v28 = vmax.f32 %v3153_v29, %v3093_v8  ;;  %v2601_v47 = vld [vmem:[#allocation2 + $0xd0] sm:$0xff]  ;;  %v2604_v43 = vld [vmem:[#allocation2 + $0xe8] sm:$0xff] }
 0x787   : > { %v6611_v6 = vpop.permute.xlu1 %2818  ;;  %v6613_v18 = vpop.permute.xlu0 %2814 }
 0x788   : > { %vm2934_vm0 = vcmp.gt.f32.partialorder %v6611_v6, 0.5  ;;  %vm2933_vm1 = vcmp.gt.f32.partialorder %v6613_v18, 0.5 }
 0x789   : > { %v3126_v34 = vsel %vm2934_vm0, %v2590_v52, -3.4028235e+38  ;;  %v3125_v25 = vsel %vm2933_vm1, %v2589_v13, -3.4028235e+38 }
 0x78a   : > { %v3193_v5 = vmax.f32 %v3191_v32, %v3126_v34  ;;  %v3192_v42 = vmax.f32 %v3190_v62, %v3125_v25 }
 0x78b   : > { %v6616_v44 = vpop.permute.xlu1 %2695  ;;  %v6618_v41 = vpop.permute.xlu0 %2691 }
 0x78c   : > { %vm2904_vm2 = vcmp.gt.f32.partialorder %v6616_v44, 0.5  ;;  %vm2903_vm3 = vcmp.gt.f32.partialorder %v6618_v41, 0.5  ;;  %v2594_v44 = vld [vmem:[#allocation2 + $0x98] sm:$0xff] }
 0x78d   : > { %v3096_v4 = vsel %vm2904_vm2, %v2592_v50, -3.4028235e+38  ;;  %v3095_v59 = vsel %vm2903_vm3, %v2591_v46, -3.4028235e+38 }
 0x78e   : > { %v3158_v41 = vmax.f32 %v3156_v57, %v3096_v4 }
 0x78f   : > { %v6621_v20 = vpop.permute.xlu1 %2829  ;;  %v6623_v35 = vpop.permute.xlu0 %2825 }
 0x790   : > { %vm2936_vm4 = vcmp.gt.f32.partialorder %v6621_v20, 0.5  ;;  %vm2935_vm5 = vcmp.gt.f32.partialorder %v6623_v35, 0.5  ;;  %v3157_v35 = vmax.f32 %v3155_v28, %v3095_v59 }
 0x791   : > { %v3128_v37 = vsel %vm2936_vm4, %v2592_v50, -3.4028235e+38  ;;  %v3127_v53 = vsel %vm2935_vm5, %v2591_v46, -3.4028235e+38  ;;  %v2603_v46 = vld [vmem:[#allocation2 + $0xe0] sm:$0xff] }
 0x792   : > { %v3195_v11 = vmax.f32 %v3193_v5, %v3128_v37  ;;  %v3194_v40 = vmax.f32 %v3192_v42, %v3127_v53  ;;  %v2606_v37 = vld [vmem:[#allocation2 + $0xf8] sm:$0xff] }
 0x793   : > { %v6626_v54 = vpop.permute.xlu1 %2703  ;;  %v6628_v60 = vpop.permute.xlu0 %2699 }
 0x794   : > { %vm2906_vm6 = vcmp.gt.f32.partialorder %v6626_v54, 0.5  ;;  %vm2905_vm8 = vcmp.gt.f32.partialorder %v6628_v60, 0.5 }
 0x795   : > { %v3098_v16 = vsel %vm2906_vm6, %v2594_v44, -3.4028235e+38  ;;  %v3097_v54 = vsel %vm2905_vm8, %v2593_v9, -3.4028235e+38 }
 0x797   : > { %v6631_v63 = vpop.permute.xlu1 %2837  ;;  %v6633_v2 = vpop.permute.xlu0 %2833 }
 0x798   : > { %vm2938_vm9 = vcmp.gt.f32.partialorder %v6631_v63, 0.5  ;;  %vm2937_vm10 = vcmp.gt.f32.partialorder %v6633_v2, 0.5  ;;  %v2598_v63 = vld [vmem:[#allocation2 + $0xb8] sm:$0xff]  ;;  %v3160_v2 = vmax.f32 %v3158_v41, %v3098_v16 }
 0x799   : > { %v3130_v60 = vsel %vm2938_vm9, %v2594_v44, -3.4028235e+38  ;;  %v3129_v7 = vsel %vm2937_vm10, %v2593_v9, -3.4028235e+38  ;;  %v2605_v9 = vld [vmem:[#allocation2 + $0xf0] sm:$0xff] }
 0x79a   : > { %v3197_v0 = vmax.f32 %v3195_v11, %v3130_v60 }
 0x79b   : > { %v6636_v49 = vpop.permute.xlu1 %2711  ;;  %v6638_v61 = vpop.permute.xlu0 %2707 }
 0x79c   : > { %vm2908_vm11 = vcmp.gt.f32.partialorder %v6636_v49, 0.5  ;;  %vm2907_vm12 = vcmp.gt.f32.partialorder %v6638_v61, 0.5 }
 0x79d   : > { %v3100_v26 = vsel %vm2908_vm11, %v2596_v33, -3.4028235e+38  ;;  %v3099_v27 = vsel %vm2907_vm12, %v2595_v1, -3.4028235e+38 }
 0x79e   : > { %v3162_v10 = vmax.f32 %v3160_v2, %v3100_v26 }
 0x79f   : > { %v6641_v17 = vpop.permute.xlu1 %2845  ;;  %v6643_v14 = vpop.permute.xlu0 %2841 }
 0x7a0   : > { %vm2940_vm13 = vcmp.gt.f32.partialorder %v6641_v17, 0.5  ;;  %vm2939_vm14 = vcmp.gt.f32.partialorder %v6643_v14, 0.5  ;;  %v3159_v17 = vmax.f32 %v3157_v35, %v3097_v54  ;;  %v3196_v14 = vmax.f32 %v3194_v40, %v3129_v7 }
 0x7a1   : > { %v3132_v21 = vsel %vm2940_vm13, %v2596_v33, -3.4028235e+38  ;;  %v3131_v45 = vsel %vm2939_vm14, %v2595_v1, -3.4028235e+38 }
 0x7a2   : > { %v3199_v30 = vmax.f32 %v3197_v0, %v3132_v21 }
 0x7a3   : > { %v6647_v24 = vpop.permute.xlu1 %2719  ;;  %v6649_v23 = vpop.permute.xlu0 %2715 }
 0x7a4   : > { %vm2910_vm15 = vcmp.gt.f32.partialorder %v6647_v24, 0.5  ;;  %vm2909_vm0 = vcmp.gt.f32.partialorder %v6649_v23, 0.5  ;;  %v3161_v24 = vmax.f32 %v3159_v17, %v3099_v27  ;;  %v3198_v23 = vmax.f32 %v3196_v14, %v3131_v45 }
 0x7a5   : > { %v3102_v58 = vsel %vm2910_vm15, %v2598_v63, -3.4028235e+38  ;;  %v3101_v52 = vsel %vm2909_vm0, %v2597_v3, -3.4028235e+38 }
 0x7a6   : > { %v3164_v32 = vmax.f32 %v3162_v10, %v3102_v58 }
 0x7a7   : > { %v6654_v55 = vpop.permute.xlu1 %2853  ;;  %v6656_v48 = vpop.permute.xlu0 %2849 }
 0x7a8   : > { %vm2942_vm1 = vcmp.gt.f32.partialorder %v6654_v55, 0.5  ;;  %vm2941_vm4 = vcmp.gt.f32.partialorder %v6656_v48, 0.5 }
 0x7a9   : > { %v3134_v13 = vsel %vm2942_vm1, %v2598_v63, -3.4028235e+38  ;;  %v3133_v8 = vsel %vm2941_vm4, %v2597_v3, -3.4028235e+38  ;;  %vm3228_vm4 = vcmask 1041409  }
 0x7ab   : > { %v6666_v36 = vpop.permute.xlu1 %2727  ;;  %v6668_v38 = vpop.permute.xlu0 %2723 }
 0x7ac   : > { %vm2912_vm2 = vcmp.gt.f32.partialorder %v6666_v36, 0.5  ;;  %vm2911_vm3 = vcmp.gt.f32.partialorder %v6668_v38, 0.5  ;;  %v3163_v36 = vmax.f32 %v3161_v24, %v3101_v52  ;;  %v3201_v38 = vmax.f32 %v3199_v30, %v3134_v13 }
 0x7ad   : > { %v3104_v15 = vsel %vm2912_vm2, %v2600_v56, -3.4028235e+38  ;;  %v3103_v50 = vsel %vm2911_vm3, %v2599_v22, -3.4028235e+38 }
 0x7ae   : > { %v3166_v29 = vmax.f32 %v3164_v32, %v3104_v15  ;;  %v3165_v4 = vmax.f32 %v3163_v36, %v3103_v50  ;;  %v3341_v36 = vld [vmem:[#allocation15 + $0x78] sm:$0xff] }
 0x7af   : > { %v6681_v6 = vpop.permute.xlu1 %2861  ;;  %v6683_v18 = vpop.permute.xlu0 %2857 }
 0x7b0   : > { %vm2944_vm6 = vcmp.gt.f32.partialorder %v6681_v6, 0.5  ;;  %vm2943_vm9 = vcmp.gt.f32.partialorder %v6683_v18, 0.5  ;;  %v3200_v18 = vmax.f32 %v3198_v23, %v3133_v8  ;;  %v3422_v8 = vld [vmem:[#allocation16 + $0x10] sm:$0xff] }
 0x7b1   : > { %v3136_v25 = vsel %vm2944_vm6, %v2600_v56, -3.4028235e+38  ;;  %v3135_v28 = vsel %vm2943_vm9, %v2599_v22, -3.4028235e+38 }
 0x7b2   : > { %v3203_v41 = vmax.f32 %v3201_v38, %v3136_v25  ;;  %v3202_v53 = vmax.f32 %v3200_v18, %v3135_v28  ;;  %v3421_v38 = vld [vmem:[#allocation16 + $0x8] sm:$0xff]  ;;  %v3424_v25 = vld [vmem:[#allocation16 + $0x20] sm:$0xff] }
 0x7b3   : > { %v2736_v51 = vpop.permute.xlu1 %2735  ;;  %v2732_v20 = vpop.permute.xlu0 %2731  ;;  %v3428_v28 = vld [vmem:[#allocation16 + $0x40] sm:$0xff] }
 0x7b4   : > { %vm2914_vm5 = vcmp.gt.f32.partialorder %v2736_v51, 0.5  ;;  %vm2913_vm8 = vcmp.gt.f32.partialorder %v2732_v20, 0.5 }
 0x7b5   : > { %v3106_v34 = vsel %vm2914_vm5, %v2602_v19, -3.4028235e+38  ;;  %v3105_v62 = vsel %vm2913_vm8, %v2601_v47, -3.4028235e+38 }
 0x7b6   : > { %v3168_v59 = vmax.f32 %v3166_v29, %v3106_v34  ;;  %v3167_v42 = vmax.f32 %v3165_v4, %v3105_v62  ;;  %v3425_v62 = vld [vmem:[#allocation16 + $0x28] sm:$0xff] }
 0x7b7   : > { %v2870_v49 = vpop.permute.xlu1 %2869  ;;  %v2866_v61 = vpop.permute.xlu0 %2865 }
 0x7b8   : > { %vm2946_vm12 = vcmp.gt.f32.partialorder %v2870_v49, 0.5  ;;  %vm2945_vm13 = vcmp.gt.f32.partialorder %v2866_v61, 0.5 }
 0x7b9   : > { %v3138_v48 = vsel %vm2946_vm12, %v2602_v19, -3.4028235e+38  ;;  %v3137_v33 = vsel %vm2945_vm13, %v2601_v47, -3.4028235e+38  ;;  %v3340_v47 = vld [vmem:[#allocation15 + $0x70] sm:$0xff] }
 0x7ba   : > { %v3205_v11 = vmax.f32 %v3203_v41, %v3138_v48  ;;  %v3204_v7 = vmax.f32 %v3202_v53, %v3137_v33  ;;  %v4514_v50 = vpack.c.bf16 %v3341_v36, %v3340_v47  ;;  %v3432_v48 = vld [vmem:[#allocation16 + $0x60] sm:$0xff] }
 0x7bb   : > { %v2744_v31 = vpop.permute.xlu1 %2743  ;;  %v2740_v55 = vpop.permute.xlu0 %2739  ;;  %v3772_v41 = vld [vmem:[%s6983_s0] ss:$0 sm:$0xff] }
 0x7bc   : > { %vm2916_vm10 = vcmp.gt.f32.partialorder %v2744_v31, 0.5  ;;  %vm2915_vm11 = vcmp.gt.f32.partialorder %v2740_v55, 0.5  ;;  %4515 = vmatpush3.bf16.msra.mxu1 %v4514_v50 }
 0x7bd   : > { %v3108_v5 = vsel %vm2916_vm10, %v2604_v43, -3.4028235e+38  ;;  %v3107_v44 = vsel %vm2915_vm11, %v2603_v46, -3.4028235e+38 }
 0x7be   : > { %v3170_v51 = vmax.f32 %v3168_v59, %v3108_v5  ;;  %v3169_v16 = vmax.f32 %v3167_v42, %v3107_v44  ;;  %v3429_v5 = vld [vmem:[#allocation16 + $0x48] sm:$0xff]  ;;  %v3430_v59 = vld [vmem:[#allocation16 + $0x50] sm:$0xff]  ;;  %v3431_v44 = vld [vmem:[#allocation16 + $0x58] sm:$0xff] }
 0x7bf   : > { %v2878_v6 = vpop.permute.xlu1 %2877  ;;  %v2874_v57 = vpop.permute.xlu0 %2873  ;;  %v4529_v18 = vpack.c.bf16 %v3429_v5, %v3428_v28  ;;  %v4532_v42 = vpack.c.bf16 %v3431_v44, %v3430_v59 }
 0x7c0   : > { %vm2948_vm14 = vcmp.gt.f32.partialorder %v2878_v6, 0.5  ;;  %vm2947_vm15 = vcmp.gt.f32.partialorder %v2874_v57, 0.5  ;;  %v4523_v6 = vpack.c.bf16 %v3425_v62, %v3424_v25  ;;  %v3427_v57 = vld [vmem:[#allocation16 + $0x38] sm:$0xff] }
 0x7c1   : > { %v3140_v1 = vsel %vm2948_vm14, %v2604_v43, -3.4028235e+38  ;;  %v3139_v54 = vsel %vm2947_vm15, %v2603_v46, -3.4028235e+38  ;;  %v3420_v43 = vld [vmem:[#allocation16] sm:$0xff]  ;;  %v3423_v46 = vld [vmem:[#allocation16 + $0x18] sm:$0xff] }
 0x7c2   : > { %v3207_v2 = vmax.f32 %v3205_v11, %v3140_v1  ;;  %v3206_v3 = vmax.f32 %v3204_v7, %v3139_v54  ;;  %v4517_v34 = vpack.c.bf16 %v3421_v38, %v3420_v43  ;;  %v4520_v29 = vpack.c.bf16 %v3423_v46, %v3422_v8  ;;  %v3774_v11 = vld [vmem:[%s6984_s17] ss:$0 sm:$0xff] }
 0x7c3   : > { %v2752_v20 = vpop.permute.xlu1 %2751  ;;  %v2748_v35 = vpop.permute.xlu0 %2747  ;;  %v3775_v7 = vld [vmem:[%s6985_s2] ss:$0 sm:$0xff] }
 0x7c4   : > { %vm2918_vm0 = vcmp.gt.f32.partialorder %v2752_v20, 0.5  ;;  %vm2917_vm1 = vcmp.gt.f32.partialorder %v2748_v35, 0.5  ;;  %v3434_v35 = vld [vmem:[#allocation16 + $0x70] sm:$0xff] }
 0x7c5   : > { %v3110_v60 = vsel %vm2918_vm0, %v2606_v37, -3.4028235e+38  ;;  %v3109_v40 = vsel %vm2917_vm1, %v2605_v9, -3.4028235e+38 }
 0x7c6   : > { %v3172_v26 = vmax.f32 %v3170_v51, %v3110_v60  ;;  %v3171_v63 = vmax.f32 %v3169_v16, %v3109_v40  ;;  %v3435_v16 = vld [vmem:[#allocation16 + $0x78] sm:$0xff] }
 0x7c7   : > { %v2886_v27 = vpop.permute.xlu1 %2885  ;;  %v2882_v21 = vpop.permute.xlu0 %2881  ;;  %v4538_v1 = vpack.c.bf16 %v3435_v16, %v3434_v35 }
 0x7c8   : > { %v3173_v49 = vmax.f32 %v3171_v63, %v3172_v26  ;;  %vm2950_vm2 = vcmp.gt.f32.partialorder %v2886_v27, 0.5  ;;  %vm2949_vm3 = vcmp.gt.f32.partialorder %v2882_v21, 0.5 }
 0x7c9   : > { %v3142_v61 = vsel %vm2950_vm2, %v2606_v37, -3.4028235e+38  ;;  %v3141_v17 = vsel %vm2949_vm3, %v2605_v9, -3.4028235e+38  ;;  %v3433_v37 = vld [vmem:[#allocation16 + $0x68] sm:$0xff] }
 0x7ca   : > { %v3174_v0 = vrot.slane %v3173_v49, 4  ;;  %v3209_v45 = vmax.f32 %v3207_v2, %v3142_v61  ;;  %v3208_v14 = vmax.f32 %v3206_v3, %v3141_v17  ;;  %v4535_v9 = vpack.c.bf16 %v3433_v37, %v3432_v48 }
 0x7cc   : > { %v3175_v10 = vmax.f32 %v3173_v49, %v3174_v0  ;;  %v3210_v58 = vmax.f32 %v3208_v14, %v3209_v45 }
 0x7ce   : > { %v3176_v56 = vrot.slane %v3175_v10, 2  ;;  %v3211_v24 = vrot.slane %v3210_v58, 4 }
 0x7d0   : > { %v3177_v30 = vmax.f32 %v3175_v10, %v3176_v56  ;;  %v3212_v52 = vmax.f32 %v3210_v58, %v3211_v24 }
 0x7d2   : > { %v3213_v22 = vrot.slane %v3212_v52, 2  ;;  %v3178_v13 = vrot.slane %v3177_v30, 1 }
 0x7d4   : > { %v3214_v23 = vmax.f32 %v3212_v52, %v3213_v22  ;;  %v3179_v31 = vmax.f32 %v3177_v30, %v3178_v13 }
 0x7d6   : > { %v3215_v19 = vrot.slane %v3214_v23, 1 }
 0x7d8   : > { %v3216_v55 = vmax.f32 %v3214_v23, %v3215_v19 }
 0x7da   : > { %v3229_v32 = vsel %vm3228_vm4, %v3216_v55, %v3179_v31 }
 0x801   : > { %v3222_v15 = vpop.xlane.xlu0 %3221 }
 0x802   : > { %vm3223_vm5 = vcmp.gt.f32.partialorder %v3222_v15, 0.5 }
 0x803   : > { %4300 = vmatmul.mubr.msk.f32.vlgmr.msra.gmra.mrb[0].mxu0 %vm3223_vm5, %v3229_v32 }
 0x804   : > { %4369 = vmatprep.mubr.msk.f32.mxu0 %vm5233_vm7, %v5234_v12  ;;  %4518 = vmatpush3.bf16.msra.mxu0 %v4517_v34  ;;  %v3426_v12 = vld [vmem:[#allocation16 + $0x30] sm:$0xff] }
 0x805   : > { %4519 = vmatprep.subr.bf16.mxu0 %v5232_v39  ;;  %v4526_v4 = vpack.c.bf16 %v3427_v57, %v3426_v12 }
 0x808   : > { %4521 = vmatpush3.bf16.msra.mxu0 %v4520_v29 }
 0x809   : > { %4522 = vmatprep.subr.bf16.mxu0 %v5232_v39 }
 0x80c   : > { %4524 = vmatpush3.bf16.msra.mxu0 %v4523_v6 }
 0x80d   : > { %4525 = vmatprep.subr.bf16.mxu0 %v5232_v39 }
 0x810   : > { %4527 = vmatpush3.bf16.msra.mxu0 %v4526_v4 }
 0x811   : > { %4528 = vmatprep.subr.bf16.mxu0 %v5232_v39 }
 0x814   : > { %4530 = vmatpush3.bf16.msra.mxu0 %v4529_v18 }
 0x815   : > { %4531 = vmatprep.subr.bf16.mxu0 %v5232_v39 }
 0x818   : > { %4533 = vmatpush3.bf16.msra.mxu0 %v4532_v42 }
 0x819   : > { %4534 = vmatprep.subr.bf16.mxu0 %v5232_v39 }
 0x81c   : > { %4536 = vmatpush3.bf16.msra.mxu0 %v4535_v9 }
 0x81d   : > { %4537 = vmatprep.subr.bf16.mxu0 %v5232_v39 }
 0x820   : > { %4539 = vmatpush3.bf16.msra.mxu0 %v4538_v1 }
 0x8d6   : > { %v3321_v53 = vpop.f32.mrb[0].mxu0 }
 0x8d7   : > { %v3322_v33 = vadd.f32 %v3772_v41, %v3321_v53  ;;  %v4301_v51 = vpop.f32.mrb[1].mxu0 }
 0x8d9   : > { %v3325_v20 = vmax.f32 %v3322_v33, 0.0 }
 0x8db   : > { %4335 = vmatmul.mubr.f32.vlgmr.msra.gmra.mrb[0].mxu1 %v3325_v20 }
 0x9ae   : > { %v3415_v54 = vpop.f32.mrb[0].mxu1 }
 0x9af   : > { %v3416_v60 = vadd.f32 %v3774_v11, %v3415_v54  ;;  %v4336_v39 = vpop.f32.mrb[1].mxu1 }
 0x9b1   : > { %v3419_v40 = vmax.f32 %v3416_v60, 0.0 }
 0x9b3   : > { %4370 = vmatmul.mubr.f32.vlgmr.msra.gmra.mrb[2].mxu0 %v3419_v40 }
 0xa86   : > { %v3509_v26 = vpop.f32.mrb[2].mxu0 }
 0xa87   : > { %v3510_v63 = vadd.f32 %v3775_v7, %v3509_v26  ;;  %v4371_v2 = vpop.f32.mrb[3].mxu0 }
 0xa89   : > { %v3776_v27 = vmul.f32 -1.442695, %v3510_v63 }
 0xa8b   : > { %4831 = vpow2.f32 %v3776_v27 }
 0xa95   : > { %v4832_v21 = vpop.eup %4831 }
 0xa96   : > { %v3516_v3 = vadd.f32 1.0, %v4832_v21 }
 0xa98   : > { %4833 = vrcp.f32 %v3516_v3 }
 0xaa2   : > { %v4834_v49 = vpop.eup %4833 }
 0xaa3   : > { %3519 = vst [vmem:[#allocation18] sm:$0x3] %v4834_v49 }
 0xaa4 PF: > { %s6986_s25 = sld [smem:[#allocation33_spill]]  ;;  %s5235_s11 = smov [#allocation18]  }
 0xaa5   : > { %s3527_s28 = sshll.u32 %s5235_s11, 4  ;;  %s3528_s28 = int_to_ptr.vmem [resolvable:$true] %s3527_s28 }
 0xaa6   : > { %s5065_s13 = scalar_lea.vmem %s3528_s28, 32  ;;  %p5072_p3 = scmp.lt.s32.totalorder %s3528_s28, %s3528_s28 }
 0xaa7   : > { %p5066_p11 = scmp.ne.s32.totalorder %s3528_s28, %s5065_s13  ;;  %p5073_p9 = scmp.lt.s32.totalorder %s5065_s13, %s5065_s13 }
 0xaa9   : > { %p5074_p13 = por %p5073_p9, %p5072_p3 }
 0xaaa   : > { %p4639_p7 = scmp.eq.s32.totalorder %s6986_s25, 7 }
 0xaac   : > { %p5067_p10 = pnand %p5066_p11, %p4639_p7 }
 0xaae   : > { %p5068_p2 = pneg %p5067_p10 }
 0xab0   : > { %p5075_p12 = pnand %p5074_p13, %p5068_p2 }
 0xab2   : > { %5078 = shalt.err (!%p5075_p12)
}
 0xab3   : > { %s6987_s7 = sld [smem:[#allocation58_spill]] }
 0xab9   : > { %s5079_s18 = scalar_lea.hbm %s6987_s7, 32 }
 0xaba   : > { %p5080_p1 = scmp.ne.s32.totalorder %s6987_s7, %s5079_s18  ;;  %p5085_p8 = scmp.lt.u32.totalorder %s5079_s18, %s6987_s7 }
 0xabc   : > { %p5081_p0 = pnand %p5080_p1, %p4639_p7 }
 0xabe   : > { %p5082_p4 = pneg %p5081_p0 }
 0xac0   : > { %p5087_p6 = pnand %p5085_p8, %p5082_p4 }
 0xac2   : > { %5090 = shalt.err (!%p5087_p6)
}
 0xac3   : > { %4599 = dma.vmem_to_hbm [thread:$0]  (%p4639_p7), %s3528_s28, 32, %s6987_s7, [#allocation6]  }
 0xac4   : > { %5164 = dma.done.wait (%p4639_p7), [#allocation6], 32  }
 0xac5   : > { %5166 = vsyncadd (%p4639_p7), [#allocation6], 4294967264 }
 0xac6 PF: > { %s6988_s8 = sld [smem:[#allocation32_spill]]  ;;  %s6990_s27 = sld [smem:[#allocation25_spill]] }
 0xac7   : > { %s6991_s30 = sld [smem:[#allocation27_spill]]  ;;  %s6992_s20 = sld [smem:[#allocation31_spill]] }
 0xac8   : > { %s6993_s16 = sld [smem:[#allocation37_spill]]  ;;  %s6994_s2 = sld [smem:[#allocation38_spill]] }
 0xac9   : > { %s6995_s26 = sld [smem:[#allocation39_spill]]  ;;  %s6997_s28 = smov %s5177_s29 }
 0xaca   : > { %s6998_s29 = smov %s5654_s24  ;;  %s6999_s0 = smov %s5189_s19 }
 0xacb   : > { %s7000_s19 = smov %s5646_s12  ;;  %s7001_s1 = smov %s5205_s22 }
 0xacc   : > { %s38_s14 = sadd.s32 1, %s6988_s8   ;;  %s7002_s21 = smov %s5213_s23 }
 0xacd   : > { %p6746_p5 = scmp.ge.s32.totalorder %s38_s14, 10   ;;  %s7005_s24 = smov %s38_s14 }
 0xace   : > { %s7003_s22 = smov %s6993_s16 }
 0xacf   : > { %s7004_s23 = smov %s6995_s26  ;;  %37 = sbr.rel (!%p6746_p5) target bundleno = 34 (0x22), region = 203 }
 0xad6   :  { %3540 = vsyncpa [#allocation5], 1 }
 0xad7   :  { %3542 = vsyncpa [#allocation5 + $0x1], 1 }
 0xad8   :  { %3543 = vsyncpa [#allocation8], 1 }
 0xad9   :  { %3544 = vsyncpa [#allocation11], 1 }
 0xada   :  { %3546 = vsyncpa [#allocation11 + $0x1], 1 }
 0xadb   :  { %3547 = vsyncpa [#allocation14], 1 }
 0xadc   :  { %3548 = vsyncpa [#allocation17], 1 }
 0xadd   :  { %3549 = vsyncpa [#allocation6], 1 }
 0xade   :  { %3551 = vsyncpa [#allocation6 + $0x1], 1 }

</bundles_post_ra>
